<compile_context>
chip_gen: v7x
topology: tpu7x:2x2x1
jax: 0.10.0
libtpu: 0.0.40
codegen_flags: <defaults>
</compile_context>

<pallas_src>
import functools

import jax
import jax.numpy as jnp
from jax import lax
from jax.experimental import pallas as pl
from jax.experimental.pallas import tpu as pltpu


# ----------------------------- network geometry (fixed by the module, 32x32 RGB input) ---
H0, W0, C0 = 32, 32, 3
C1, C2, C3, C4 = 32, 64, 128, 64
H1, W1 = 30, 30          # conv1 out
H2, W2 = 28, 28          # conv2 out
HP1, WP1 = 14, 14        # pool1 out
H3, W3 = 12, 12          # conv3 out
H4, W4 = 10, 10          # conv4 out
HP2, WP2 = 5, 5          # pool2 out
F1_IN = C4 * HP2 * WP2   # 1600
F1, F2, F3 = 128, 64, 10


# ----------------------------- fused forward kernel (one image per grid step) ------------
def _fused_cnn_kernel(x_ref,                                     # (H0, W0, C0) NHWC image
                      w1_ref, b1_ref, w2_ref, b2_ref,
                      w3_ref, b3_ref, w4_ref, b4_ref,
                      f1w_ref, f1b_ref, f2w_ref, f2b_ref, f3w_ref, f3b_ref,
                      o_ref,                                     # (1, 10)
                      a1_ref, p1_ref, a3_ref, p2_ref):           # VMEM activations
    def conv_row(in_row_fn, w_ref, bias, r, wo):
        # One output row of a 3x3 VALID conv: sum of 9 (wo, Cin) @ (Cin, Cout) matmuls.
        # Pure 2-D slices + 2-D dots: no reshapes, accumulator stays in a few vregs.
        acc = None
        for kh in range(3):
            row = in_row_fn(r + kh)                              # (W_in, Cin)
            for kw in range(3):
                part = jnp.dot(row[kw:kw + wo, :], w_ref[kh, kw],
                               preferred_element_type=jnp.float32)
                acc = part if acc is None else acc + part
        return acc + bias                                        # (wo, Cout)

    # ---- conv1: 3 -> 32, 32x32 -> 30x30 (no ReLU) ----
    b1 = b1_ref[...]

    @pl.loop(0, H1)
    def _(r):
        a1_ref[r] = conv_row(lambda rr: x_ref[rr], w1_ref, b1, r, W1)

    # ---- conv2: 32 -> 64 + ReLU, fused 2x2 maxpool: 30x30 -> 28x28 -> 14x14 ----
    b2 = b2_ref[...]

    @pl.loop(0, HP1)
    def _(pr):
        r0 = pr * 2
        row0 = jnp.maximum(conv_row(lambda rr: a1_ref[rr], w2_ref, b2, r0, W2), 0.0)
        row1 = jnp.maximum(conv_row(lambda rr: a1_ref[rr], w2_ref, b2, r0 + 1, W2), 0.0)
        m = jnp.maximum(row0, row1)                              # pooled over H: (W2, C2)
        m = jnp.max(m.reshape(WP1, 2, C2), axis=1)               # pooled over W: (WP1, C2)
        p1_ref[pr] = m

    # ---- conv3: 64 -> 128, 14x14 -> 12x12 (no ReLU) ----
    b3 = b3_ref[...]

    @pl.loop(0, H3)
    def _(r):
        a3_ref[r] = conv_row(lambda rr: p1_ref[rr], w3_ref, b3, r, W3)

    # ---- conv4: 128 -> 64 + ReLU, fused 2x2 maxpool: 12x12 -> 10x10 -> 5x5 ----
    b4 = b4_ref[...]

    @pl.loop(0, HP2)
    def _(pr):
        r0 = pr * 2
        row0 = jnp.maximum(conv_row(lambda rr: a3_ref[rr], w4_ref, b4, r0, W4), 0.0)
        row1 = jnp.maximum(conv_row(lambda rr: a3_ref[rr], w4_ref, b4, r0 + 1, W4), 0.0)
        m = jnp.maximum(row0, row1)                              # (W4, C4)
        m = jnp.max(m.reshape(WP2, 2, C4), axis=1)               # (WP2, C4)
        p2_ref[pr] = m

    # ---- FC stack (fc1 weights pre-permuted to (HP2*WP2, C4, F1) on the host, so the
    #      NHWC activations contract directly == PyTorch x.view(-1, C*H*W) @ W1.T) ----
    h = f1b_ref[...].astype(jnp.float32)                         # (1, F1)
    for hh in range(HP2):
        row = p2_ref[hh]                                         # (WP2, C4)
        for ww in range(WP2):
            h = h + jnp.dot(row[ww:ww + 1, :], f1w_ref[hh * WP2 + ww],
                            preferred_element_type=jnp.float32)
    h = jnp.dot(h, f2w_ref[...], preferred_element_type=jnp.float32) + f2b_ref[...]
    h = jnp.dot(h, f3w_ref[...], preferred_element_type=jnp.float32) + f3b_ref[...]
    o_ref[...] = h.astype(o_ref.dtype)


def _full_spec(shape):
    nd = len(shape)
    return pl.BlockSpec(shape, lambda b, _n=nd: (0,) * _n)


@jax.jit
def cnn_basic_forward(x_nchw, kernel_params):
    """Forward pass matching CNNBasic. x_nchw: (B, 3, 32, 32) float32."""
    (w1, b1), (w2, b2), (w3, b3), (w4, b4), (f1w_p, f1b), (f2w, f2b), (f3w, f3b) = kernel_params
    assert x_nchw.shape[1:] == (C0, H0, W0), x_nchw.shape
    B = x_nchw.shape[0]
    x = jnp.transpose(x_nchw, (0, 2, 3, 1)).astype(jnp.float32)  # NCHW -> NHWC (tiny glue)

    flops_per_image = 2 * (H1 * W1 * 9 * C0 * C1 + H2 * W2 * 9 * C1 * C2 +
                           H3 * W3 * 9 * C2 * C3 + H4 * W4 * 9 * C3 * C4 +
                           F1_IN * F1 + F1 * F2 + F2 * F3)
    weight_bytes = 4 * (9 * (C0 * C1 + C1 * C2 + C2 * C3 + C3 * C4) +
                        F1_IN * F1 + F1 * F2 + F2 * F3 +
                        C1 + C2 + C3 + C4 + F1 + F2 + F3)
    io_bytes = 4 * B * (H0 * W0 * C0 + F3)

    grid_spec = pltpu.PrefetchScalarGridSpec(
        num_scalar_prefetch=0,
        grid=(B,),
        in_specs=[
            pl.BlockSpec((None, H0, W0, C0), lambda b: (b, 0, 0, 0)),
            _full_spec(w1.shape), _full_spec(b1.shape),
            _full_spec(w2.shape), _full_spec(b2.shape),
            _full_spec(w3.shape), _full_spec(b3.shape),
            _full_spec(w4.shape), _full_spec(b4.shape),
            _full_spec(f1w_p.shape), _full_spec(f1b.shape),
            _full_spec(f2w.shape), _full_spec(f2b.shape),
            _full_spec(f3w.shape), _full_spec(f3b.shape),
        ],
        out_specs=pl.BlockSpec((None, 1, F3), lambda b: (b, 0, 0)),
        scratch_shapes=[
            pltpu.VMEM((H1, W1, C1), jnp.float32),    # conv1 out
            pltpu.VMEM((HP1, WP1, C2), jnp.float32),  # pool1 out
            pltpu.VMEM((H3, W3, C3), jnp.float32),    # conv3 out
            pltpu.VMEM((HP2, WP2, C4), jnp.float32),  # pool2 out
        ],
    )

    out = pl.pallas_call(
        _fused_cnn_kernel,
        out_shape=jax.ShapeDtypeStruct((B, 1, F3), jnp.float32),
        grid_spec=grid_spec,
        compiler_params=pltpu.CompilerParams(
            dimension_semantics=("parallel",),        # batch across TensorCores on v7x
            vmem_limit_bytes=32 * 1024 * 1024,
        ),
        cost_estimate=pl.CostEstimate(
            flops=B * flops_per_image,
            transcendentals=0,
            bytes_accessed=weight_bytes + io_bytes),
    )(x, w1, b1, w2, b2, w3, b3, w4, b4, f1w_p, f1b, f2w, f2b, f3w, f3b)
    return out.reshape(B, F3)


# ----------------------------- parameters (deterministic, PyTorch-style init) ------------
def init_params(key):
    """Conv weights stored (KH, KW, Cin, Cout); linear weights (in, out); biases (1, C)."""
    ks = jax.random.split(key, 14)

    def u(k, shape, fan_in):
        bound = 1.0 / float(fan_in) ** 0.5
        return jax.random.uniform(k, shape, jnp.float32, -bound, bound)

    def conv_p(kw_, kb_, cin, cout, k=3):
        fan = cin * k * k
        return u(kw_, (k, k, cin, cout), fan), u(kb_, (1, cout), fan)

    def lin_p(kw_, kb_, fin, fout):
        return u(kw_, (fin, fout), fin), u(kb_, (1, fout), fin)

    return (conv_p(ks[0], ks[1], C0, C1), conv_p(ks[2], ks[3], C1, C2),
            conv_p(ks[4], ks[5], C2, C3), conv_p(ks[6], ks[7], C3, C4),
            lin_p(ks[8], ks[9], F1_IN, F1), lin_p(ks[10], ks[11], F1, F2),
            lin_p(ks[12], ks[13], F2, F3))


def prepare_params(params):
    """One-time host-side repack: permute fc1 rows from PyTorch's (C,H,W) flatten order to
    the kernel's (H,W,C) order and split into (HP2*WP2, C4, F1) blocks -> the kernel never
    needs a transpose before the FC stack."""
    (c1, c2, c3, c4, (f1w, f1b), f2, f3) = params
    f1w_hwc = jnp.transpose(f1w.reshape(C4, HP2 * WP2, F1), (1, 0, 2))   # (25, 64, 128)
    return (c1, c2, c3, c4, (f1w_hwc, f1b), f2, f3)


# ----------------------------- pure-JAX reference (matches the PyTorch module) -----------
def reference_forward(x_nchw, params):
    (c1w, c1b), (c2w, c2b), (c3w, c3b), (c4w, c4b), (f1w, f1b), (f2w, f2b), (f3w, f3b) = params

    def conv(x, w, b):
        y = lax.conv_general_dilated(
            x, jnp.transpose(w, (3, 2, 0, 1)), (1, 1), "VALID",
            dimension_numbers=("NCHW", "OIHW", "NCHW"),
            precision=lax.Precision.HIGHEST)
        return y + b.reshape(1, -1, 1, 1)

    def pool(x):
        return lax.reduce_window(x, -jnp.inf, lax.max, (1, 1, 2, 2), (1, 1, 2, 2), "VALID")

    x = conv(x_nchw, c1w, c1b)
    x = pool(jnp.maximum(conv(x, c2w, c2b), 0.0))
    x = conv(x, c3w, c3b)
    x = pool(jnp.maximum(conv(x, c4w, c4b), 0.0))
    x = x.reshape(x.shape[0], -1)                     # PyTorch x.view(-1, C*H*W)
    x = jnp.dot(x, f1w, precision=lax.Precision.HIGHEST) + f1b
    x = jnp.dot(x, f2w, precision=lax.Precision.HIGHEST) + f2b
    x = jnp.dot(x, f3w, precision=lax.Precision.HIGHEST) + f3b
    return x


if __name__ == "__main__":
    key = jax.random.PRNGKey(0)
    pkey, xkey = jax.random.split(key)
    params = init_params(pkey)
    kparams = prepare_params(params)

    # Input consistent with the module: 32x32 RGB images, small batch.
    x = jax.random.normal(xkey, (2, 3, 32, 32), jnp.float32)

    out = cnn_basic_forward(x, kparams)
    jax.block_until_ready(out)
    assert out.shape == (2, 10), out.shape

    ref = reference_forward(x, params)
    max_err = float(jnp.max(jnp.abs(out - ref)))
    assert jnp.allclose(out, ref, atol=2e-3, rtol=2e-3), f"max abs err {max_err}"

    print("KERNEL_OK")
</pallas_src>

<mosaic_0001>
module attributes {stable_mosaic.version = 11 : i64} {
  func.func @_fused_cnn_kernel(%arg0: i32, %arg1: memref<1x32x32x3xf32, #tpu.memory_space<vmem>>, %arg2: memref<3x3x3x32xf32, #tpu.memory_space<vmem>>, %arg3: memref<1x32xf32, #tpu.memory_space<vmem>>, %arg4: memref<3x3x32x64xf32, #tpu.memory_space<vmem>>, %arg5: memref<1x64xf32, #tpu.memory_space<vmem>>, %arg6: memref<3x3x64x128xf32, #tpu.memory_space<vmem>>, %arg7: memref<1x128xf32, #tpu.memory_space<vmem>>, %arg8: memref<3x3x128x64xf32, #tpu.memory_space<vmem>>, %arg9: memref<1x64xf32, #tpu.memory_space<vmem>>, %arg10: memref<25x64x128xf32, #tpu.memory_space<vmem>>, %arg11: memref<1x128xf32, #tpu.memory_space<vmem>>, %arg12: memref<128x64xf32, #tpu.memory_space<vmem>>, %arg13: memref<1x64xf32, #tpu.memory_space<vmem>>, %arg14: memref<64x10xf32, #tpu.memory_space<vmem>>, %arg15: memref<1x10xf32, #tpu.memory_space<vmem>>, %arg16: memref<1x1x10xf32, #tpu.memory_space<vmem>>, %arg17: memref<30x30x32xf32, #tpu.memory_space<vmem>>, %arg18: memref<14x14x64xf32, #tpu.memory_space<vmem>>, %arg19: memref<12x12x128xf32, #tpu.memory_space<vmem>>, %arg20: memref<5x5x64xf32, #tpu.memory_space<vmem>>) attributes {dimension_semantics = [#tpu.dimension_semantics<parallel>], iteration_bounds = array<i64: 2>, scalar_prefetch = 0 : i64, scratch_operands = 4 : i64, tpu.core_type = #tpu.core_type<tc>, window_params = [{transform_indices = @transform_0, window_bounds = array<i64: 1, 32, 32, 3>}, {pipeline_mode = #tpu.pipeline_mode<synchronous>, transform_indices = @transform_1, window_bounds = array<i64: 3, 3, 3, 32>}, {pipeline_mode = #tpu.pipeline_mode<synchronous>, transform_indices = @transform_2, window_bounds = array<i64: 1, 32>}, {pipeline_mode = #tpu.pipeline_mode<synchronous>, transform_indices = @transform_3, window_bounds = array<i64: 3, 3, 32, 64>}, {pipeline_mode = #tpu.pipeline_mode<synchronous>, transform_indices = @transform_4, window_bounds = array<i64: 1, 64>}, {pipeline_mode = #tpu.pipeline_mode<synchronous>, transform_indices = @transform_5, window_bounds = array<i64: 3, 3, 64, 128>}, {pipeline_mode = #tpu.pipeline_mode<synchronous>, transform_indices = @transform_6, window_bounds = array<i64: 1, 128>}, {pipeline_mode = #tpu.pipeline_mode<synchronous>, transform_indices = @transform_7, window_bounds = array<i64: 3, 3, 128, 64>}, {pipeline_mode = #tpu.pipeline_mode<synchronous>, transform_indices = @transform_8, window_bounds = array<i64: 1, 64>}, {pipeline_mode = #tpu.pipeline_mode<synchronous>, transform_indices = @transform_9, window_bounds = array<i64: 25, 64, 128>}, {pipeline_mode = #tpu.pipeline_mode<synchronous>, transform_indices = @transform_10, window_bounds = array<i64: 1, 128>}, {pipeline_mode = #tpu.pipeline_mode<synchronous>, transform_indices = @transform_11, window_bounds = array<i64: 128, 64>}, {pipeline_mode = #tpu.pipeline_mode<synchronous>, transform_indices = @transform_12, window_bounds = array<i64: 1, 64>}, {pipeline_mode = #tpu.pipeline_mode<synchronous>, transform_indices = @transform_13, window_bounds = array<i64: 64, 10>}, {pipeline_mode = #tpu.pipeline_mode<synchronous>, transform_indices = @transform_14, window_bounds = array<i64: 1, 10>}, {transform_indices = @transform_15, window_bounds = array<i64: 1, 1, 10>}]} {
    %c0 = arith.constant 0 : index
    %c0_0 = arith.constant 0 : index
    %0 = vector.load %arg3[%c0, %c0_0] : memref<1x32xf32, #tpu.memory_space<vmem>>, vector<1x32xf32>
    %c0_i32 = arith.constant 0 : i32
    %c30_i32 = arith.constant 30 : i32
    %1 = arith.addi %c0_i32, %c30_i32 : i32
    %c1_i32 = arith.constant 1 : i32
    scf.for %arg21 = %c0_i32 to %1 step %c1_i32  : i32 {
      %c1_i32_122 = arith.constant 1 : i32
      %155 = arith.muli %arg21, %c1_i32_122 : i32
      %c0_i32_123 = arith.constant 0 : i32
      %156 = arith.addi %c0_i32_123, %155 : i32
      %c0_i32_124 = arith.constant 0 : i32
      %157 = arith.addi %156, %c0_i32_124 : i32
      %c0_125 = arith.constant 0 : index
      %158 = arith.index_cast %157 : i32 to index
      %c0_126 = arith.constant 0 : index
      %c0_127 = arith.constant 0 : index
      %159 = vector.load %arg1[%c0_125, %158, %c0_126, %c0_127] : memref<1x32x32x3xf32, #tpu.memory_space<vmem>>, vector<1x1x32x3xf32>
      %160 = vector.shape_cast %159 : vector<1x1x32x3xf32> to vector<32x3xf32>
      %161 = vector.extract_strided_slice %160 {offsets = [0, 0], sizes = [30, 3], strides = [1, 1]} : vector<32x3xf32> to vector<30x3xf32>
      %c0_128 = arith.constant 0 : index
      %c0_129 = arith.constant 0 : index
      %c0_130 = arith.constant 0 : index
      %c0_131 = arith.constant 0 : index
      %162 = vector.load %arg2[%c0_128, %c0_129, %c0_130, %c0_131] : memref<3x3x3x32xf32, #tpu.memory_space<vmem>>, vector<1x1x3x32xf32>
      %163 = vector.shape_cast %162 : vector<1x1x3x32xf32> to vector<3x32xf32>
      %cst_132 = arith.constant dense<0.000000e+00> : vector<30x32xf32>
      %164 = tpu.matmul %161, %163, %cst_132 {dimension_numbers = #tpu.dot_dimension_numbers<[1], [0], [0], [1], [0, 0, 1, 1], [], []>} : vector<30x3xf32>, vector<3x32xf32>, vector<30x32xf32> -> vector<30x32xf32>
      %165 = vector.extract_strided_slice %160 {offsets = [1, 0], sizes = [30, 3], strides = [1, 1]} : vector<32x3xf32> to vector<30x3xf32>
      %c0_133 = arith.constant 0 : index
      %c1_134 = arith.constant 1 : index
      %c0_135 = arith.constant 0 : index
      %c0_136 = arith.constant 0 : index
      %166 = vector.load %arg2[%c0_133, %c1_134, %c0_135, %c0_136] : memref<3x3x3x32xf32, #tpu.memory_space<vmem>>, vector<1x1x3x32xf32>
      %167 = vector.shape_cast %166 : vector<1x1x3x32xf32> to vector<3x32xf32>
      %cst_137 = arith.constant dense<0.000000e+00> : vector<30x32xf32>
      %168 = tpu.matmul %165, %167, %cst_137 {dimension_numbers = #tpu.dot_dimension_numbers<[1], [0], [0], [1], [0, 0, 1, 1], [], []>} : vector<30x3xf32>, vector<3x32xf32>, vector<30x32xf32> -> vector<30x32xf32>
      %169 = arith.addf %164, %168 : vector<30x32xf32>
      %170 = vector.extract_strided_slice %160 {offsets = [2, 0], sizes = [30, 3], strides = [1, 1]} : vector<32x3xf32> to vector<30x3xf32>
      %c0_138 = arith.constant 0 : index
      %c2_139 = arith.constant 2 : index
      %c0_140 = arith.constant 0 : index
      %c0_141 = arith.constant 0 : index
      %171 = vector.load %arg2[%c0_138, %c2_139, %c0_140, %c0_141] : memref<3x3x3x32xf32, #tpu.memory_space<vmem>>, vector<1x1x3x32xf32>
      %172 = vector.shape_cast %171 : vector<1x1x3x32xf32> to vector<3x32xf32>
      %cst_142 = arith.constant dense<0.000000e+00> : vector<30x32xf32>
      %173 = tpu.matmul %170, %172, %cst_142 {dimension_numbers = #tpu.dot_dimension_numbers<[1], [0], [0], [1], [0, 0, 1, 1], [], []>} : vector<30x3xf32>, vector<3x32xf32>, vector<30x32xf32> -> vector<30x32xf32>
      %174 = arith.addf %169, %173 : vector<30x32xf32>
      %c1_i32_143 = arith.constant 1 : i32
      %175 = arith.addi %156, %c1_i32_143 : i32
      %c0_144 = arith.constant 0 : index
      %176 = arith.index_cast %175 : i32 to index
      %c0_145 = arith.constant 0 : index
      %c0_146 = arith.constant 0 : index
      %177 = vector.load %arg1[%c0_144, %176, %c0_145, %c0_146] : memref<1x32x32x3xf32, #tpu.memory_space<vmem>>, vector<1x1x32x3xf32>
      %178 = vector.shape_cast %177 : vector<1x1x32x3xf32> to vector<32x3xf32>
      %179 = vector.extract_strided_slice %178 {offsets = [0, 0], sizes = [30, 3], strides = [1, 1]} : vector<32x3xf32> to vector<30x3xf32>
      %c1_147 = arith.constant 1 : index
      %c0_148 = arith.constant 0 : index
      %c0_149 = arith.constant 0 : index
      %c0_150 = arith.constant 0 : index
      %180 = vector.load %arg2[%c1_147, %c0_148, %c0_149, %c0_150] : memref<3x3x3x32xf32, #tpu.memory_space<vmem>>, vector<1x1x3x32xf32>
      %181 = vector.shape_cast %180 : vector<1x1x3x32xf32> to vector<3x32xf32>
      %cst_151 = arith.constant dense<0.000000e+00> : vector<30x32xf32>
      %182 = tpu.matmul %179, %181, %cst_151 {dimension_numbers = #tpu.dot_dimension_numbers<[1], [0], [0], [1], [0, 0, 1, 1], [], []>} : vector<30x3xf32>, vector<3x32xf32>, vector<30x32xf32> -> vector<30x32xf32>
      %183 = arith.addf %174, %182 : vector<30x32xf32>
      %184 = vector.extract_strided_slice %178 {offsets = [1, 0], sizes = [30, 3], strides = [1, 1]} : vector<32x3xf32> to vector<30x3xf32>
      %c1_152 = arith.constant 1 : index
      %c1_153 = arith.constant 1 : index
      %c0_154 = arith.constant 0 : index
      %c0_155 = arith.constant 0 : index
      %185 = vector.load %arg2[%c1_152, %c1_153, %c0_154, %c0_155] : memref<3x3x3x32xf32, #tpu.memory_space<vmem>>, vector<1x1x3x32xf32>
      %186 = vector.shape_cast %185 : vector<1x1x3x32xf32> to vector<3x32xf32>
      %cst_156 = arith.constant dense<0.000000e+00> : vector<30x32xf32>
      %187 = tpu.matmul %184, %186, %cst_156 {dimension_numbers = #tpu.dot_dimension_numbers<[1], [0], [0], [1], [0, 0, 1, 1], [], []>} : vector<30x3xf32>, vector<3x32xf32>, vector<30x32xf32> -> vector<30x32xf32>
      %188 = arith.addf %183, %187 : vector<30x32xf32>
      %189 = vector.extract_strided_slice %178 {offsets = [2, 0], sizes = [30, 3], strides = [1, 1]} : vector<32x3xf32> to vector<30x3xf32>
      %c1_157 = arith.constant 1 : index
      %c2_158 = arith.constant 2 : index
      %c0_159 = arith.constant 0 : index
      %c0_160 = arith.constant 0 : index
      %190 = vector.load %arg2[%c1_157, %c2_158, %c0_159, %c0_160] : memref<3x3x3x32xf32, #tpu.memory_space<vmem>>, vector<1x1x3x32xf32>
      %191 = vector.shape_cast %190 : vector<1x1x3x32xf32> to vector<3x32xf32>
      %cst_161 = arith.constant dense<0.000000e+00> : vector<30x32xf32>
      %192 = tpu.matmul %189, %191, %cst_161 {dimension_numbers = #tpu.dot_dimension_numbers<[1], [0], [0], [1], [0, 0, 1, 1], [], []>} : vector<30x3xf32>, vector<3x32xf32>, vector<30x32xf32> -> vector<30x32xf32>
      %193 = arith.addf %188, %192 : vector<30x32xf32>
      %c2_i32 = arith.constant 2 : i32
      %194 = arith.addi %156, %c2_i32 : i32
      %c0_162 = arith.constant 0 : index
      %195 = arith.index_cast %194 : i32 to index
      %c0_163 = arith.constant 0 : index
      %c0_164 = arith.constant 0 : index
      %196 = vector.load %arg1[%c0_162, %195, %c0_163, %c0_164] : memref<1x32x32x3xf32, #tpu.memory_space<vmem>>, vector<1x1x32x3xf32>
      %197 = vector.shape_cast %196 : vector<1x1x32x3xf32> to vector<32x3xf32>
      %198 = vector.extract_strided_slice %197 {offsets = [0, 0], sizes = [30, 3], strides = [1, 1]} : vector<32x3xf32> to vector<30x3xf32>
      %c2_165 = arith.constant 2 : index
      %c0_166 = arith.constant 0 : index
      %c0_167 = arith.constant 0 : index
      %c0_168 = arith.constant 0 : index
      %199 = vector.load %arg2[%c2_165, %c0_166, %c0_167, %c0_168] : memref<3x3x3x32xf32, #tpu.memory_space<vmem>>, vector<1x1x3x32xf32>
      %200 = vector.shape_cast %199 : vector<1x1x3x32xf32> to vector<3x32xf32>
      %cst_169 = arith.constant dense<0.000000e+00> : vector<30x32xf32>
      %201 = tpu.matmul %198, %200, %cst_169 {dimension_numbers = #tpu.dot_dimension_numbers<[1], [0], [0], [1], [0, 0, 1, 1], [], []>} : vector<30x3xf32>, vector<3x32xf32>, vector<30x32xf32> -> vector<30x32xf32>
      %202 = arith.addf %193, %201 : vector<30x32xf32>
      %203 = vector.extract_strided_slice %197 {offsets = [1, 0], sizes = [30, 3], strides = [1, 1]} : vector<32x3xf32> to vector<30x3xf32>
      %c2_170 = arith.constant 2 : index
      %c1_171 = arith.constant 1 : index
      %c0_172 = arith.constant 0 : index
      %c0_173 = arith.constant 0 : index
      %204 = vector.load %arg2[%c2_170, %c1_171, %c0_172, %c0_173] : memref<3x3x3x32xf32, #tpu.memory_space<vmem>>, vector<1x1x3x32xf32>
      %205 = vector.shape_cast %204 : vector<1x1x3x32xf32> to vector<3x32xf32>
      %cst_174 = arith.constant dense<0.000000e+00> : vector<30x32xf32>
      %206 = tpu.matmul %203, %205, %cst_174 {dimension_numbers = #tpu.dot_dimension_numbers<[1], [0], [0], [1], [0, 0, 1, 1], [], []>} : vector<30x3xf32>, vector<3x32xf32>, vector<30x32xf32> -> vector<30x32xf32>
      %207 = arith.addf %202, %206 : vector<30x32xf32>
      %208 = vector.extract_strided_slice %197 {offsets = [2, 0], sizes = [30, 3], strides = [1, 1]} : vector<32x3xf32> to vector<30x3xf32>
      %c2_175 = arith.constant 2 : index
      %c2_176 = arith.constant 2 : index
      %c0_177 = arith.constant 0 : index
      %c0_178 = arith.constant 0 : index
      %209 = vector.load %arg2[%c2_175, %c2_176, %c0_177, %c0_178] : memref<3x3x3x32xf32, #tpu.memory_space<vmem>>, vector<1x1x3x32xf32>
      %210 = vector.shape_cast %209 : vector<1x1x3x32xf32> to vector<3x32xf32>
      %cst_179 = arith.constant dense<0.000000e+00> : vector<30x32xf32>
      %211 = tpu.matmul %208, %210, %cst_179 {dimension_numbers = #tpu.dot_dimension_numbers<[1], [0], [0], [1], [0, 0, 1, 1], [], []>} : vector<30x3xf32>, vector<3x32xf32>, vector<30x32xf32> -> vector<30x32xf32>
      %212 = arith.addf %207, %211 : vector<30x32xf32>
      %213 = vector.broadcast %0 : vector<1x32xf32> to vector<30x32xf32>
      %214 = arith.addf %212, %213 : vector<30x32xf32>
      %215 = arith.index_cast %156 : i32 to index
      %c0_180 = arith.constant 0 : index
      %c0_181 = arith.constant 0 : index
      %216 = vector.load %arg17[%215, %c0_180, %c0_181] : memref<30x30x32xf32, #tpu.memory_space<vmem>>, vector<1x30x32xf32>
      %217 = vector.shape_cast %216 : vector<1x30x32xf32> to vector<30x32xf32>
      %218 = vector.shape_cast %214 : vector<30x32xf32> to vector<1x30x32xf32>
      tpu.vector_store %arg17[%215, %c0_180, %c0_181], %218 {strides = array<i32>} : memref<30x30x32xf32, #tpu.memory_space<vmem>>, vector<1x30x32xf32>,
    }
    %c30_i32_1 = arith.constant 30 : i32
    %c0_2 = arith.constant 0 : index
    %c0_3 = arith.constant 0 : index
    %2 = vector.load %arg5[%c0_2, %c0_3] : memref<1x64xf32, #tpu.memory_space<vmem>>, vector<1x64xf32>
    %c0_i32_4 = arith.constant 0 : i32
    %c14_i32 = arith.constant 14 : i32
    %3 = arith.addi %c0_i32_4, %c14_i32 : i32
    %c1_i32_5 = arith.constant 1 : i32
    scf.for %arg21 = %c0_i32_4 to %3 step %c1_i32_5  : i32 {
      %c1_i32_122 = arith.constant 1 : i32
      %155 = arith.muli %arg21, %c1_i32_122 : i32
      %c0_i32_123 = arith.constant 0 : i32
      %156 = arith.addi %c0_i32_123, %155 : i32
      %c2_i32 = arith.constant 2 : i32
      %157 = arith.muli %156, %c2_i32 : i32
      %c0_i32_124 = arith.constant 0 : i32
      %158 = arith.addi %157, %c0_i32_124 : i32
      %159 = arith.index_cast %158 : i32 to index
      %c0_125 = arith.constant 0 : index
      %c0_126 = arith.constant 0 : index
      %160 = vector.load %arg17[%159, %c0_125, %c0_126] : memref<30x30x32xf32, #tpu.memory_space<vmem>>, vector<1x30x32xf32>
      %161 = vector.shape_cast %160 : vector<1x30x32xf32> to vector<30x32xf32>
      %162 = vector.extract_strided_slice %161 {offsets = [0, 0], sizes = [28, 32], strides = [1, 1]} : vector<30x32xf32> to vector<28x32xf32>
      %c0_127 = arith.constant 0 : index
      %c0_128 = arith.constant 0 : index
      %c0_129 = arith.constant 0 : index
      %c0_130 = arith.constant 0 : index
      %163 = vector.load %arg4[%c0_127, %c0_128, %c0_129, %c0_130] : memref<3x3x32x64xf32, #tpu.memory_space<vmem>>, vector<1x1x32x64xf32>
      %164 = vector.shape_cast %163 : vector<1x1x32x64xf32> to vector<32x64xf32>
      %cst_131 = arith.constant dense<0.000000e+00> : vector<28x64xf32>
      %165 = tpu.matmul %162, %164, %cst_131 {dimension_numbers = #tpu.dot_dimension_numbers<[1], [0], [0], [1], [0, 0, 1, 1], [], []>} : vector<28x32xf32>, vector<32x64xf32>, vector<28x64xf32> -> vector<28x64xf32>
      %166 = vector.extract_strided_slice %161 {offsets = [1, 0], sizes = [28, 32], strides = [1, 1]} : vector<30x32xf32> to vector<28x32xf32>
      %c0_132 = arith.constant 0 : index
      %c1_133 = arith.constant 1 : index
      %c0_134 = arith.constant 0 : index
      %c0_135 = arith.constant 0 : index
      %167 = vector.load %arg4[%c0_132, %c1_133, %c0_134, %c0_135] : memref<3x3x32x64xf32, #tpu.memory_space<vmem>>, vector<1x1x32x64xf32>
      %168 = vector.shape_cast %167 : vector<1x1x32x64xf32> to vector<32x64xf32>
      %cst_136 = arith.constant dense<0.000000e+00> : vector<28x64xf32>
      %169 = tpu.matmul %166, %168, %cst_136 {dimension_numbers = #tpu.dot_dimension_numbers<[1], [0], [0], [1], [0, 0, 1, 1], [], []>} : vector<28x32xf32>, vector<32x64xf32>, vector<28x64xf32> -> vector<28x64xf32>
      %170 = arith.addf %165, %169 : vector<28x64xf32>
      %171 = vector.extract_strided_slice %161 {offsets = [2, 0], sizes = [28, 32], strides = [1, 1]} : vector<30x32xf32> to vector<28x32xf32>
      %c0_137 = arith.constant 0 : index
      %c2_138 = arith.constant 2 : index
      %c0_139 = arith.constant 0 : index
      %c0_140 = arith.constant 0 : index
      %172 = vector.load %arg4[%c0_137, %c2_138, %c0_139, %c0_140] : memref<3x3x32x64xf32, #tpu.memory_space<vmem>>, vector<1x1x32x64xf32>
      %173 = vector.shape_cast %172 : vector<1x1x32x64xf32> to vector<32x64xf32>
      %cst_141 = arith.constant dense<0.000000e+00> : vector<28x64xf32>
      %174 = tpu.matmul %171, %173, %cst_141 {dimension_numbers = #tpu.dot_dimension_numbers<[1], [0], [0], [1], [0, 0, 1, 1], [], []>} : vector<28x32xf32>, vector<32x64xf32>, vector<28x64xf32> -> vector<28x64xf32>
      %175 = arith.addf %170, %174 : vector<28x64xf32>
      %c1_i32_142 = arith.constant 1 : i32
      %176 = arith.addi %157, %c1_i32_142 : i32
      %177 = arith.index_cast %176 : i32 to index
      %c0_143 = arith.constant 0 : index
      %c0_144 = arith.constant 0 : index
      %178 = vector.load %arg17[%177, %c0_143, %c0_144] : memref<30x30x32xf32, #tpu.memory_space<vmem>>, vector<1x30x32xf32>
      %179 = vector.shape_cast %178 : vector<1x30x32xf32> to vector<30x32xf32>
      %180 = vector.extract_strided_slice %179 {offsets = [0, 0], sizes = [28, 32], strides = [1, 1]} : vector<30x32xf32> to vector<28x32xf32>
      %c1_145 = arith.constant 1 : index
      %c0_146 = arith.constant 0 : index
      %c0_147 = arith.constant 0 : index
      %c0_148 = arith.constant 0 : index
      %181 = vector.load %arg4[%c1_145, %c0_146, %c0_147, %c0_148] : memref<3x3x32x64xf32, #tpu.memory_space<vmem>>, vector<1x1x32x64xf32>
      %182 = vector.shape_cast %181 : vector<1x1x32x64xf32> to vector<32x64xf32>
      %cst_149 = arith.constant dense<0.000000e+00> : vector<28x64xf32>
      %183 = tpu.matmul %180, %182, %cst_149 {dimension_numbers = #tpu.dot_dimension_numbers<[1], [0], [0], [1], [0, 0, 1, 1], [], []>} : vector<28x32xf32>, vector<32x64xf32>, vector<28x64xf32> -> vector<28x64xf32>
      %184 = arith.addf %175, %183 : vector<28x64xf32>
      %185 = vector.extract_strided_slice %179 {offsets = [1, 0], sizes = [28, 32], strides = [1, 1]} : vector<30x32xf32> to vector<28x32xf32>
      %c1_150 = arith.constant 1 : index
      %c1_151 = arith.constant 1 : index
      %c0_152 = arith.constant 0 : index
      %c0_153 = arith.constant 0 : index
      %186 = vector.load %arg4[%c1_150, %c1_151, %c0_152, %c0_153] : memref<3x3x32x64xf32, #tpu.memory_space<vmem>>, vector<1x1x32x64xf32>
      %187 = vector.shape_cast %186 : vector<1x1x32x64xf32> to vector<32x64xf32>
      %cst_154 = arith.constant dense<0.000000e+00> : vector<28x64xf32>
      %188 = tpu.matmul %185, %187, %cst_154 {dimension_numbers = #tpu.dot_dimension_numbers<[1], [0], [0], [1], [0, 0, 1, 1], [], []>} : vector<28x32xf32>, vector<32x64xf32>, vector<28x64xf32> -> vector<28x64xf32>
      %189 = arith.addf %184, %188 : vector<28x64xf32>
      %190 = vector.extract_strided_slice %179 {offsets = [2, 0], sizes = [28, 32], strides = [1, 1]} : vector<30x32xf32> to vector<28x32xf32>
      %c1_155 = arith.constant 1 : index
      %c2_156 = arith.constant 2 : index
      %c0_157 = arith.constant 0 : index
      %c0_158 = arith.constant 0 : index
      %191 = vector.load %arg4[%c1_155, %c2_156, %c0_157, %c0_158] : memref<3x3x32x64xf32, #tpu.memory_space<vmem>>, vector<1x1x32x64xf32>
      %192 = vector.shape_cast %191 : vector<1x1x32x64xf32> to vector<32x64xf32>
      %cst_159 = arith.constant dense<0.000000e+00> : vector<28x64xf32>
      %193 = tpu.matmul %190, %192, %cst_159 {dimension_numbers = #tpu.dot_dimension_numbers<[1], [0], [0], [1], [0, 0, 1, 1], [], []>} : vector<28x32xf32>, vector<32x64xf32>, vector<28x64xf32> -> vector<28x64xf32>
      %194 = arith.addf %189, %193 : vector<28x64xf32>
      %c2_i32_160 = arith.constant 2 : i32
      %195 = arith.addi %157, %c2_i32_160 : i32
      %196 = arith.index_cast %195 : i32 to index
      %c0_161 = arith.constant 0 : index
      %c0_162 = arith.constant 0 : index
      %197 = vector.load %arg17[%196, %c0_161, %c0_162] : memref<30x30x32xf32, #tpu.memory_space<vmem>>, vector<1x30x32xf32>
      %198 = vector.shape_cast %197 : vector<1x30x32xf32> to vector<30x32xf32>
      %199 = vector.extract_strided_slice %198 {offsets = [0, 0], sizes = [28, 32], strides = [1, 1]} : vector<30x32xf32> to vector<28x32xf32>
      %c2_163 = arith.constant 2 : index
      %c0_164 = arith.constant 0 : index
      %c0_165 = arith.constant 0 : index
      %c0_166 = arith.constant 0 : index
      %200 = vector.load %arg4[%c2_163, %c0_164, %c0_165, %c0_166] : memref<3x3x32x64xf32, #tpu.memory_space<vmem>>, vector<1x1x32x64xf32>
      %201 = vector.shape_cast %200 : vector<1x1x32x64xf32> to vector<32x64xf32>
      %cst_167 = arith.constant dense<0.000000e+00> : vector<28x64xf32>
      %202 = tpu.matmul %199, %201, %cst_167 {dimension_numbers = #tpu.dot_dimension_numbers<[1], [0], [0], [1], [0, 0, 1, 1], [], []>} : vector<28x32xf32>, vector<32x64xf32>, vector<28x64xf32> -> vector<28x64xf32>
      %203 = arith.addf %194, %202 : vector<28x64xf32>
      %204 = vector.extract_strided_slice %198 {offsets = [1, 0], sizes = [28, 32], strides = [1, 1]} : vector<30x32xf32> to vector<28x32xf32>
      %c2_168 = arith.constant 2 : index
      %c1_169 = arith.constant 1 : index
      %c0_170 = arith.constant 0 : index
      %c0_171 = arith.constant 0 : index
      %205 = vector.load %arg4[%c2_168, %c1_169, %c0_170, %c0_171] : memref<3x3x32x64xf32, #tpu.memory_space<vmem>>, vector<1x1x32x64xf32>
      %206 = vector.shape_cast %205 : vector<1x1x32x64xf32> to vector<32x64xf32>
      %cst_172 = arith.constant dense<0.000000e+00> : vector<28x64xf32>
      %207 = tpu.matmul %204, %206, %cst_172 {dimension_numbers = #tpu.dot_dimension_numbers<[1], [0], [0], [1], [0, 0, 1, 1], [], []>} : vector<28x32xf32>, vector<32x64xf32>, vector<28x64xf32> -> vector<28x64xf32>
      %208 = arith.addf %203, %207 : vector<28x64xf32>
      %209 = vector.extract_strided_slice %198 {offsets = [2, 0], sizes = [28, 32], strides = [1, 1]} : vector<30x32xf32> to vector<28x32xf32>
      %c2_173 = arith.constant 2 : index
      %c2_174 = arith.constant 2 : index
      %c0_175 = arith.constant 0 : index
      %c0_176 = arith.constant 0 : index
      %210 = vector.load %arg4[%c2_173, %c2_174, %c0_175, %c0_176] : memref<3x3x32x64xf32, #tpu.memory_space<vmem>>, vector<1x1x32x64xf32>
      %211 = vector.shape_cast %210 : vector<1x1x32x64xf32> to vector<32x64xf32>
      %cst_177 = arith.constant dense<0.000000e+00> : vector<28x64xf32>
      %212 = tpu.matmul %209, %211, %cst_177 {dimension_numbers = #tpu.dot_dimension_numbers<[1], [0], [0], [1], [0, 0, 1, 1], [], []>} : vector<28x32xf32>, vector<32x64xf32>, vector<28x64xf32> -> vector<28x64xf32>
      %213 = arith.addf %208, %212 : vector<28x64xf32>
      %214 = vector.broadcast %2 : vector<1x64xf32> to vector<28x64xf32>
      %215 = arith.addf %213, %214 : vector<28x64xf32>
      %cst_178 = arith.constant 0.000000e+00 : f32
      %216 = vector.broadcast %cst_178 : f32 to vector<28x64xf32>
      %217 = arith.maximumf %215, %216 : vector<28x64xf32>
      %c1_i32_179 = arith.constant 1 : i32
      %218 = arith.addi %157, %c1_i32_179 : i32
      %c0_i32_180 = arith.constant 0 : i32
      %219 = arith.addi %218, %c0_i32_180 : i32
      %220 = arith.index_cast %219 : i32 to index
      %c0_181 = arith.constant 0 : index
      %c0_182 = arith.constant 0 : index
      %221 = vector.load %arg17[%220, %c0_181, %c0_182] : memref<30x30x32xf32, #tpu.memory_space<vmem>>, vector<1x30x32xf32>
      %222 = vector.shape_cast %221 : vector<1x30x32xf32> to vector<30x32xf32>
      %223 = vector.extract_strided_slice %222 {offsets = [0, 0], sizes = [28, 32], strides = [1, 1]} : vector<30x32xf32> to vector<28x32xf32>
      %c0_183 = arith.constant 0 : index
      %c0_184 = arith.constant 0 : index
      %c0_185 = arith.constant 0 : index
      %c0_186 = arith.constant 0 : index
      %224 = vector.load %arg4[%c0_183, %c0_184, %c0_185, %c0_186] : memref<3x3x32x64xf32, #tpu.memory_space<vmem>>, vector<1x1x32x64xf32>
      %225 = vector.shape_cast %224 : vector<1x1x32x64xf32> to vector<32x64xf32>
      %cst_187 = arith.constant dense<0.000000e+00> : vector<28x64xf32>
      %226 = tpu.matmul %223, %225, %cst_187 {dimension_numbers = #tpu.dot_dimension_numbers<[1], [0], [0], [1], [0, 0, 1, 1], [], []>} : vector<28x32xf32>, vector<32x64xf32>, vector<28x64xf32> -> vector<28x64xf32>
      %227 = vector.extract_strided_slice %222 {offsets = [1, 0], sizes = [28, 32], strides = [1, 1]} : vector<30x32xf32> to vector<28x32xf32>
      %c0_188 = arith.constant 0 : index
      %c1_189 = arith.constant 1 : index
      %c0_190 = arith.constant 0 : index
      %c0_191 = arith.constant 0 : index
      %228 = vector.load %arg4[%c0_188, %c1_189, %c0_190, %c0_191] : memref<3x3x32x64xf32, #tpu.memory_space<vmem>>, vector<1x1x32x64xf32>
      %229 = vector.shape_cast %228 : vector<1x1x32x64xf32> to vector<32x64xf32>
      %cst_192 = arith.constant dense<0.000000e+00> : vector<28x64xf32>
      %230 = tpu.matmul %227, %229, %cst_192 {dimension_numbers = #tpu.dot_dimension_numbers<[1], [0], [0], [1], [0, 0, 1, 1], [], []>} : vector<28x32xf32>, vector<32x64xf32>, vector<28x64xf32> -> vector<28x64xf32>
      %231 = arith.addf %226, %230 : vector<28x64xf32>
      %232 = vector.extract_strided_slice %222 {offsets = [2, 0], sizes = [28, 32], strides = [1, 1]} : vector<30x32xf32> to vector<28x32xf32>
      %c0_193 = arith.constant 0 : index
      %c2_194 = arith.constant 2 : index
      %c0_195 = arith.constant 0 : index
      %c0_196 = arith.constant 0 : index
      %233 = vector.load %arg4[%c0_193, %c2_194, %c0_195, %c0_196] : memref<3x3x32x64xf32, #tpu.memory_space<vmem>>, vector<1x1x32x64xf32>
      %234 = vector.shape_cast %233 : vector<1x1x32x64xf32> to vector<32x64xf32>
      %cst_197 = arith.constant dense<0.000000e+00> : vector<28x64xf32>
      %235 = tpu.matmul %232, %234, %cst_197 {dimension_numbers = #tpu.dot_dimension_numbers<[1], [0], [0], [1], [0, 0, 1, 1], [], []>} : vector<28x32xf32>, vector<32x64xf32>, vector<28x64xf32> -> vector<28x64xf32>
      %236 = arith.addf %231, %235 : vector<28x64xf32>
      %c1_i32_198 = arith.constant 1 : i32
      %237 = arith.addi %218, %c1_i32_198 : i32
      %238 = arith.index_cast %237 : i32 to index
      %c0_199 = arith.constant 0 : index
      %c0_200 = arith.constant 0 : index
      %239 = vector.load %arg17[%238, %c0_199, %c0_200] : memref<30x30x32xf32, #tpu.memory_space<vmem>>, vector<1x30x32xf32>
      %240 = vector.shape_cast %239 : vector<1x30x32xf32> to vector<30x32xf32>
      %241 = vector.extract_strided_slice %240 {offsets = [0, 0], sizes = [28, 32], strides = [1, 1]} : vector<30x32xf32> to vector<28x32xf32>
      %c1_201 = arith.constant 1 : index
      %c0_202 = arith.constant 0 : index
      %c0_203 = arith.constant 0 : index
      %c0_204 = arith.constant 0 : index
      %242 = vector.load %arg4[%c1_201, %c0_202, %c0_203, %c0_204] : memref<3x3x32x64xf32, #tpu.memory_space<vmem>>, vector<1x1x32x64xf32>
      %243 = vector.shape_cast %242 : vector<1x1x32x64xf32> to vector<32x64xf32>
      %cst_205 = arith.constant dense<0.000000e+00> : vector<28x64xf32>
      %244 = tpu.matmul %241, %243, %cst_205 {dimension_numbers = #tpu.dot_dimension_numbers<[1], [0], [0], [1], [0, 0, 1, 1], [], []>} : vector<28x32xf32>, vector<32x64xf32>, vector<28x64xf32> -> vector<28x64xf32>
      %245 = arith.addf %236, %244 : vector<28x64xf32>
      %246 = vector.extract_strided_slice %240 {offsets = [1, 0], sizes = [28, 32], strides = [1, 1]} : vector<30x32xf32> to vector<28x32xf32>
      %c1_206 = arith.constant 1 : index
      %c1_207 = arith.constant 1 : index
      %c0_208 = arith.constant 0 : index
      %c0_209 = arith.constant 0 : index
      %247 = vector.load %arg4[%c1_206, %c1_207, %c0_208, %c0_209] : memref<3x3x32x64xf32, #tpu.memory_space<vmem>>, vector<1x1x32x64xf32>
      %248 = vector.shape_cast %247 : vector<1x1x32x64xf32> to vector<32x64xf32>
      %cst_210 = arith.constant dense<0.000000e+00> : vector<28x64xf32>
      %249 = tpu.matmul %246, %248, %cst_210 {dimension_numbers = #tpu.dot_dimension_numbers<[1], [0], [0], [1], [0, 0, 1, 1], [], []>} : vector<28x32xf32>, vector<32x64xf32>, vector<28x64xf32> -> vector<28x64xf32>
      %250 = arith.addf %245, %249 : vector<28x64xf32>
      %251 = vector.extract_strided_slice %240 {offsets = [2, 0], sizes = [28, 32], strides = [1, 1]} : vector<30x32xf32> to vector<28x32xf32>
      %c1_211 = arith.constant 1 : index
      %c2_212 = arith.constant 2 : index
      %c0_213 = arith.constant 0 : index
      %c0_214 = arith.constant 0 : index
      %252 = vector.load %arg4[%c1_211, %c2_212, %c0_213, %c0_214] : memref<3x3x32x64xf32, #tpu.memory_space<vmem>>, vector<1x1x32x64xf32>
      %253 = vector.shape_cast %252 : vector<1x1x32x64xf32> to vector<32x64xf32>
      %cst_215 = arith.constant dense<0.000000e+00> : vector<28x64xf32>
      %254 = tpu.matmul %251, %253, %cst_215 {dimension_numbers = #tpu.dot_dimension_numbers<[1], [0], [0], [1], [0, 0, 1, 1], [], []>} : vector<28x32xf32>, vector<32x64xf32>, vector<28x64xf32> -> vector<28x64xf32>
      %255 = arith.addf %250, %254 : vector<28x64xf32>
      %c2_i32_216 = arith.constant 2 : i32
      %256 = arith.addi %218, %c2_i32_216 : i32
      %257 = arith.index_cast %256 : i32 to index
      %c0_217 = arith.constant 0 : index
      %c0_218 = arith.constant 0 : index
      %258 = vector.load %arg17[%257, %c0_217, %c0_218] : memref<30x30x32xf32, #tpu.memory_space<vmem>>, vector<1x30x32xf32>
      %259 = vector.shape_cast %258 : vector<1x30x32xf32> to vector<30x32xf32>
      %260 = vector.extract_strided_slice %259 {offsets = [0, 0], sizes = [28, 32], strides = [1, 1]} : vector<30x32xf32> to vector<28x32xf32>
      %c2_219 = arith.constant 2 : index
      %c0_220 = arith.constant 0 : index
      %c0_221 = arith.constant 0 : index
      %c0_222 = arith.constant 0 : index
      %261 = vector.load %arg4[%c2_219, %c0_220, %c0_221, %c0_222] : memref<3x3x32x64xf32, #tpu.memory_space<vmem>>, vector<1x1x32x64xf32>
      %262 = vector.shape_cast %261 : vector<1x1x32x64xf32> to vector<32x64xf32>
      %cst_223 = arith.constant dense<0.000000e+00> : vector<28x64xf32>
      %263 = tpu.matmul %260, %262, %cst_223 {dimension_numbers = #tpu.dot_dimension_numbers<[1], [0], [0], [1], [0, 0, 1, 1], [], []>} : vector<28x32xf32>, vector<32x64xf32>, vector<28x64xf32> -> vector<28x64xf32>
      %264 = arith.addf %255, %263 : vector<28x64xf32>
      %265 = vector.extract_strided_slice %259 {offsets = [1, 0], sizes = [28, 32], strides = [1, 1]} : vector<30x32xf32> to vector<28x32xf32>
      %c2_224 = arith.constant 2 : index
      %c1_225 = arith.constant 1 : index
      %c0_226 = arith.constant 0 : index
      %c0_227 = arith.constant 0 : index
      %266 = vector.load %arg4[%c2_224, %c1_225, %c0_226, %c0_227] : memref<3x3x32x64xf32, #tpu.memory_space<vmem>>, vector<1x1x32x64xf32>
      %267 = vector.shape_cast %266 : vector<1x1x32x64xf32> to vector<32x64xf32>
      %cst_228 = arith.constant dense<0.000000e+00> : vector<28x64xf32>
      %268 = tpu.matmul %265, %267, %cst_228 {dimension_numbers = #tpu.dot_dimension_numbers<[1], [0], [0], [1], [0, 0, 1, 1], [], []>} : vector<28x32xf32>, vector<32x64xf32>, vector<28x64xf32> -> vector<28x64xf32>
      %269 = arith.addf %264, %268 : vector<28x64xf32>
      %270 = vector.extract_strided_slice %259 {offsets = [2, 0], sizes = [28, 32], strides = [1, 1]} : vector<30x32xf32> to vector<28x32xf32>
      %c2_229 = arith.constant 2 : index
      %c2_230 = arith.constant 2 : index
      %c0_231 = arith.constant 0 : index
      %c0_232 = arith.constant 0 : index
      %271 = vector.load %arg4[%c2_229, %c2_230, %c0_231, %c0_232] : memref<3x3x32x64xf32, #tpu.memory_space<vmem>>, vector<1x1x32x64xf32>
      %272 = vector.shape_cast %271 : vector<1x1x32x64xf32> to vector<32x64xf32>
      %cst_233 = arith.constant dense<0.000000e+00> : vector<28x64xf32>
      %273 = tpu.matmul %270, %272, %cst_233 {dimension_numbers = #tpu.dot_dimension_numbers<[1], [0], [0], [1], [0, 0, 1, 1], [], []>} : vector<28x32xf32>, vector<32x64xf32>, vector<28x64xf32> -> vector<28x64xf32>
      %274 = arith.addf %269, %273 : vector<28x64xf32>
      %275 = vector.broadcast %2 : vector<1x64xf32> to vector<28x64xf32>
      %276 = arith.addf %274, %275 : vector<28x64xf32>
      %cst_234 = arith.constant 0.000000e+00 : f32
      %277 = vector.broadcast %cst_234 : f32 to vector<28x64xf32>
      %278 = arith.maximumf %276, %277 : vector<28x64xf32>
      %279 = arith.maximumf %217, %278 : vector<28x64xf32>
      %280 = vector.shape_cast %279 : vector<28x64xf32> to vector<14x2x64xf32>
      %cst_235 = arith.constant dense<0xFF800000> : vector<14x64xf32>
      %281 = vector.multi_reduction <maximumf>, %280, %cst_235 [1] : vector<14x2x64xf32> to vector<14x64xf32>
      %282 = arith.index_cast %156 : i32 to index
      %c0_236 = arith.constant 0 : index
      %c0_237 = arith.constant 0 : index
      %283 = vector.load %arg18[%282, %c0_236, %c0_237] : memref<14x14x64xf32, #tpu.memory_space<vmem>>, vector<1x14x64xf32>
      %284 = vector.shape_cast %283 : vector<1x14x64xf32> to vector<14x64xf32>
      %285 = vector.shape_cast %281 : vector<14x64xf32> to vector<1x14x64xf32>
      tpu.vector_store %arg18[%282, %c0_236, %c0_237], %285 {strides = array<i32>} : memref<14x14x64xf32, #tpu.memory_space<vmem>>, vector<1x14x64xf32>,
    }
    %c14_i32_6 = arith.constant 14 : i32
    %c0_7 = arith.constant 0 : index
    %c0_8 = arith.constant 0 : index
    %4 = vector.load %arg7[%c0_7, %c0_8] : memref<1x128xf32, #tpu.memory_space<vmem>>, vector<1x128xf32>
    %c0_i32_9 = arith.constant 0 : i32
    %c12_i32 = arith.constant 12 : i32
    %5 = arith.addi %c0_i32_9, %c12_i32 : i32
    %c1_i32_10 = arith.constant 1 : i32
    scf.for %arg21 = %c0_i32_9 to %5 step %c1_i32_10  : i32 {
      %c1_i32_122 = arith.constant 1 : i32
      %155 = arith.muli %arg21, %c1_i32_122 : i32
      %c0_i32_123 = arith.constant 0 : i32
      %156 = arith.addi %c0_i32_123, %155 : i32
      %c0_i32_124 = arith.constant 0 : i32
      %157 = arith.addi %156, %c0_i32_124 : i32
      %158 = arith.index_cast %157 : i32 to index
      %c0_125 = arith.constant 0 : index
      %c0_126 = arith.constant 0 : index
      %159 = vector.load %arg18[%158, %c0_125, %c0_126] : memref<14x14x64xf32, #tpu.memory_space<vmem>>, vector<1x14x64xf32>
      %160 = vector.shape_cast %159 : vector<1x14x64xf32> to vector<14x64xf32>
      %161 = vector.extract_strided_slice %160 {offsets = [0, 0], sizes = [12, 64], strides = [1, 1]} : vector<14x64xf32> to vector<12x64xf32>
      %c0_127 = arith.constant 0 : index
      %c0_128 = arith.constant 0 : index
      %c0_129 = arith.constant 0 : index
      %c0_130 = arith.constant 0 : index
      %162 = vector.load %arg6[%c0_127, %c0_128, %c0_129, %c0_130] : memref<3x3x64x128xf32, #tpu.memory_space<vmem>>, vector<1x1x64x128xf32>
      %163 = vector.shape_cast %162 : vector<1x1x64x128xf32> to vector<64x128xf32>
      %cst_131 = arith.constant dense<0.000000e+00> : vector<12x128xf32>
      %164 = tpu.matmul %161, %163, %cst_131 {dimension_numbers = #tpu.dot_dimension_numbers<[1], [0], [0], [1], [0, 0, 1, 1], [], []>} : vector<12x64xf32>, vector<64x128xf32>, vector<12x128xf32> -> vector<12x128xf32>
      %165 = vector.extract_strided_slice %160 {offsets = [1, 0], sizes = [12, 64], strides = [1, 1]} : vector<14x64xf32> to vector<12x64xf32>
      %c0_132 = arith.constant 0 : index
      %c1_133 = arith.constant 1 : index
      %c0_134 = arith.constant 0 : index
      %c0_135 = arith.constant 0 : index
      %166 = vector.load %arg6[%c0_132, %c1_133, %c0_134, %c0_135] : memref<3x3x64x128xf32, #tpu.memory_space<vmem>>, vector<1x1x64x128xf32>
      %167 = vector.shape_cast %166 : vector<1x1x64x128xf32> to vector<64x128xf32>
      %cst_136 = arith.constant dense<0.000000e+00> : vector<12x128xf32>
      %168 = tpu.matmul %165, %167, %cst_136 {dimension_numbers = #tpu.dot_dimension_numbers<[1], [0], [0], [1], [0, 0, 1, 1], [], []>} : vector<12x64xf32>, vector<64x128xf32>, vector<12x128xf32> -> vector<12x128xf32>
      %169 = arith.addf %164, %168 : vector<12x128xf32>
      %170 = vector.extract_strided_slice %160 {offsets = [2, 0], sizes = [12, 64], strides = [1, 1]} : vector<14x64xf32> to vector<12x64xf32>
      %c0_137 = arith.constant 0 : index
      %c2_138 = arith.constant 2 : index
      %c0_139 = arith.constant 0 : index
      %c0_140 = arith.constant 0 : index
      %171 = vector.load %arg6[%c0_137, %c2_138, %c0_139, %c0_140] : memref<3x3x64x128xf32, #tpu.memory_space<vmem>>, vector<1x1x64x128xf32>
      %172 = vector.shape_cast %171 : vector<1x1x64x128xf32> to vector<64x128xf32>
      %cst_141 = arith.constant dense<0.000000e+00> : vector<12x128xf32>
      %173 = tpu.matmul %170, %172, %cst_141 {dimension_numbers = #tpu.dot_dimension_numbers<[1], [0], [0], [1], [0, 0, 1, 1], [], []>} : vector<12x64xf32>, vector<64x128xf32>, vector<12x128xf32> -> vector<12x128xf32>
      %174 = arith.addf %169, %173 : vector<12x128xf32>
      %c1_i32_142 = arith.constant 1 : i32
      %175 = arith.addi %156, %c1_i32_142 : i32
      %176 = arith.index_cast %175 : i32 to index
      %c0_143 = arith.constant 0 : index
      %c0_144 = arith.constant 0 : index
      %177 = vector.load %arg18[%176, %c0_143, %c0_144] : memref<14x14x64xf32, #tpu.memory_space<vmem>>, vector<1x14x64xf32>
      %178 = vector.shape_cast %177 : vector<1x14x64xf32> to vector<14x64xf32>
      %179 = vector.extract_strided_slice %178 {offsets = [0, 0], sizes = [12, 64], strides = [1, 1]} : vector<14x64xf32> to vector<12x64xf32>
      %c1_145 = arith.constant 1 : index
      %c0_146 = arith.constant 0 : index
      %c0_147 = arith.constant 0 : index
      %c0_148 = arith.constant 0 : index
      %180 = vector.load %arg6[%c1_145, %c0_146, %c0_147, %c0_148] : memref<3x3x64x128xf32, #tpu.memory_space<vmem>>, vector<1x1x64x128xf32>
      %181 = vector.shape_cast %180 : vector<1x1x64x128xf32> to vector<64x128xf32>
      %cst_149 = arith.constant dense<0.000000e+00> : vector<12x128xf32>
      %182 = tpu.matmul %179, %181, %cst_149 {dimension_numbers = #tpu.dot_dimension_numbers<[1], [0], [0], [1], [0, 0, 1, 1], [], []>} : vector<12x64xf32>, vector<64x128xf32>, vector<12x128xf32> -> vector<12x128xf32>
      %183 = arith.addf %174, %182 : vector<12x128xf32>
      %184 = vector.extract_strided_slice %178 {offsets = [1, 0], sizes = [12, 64], strides = [1, 1]} : vector<14x64xf32> to vector<12x64xf32>
      %c1_150 = arith.constant 1 : index
      %c1_151 = arith.constant 1 : index
      %c0_152 = arith.constant 0 : index
      %c0_153 = arith.constant 0 : index
      %185 = vector.load %arg6[%c1_150, %c1_151, %c0_152, %c0_153] : memref<3x3x64x128xf32, #tpu.memory_space<vmem>>, vector<1x1x64x128xf32>
      %186 = vector.shape_cast %185 : vector<1x1x64x128xf32> to vector<64x128xf32>
      %cst_154 = arith.constant dense<0.000000e+00> : vector<12x128xf32>
      %187 = tpu.matmul %184, %186, %cst_154 {dimension_numbers = #tpu.dot_dimension_numbers<[1], [0], [0], [1], [0, 0, 1, 1], [], []>} : vector<12x64xf32>, vector<64x128xf32>, vector<12x128xf32> -> vector<12x128xf32>
      %188 = arith.addf %183, %187 : vector<12x128xf32>
      %189 = vector.extract_strided_slice %178 {offsets = [2, 0], sizes = [12, 64], strides = [1, 1]} : vector<14x64xf32> to vector<12x64xf32>
      %c1_155 = arith.constant 1 : index
      %c2_156 = arith.constant 2 : index
      %c0_157 = arith.constant 0 : index
      %c0_158 = arith.constant 0 : index
      %190 = vector.load %arg6[%c1_155, %c2_156, %c0_157, %c0_158] : memref<3x3x64x128xf32, #tpu.memory_space<vmem>>, vector<1x1x64x128xf32>
      %191 = vector.shape_cast %190 : vector<1x1x64x128xf32> to vector<64x128xf32>
      %cst_159 = arith.constant dense<0.000000e+00> : vector<12x128xf32>
      %192 = tpu.matmul %189, %191, %cst_159 {dimension_numbers = #tpu.dot_dimension_numbers<[1], [0], [0], [1], [0, 0, 1, 1], [], []>} : vector<12x64xf32>, vector<64x128xf32>, vector<12x128xf32> -> vector<12x128xf32>
      %193 = arith.addf %188, %192 : vector<12x128xf32>
      %c2_i32 = arith.constant 2 : i32
      %194 = arith.addi %156, %c2_i32 : i32
      %195 = arith.index_cast %194 : i32 to index
      %c0_160 = arith.constant 0 : index
      %c0_161 = arith.constant 0 : index
      %196 = vector.load %arg18[%195, %c0_160, %c0_161] : memref<14x14x64xf32, #tpu.memory_space<vmem>>, vector<1x14x64xf32>
      %197 = vector.shape_cast %196 : vector<1x14x64xf32> to vector<14x64xf32>
      %198 = vector.extract_strided_slice %197 {offsets = [0, 0], sizes = [12, 64], strides = [1, 1]} : vector<14x64xf32> to vector<12x64xf32>
      %c2_162 = arith.constant 2 : index
      %c0_163 = arith.constant 0 : index
      %c0_164 = arith.constant 0 : index
      %c0_165 = arith.constant 0 : index
      %199 = vector.load %arg6[%c2_162, %c0_163, %c0_164, %c0_165] : memref<3x3x64x128xf32, #tpu.memory_space<vmem>>, vector<1x1x64x128xf32>
      %200 = vector.shape_cast %199 : vector<1x1x64x128xf32> to vector<64x128xf32>
      %cst_166 = arith.constant dense<0.000000e+00> : vector<12x128xf32>
      %201 = tpu.matmul %198, %200, %cst_166 {dimension_numbers = #tpu.dot_dimension_numbers<[1], [0], [0], [1], [0, 0, 1, 1], [], []>} : vector<12x64xf32>, vector<64x128xf32>, vector<12x128xf32> -> vector<12x128xf32>
      %202 = arith.addf %193, %201 : vector<12x128xf32>
      %203 = vector.extract_strided_slice %197 {offsets = [1, 0], sizes = [12, 64], strides = [1, 1]} : vector<14x64xf32> to vector<12x64xf32>
      %c2_167 = arith.constant 2 : index
      %c1_168 = arith.constant 1 : index
      %c0_169 = arith.constant 0 : index
      %c0_170 = arith.constant 0 : index
      %204 = vector.load %arg6[%c2_167, %c1_168, %c0_169, %c0_170] : memref<3x3x64x128xf32, #tpu.memory_space<vmem>>, vector<1x1x64x128xf32>
      %205 = vector.shape_cast %204 : vector<1x1x64x128xf32> to vector<64x128xf32>
      %cst_171 = arith.constant dense<0.000000e+00> : vector<12x128xf32>
      %206 = tpu.matmul %203, %205, %cst_171 {dimension_numbers = #tpu.dot_dimension_numbers<[1], [0], [0], [1], [0, 0, 1, 1], [], []>} : vector<12x64xf32>, vector<64x128xf32>, vector<12x128xf32> -> vector<12x128xf32>
      %207 = arith.addf %202, %206 : vector<12x128xf32>
      %208 = vector.extract_strided_slice %197 {offsets = [2, 0], sizes = [12, 64], strides = [1, 1]} : vector<14x64xf32> to vector<12x64xf32>
      %c2_172 = arith.constant 2 : index
      %c2_173 = arith.constant 2 : index
      %c0_174 = arith.constant 0 : index
      %c0_175 = arith.constant 0 : index
      %209 = vector.load %arg6[%c2_172, %c2_173, %c0_174, %c0_175] : memref<3x3x64x128xf32, #tpu.memory_space<vmem>>, vector<1x1x64x128xf32>
      %210 = vector.shape_cast %209 : vector<1x1x64x128xf32> to vector<64x128xf32>
      %cst_176 = arith.constant dense<0.000000e+00> : vector<12x128xf32>
      %211 = tpu.matmul %208, %210, %cst_176 {dimension_numbers = #tpu.dot_dimension_numbers<[1], [0], [0], [1], [0, 0, 1, 1], [], []>} : vector<12x64xf32>, vector<64x128xf32>, vector<12x128xf32> -> vector<12x128xf32>
      %212 = arith.addf %207, %211 : vector<12x128xf32>
      %213 = vector.broadcast %4 : vector<1x128xf32> to vector<12x128xf32>
      %214 = arith.addf %212, %213 : vector<12x128xf32>
      %215 = arith.index_cast %156 : i32 to index
      %c0_177 = arith.constant 0 : index
      %c0_178 = arith.constant 0 : index
      %216 = vector.load %arg19[%215, %c0_177, %c0_178] : memref<12x12x128xf32, #tpu.memory_space<vmem>>, vector<1x12x128xf32>
      %217 = vector.shape_cast %216 : vector<1x12x128xf32> to vector<12x128xf32>
      %218 = vector.shape_cast %214 : vector<12x128xf32> to vector<1x12x128xf32>
      tpu.vector_store %arg19[%215, %c0_177, %c0_178], %218 {strides = array<i32>} : memref<12x12x128xf32, #tpu.memory_space<vmem>>, vector<1x12x128xf32>,
    }
    %c12_i32_11 = arith.constant 12 : i32
    %c0_12 = arith.constant 0 : index
    %c0_13 = arith.constant 0 : index
    %6 = vector.load %arg9[%c0_12, %c0_13] : memref<1x64xf32, #tpu.memory_space<vmem>>, vector<1x64xf32>
    %c0_i32_14 = arith.constant 0 : i32
    %c5_i32 = arith.constant 5 : i32
    %7 = arith.addi %c0_i32_14, %c5_i32 : i32
    %c1_i32_15 = arith.constant 1 : i32
    scf.for %arg21 = %c0_i32_14 to %7 step %c1_i32_15  : i32 {
      %c1_i32_122 = arith.constant 1 : i32
      %155 = arith.muli %arg21, %c1_i32_122 : i32
      %c0_i32_123 = arith.constant 0 : i32
      %156 = arith.addi %c0_i32_123, %155 : i32
      %c2_i32 = arith.constant 2 : i32
      %157 = arith.muli %156, %c2_i32 : i32
      %c0_i32_124 = arith.constant 0 : i32
      %158 = arith.addi %157, %c0_i32_124 : i32
      %159 = arith.index_cast %158 : i32 to index
      %c0_125 = arith.constant 0 : index
      %c0_126 = arith.constant 0 : index
      %160 = vector.load %arg19[%159, %c0_125, %c0_126] : memref<12x12x128xf32, #tpu.memory_space<vmem>>, vector<1x12x128xf32>
      %161 = vector.shape_cast %160 : vector<1x12x128xf32> to vector<12x128xf32>
      %162 = vector.extract_strided_slice %161 {offsets = [0, 0], sizes = [10, 128], strides = [1, 1]} : vector<12x128xf32> to vector<10x128xf32>
      %c0_127 = arith.constant 0 : index
      %c0_128 = arith.constant 0 : index
      %c0_129 = arith.constant 0 : index
      %c0_130 = arith.constant 0 : index
      %163 = vector.load %arg8[%c0_127, %c0_128, %c0_129, %c0_130] : memref<3x3x128x64xf32, #tpu.memory_space<vmem>>, vector<1x1x128x64xf32>
      %164 = vector.shape_cast %163 : vector<1x1x128x64xf32> to vector<128x64xf32>
      %cst_131 = arith.constant dense<0.000000e+00> : vector<10x64xf32>
      %165 = tpu.matmul %162, %164, %cst_131 {dimension_numbers = #tpu.dot_dimension_numbers<[1], [0], [0], [1], [0, 0, 1, 1], [], []>} : vector<10x128xf32>, vector<128x64xf32>, vector<10x64xf32> -> vector<10x64xf32>
      %166 = vector.extract_strided_slice %161 {offsets = [1, 0], sizes = [10, 128], strides = [1, 1]} : vector<12x128xf32> to vector<10x128xf32>
      %c0_132 = arith.constant 0 : index
      %c1_133 = arith.constant 1 : index
      %c0_134 = arith.constant 0 : index
      %c0_135 = arith.constant 0 : index
      %167 = vector.load %arg8[%c0_132, %c1_133, %c0_134, %c0_135] : memref<3x3x128x64xf32, #tpu.memory_space<vmem>>, vector<1x1x128x64xf32>
      %168 = vector.shape_cast %167 : vector<1x1x128x64xf32> to vector<128x64xf32>
      %cst_136 = arith.constant dense<0.000000e+00> : vector<10x64xf32>
      %169 = tpu.matmul %166, %168, %cst_136 {dimension_numbers = #tpu.dot_dimension_numbers<[1], [0], [0], [1], [0, 0, 1, 1], [], []>} : vector<10x128xf32>, vector<128x64xf32>, vector<10x64xf32> -> vector<10x64xf32>
      %170 = arith.addf %165, %169 : vector<10x64xf32>
      %171 = vector.extract_strided_slice %161 {offsets = [2, 0], sizes = [10, 128], strides = [1, 1]} : vector<12x128xf32> to vector<10x128xf32>
      %c0_137 = arith.constant 0 : index
      %c2_138 = arith.constant 2 : index
      %c0_139 = arith.constant 0 : index
      %c0_140 = arith.constant 0 : index
      %172 = vector.load %arg8[%c0_137, %c2_138, %c0_139, %c0_140] : memref<3x3x128x64xf32, #tpu.memory_space<vmem>>, vector<1x1x128x64xf32>
      %173 = vector.shape_cast %172 : vector<1x1x128x64xf32> to vector<128x64xf32>
      %cst_141 = arith.constant dense<0.000000e+00> : vector<10x64xf32>
      %174 = tpu.matmul %171, %173, %cst_141 {dimension_numbers = #tpu.dot_dimension_numbers<[1], [0], [0], [1], [0, 0, 1, 1], [], []>} : vector<10x128xf32>, vector<128x64xf32>, vector<10x64xf32> -> vector<10x64xf32>
      %175 = arith.addf %170, %174 : vector<10x64xf32>
      %c1_i32_142 = arith.constant 1 : i32
      %176 = arith.addi %157, %c1_i32_142 : i32
      %177 = arith.index_cast %176 : i32 to index
      %c0_143 = arith.constant 0 : index
      %c0_144 = arith.constant 0 : index
      %178 = vector.load %arg19[%177, %c0_143, %c0_144] : memref<12x12x128xf32, #tpu.memory_space<vmem>>, vector<1x12x128xf32>
      %179 = vector.shape_cast %178 : vector<1x12x128xf32> to vector<12x128xf32>
      %180 = vector.extract_strided_slice %179 {offsets = [0, 0], sizes = [10, 128], strides = [1, 1]} : vector<12x128xf32> to vector<10x128xf32>
      %c1_145 = arith.constant 1 : index
      %c0_146 = arith.constant 0 : index
      %c0_147 = arith.constant 0 : index
      %c0_148 = arith.constant 0 : index
      %181 = vector.load %arg8[%c1_145, %c0_146, %c0_147, %c0_148] : memref<3x3x128x64xf32, #tpu.memory_space<vmem>>, vector<1x1x128x64xf32>
      %182 = vector.shape_cast %181 : vector<1x1x128x64xf32> to vector<128x64xf32>
      %cst_149 = arith.constant dense<0.000000e+00> : vector<10x64xf32>
      %183 = tpu.matmul %180, %182, %cst_149 {dimension_numbers = #tpu.dot_dimension_numbers<[1], [0], [0], [1], [0, 0, 1, 1], [], []>} : vector<10x128xf32>, vector<128x64xf32>, vector<10x64xf32> -> vector<10x64xf32>
      %184 = arith.addf %175, %183 : vector<10x64xf32>
      %185 = vector.extract_strided_slice %179 {offsets = [1, 0], sizes = [10, 128], strides = [1, 1]} : vector<12x128xf32> to vector<10x128xf32>
      %c1_150 = arith.constant 1 : index
      %c1_151 = arith.constant 1 : index
      %c0_152 = arith.constant 0 : index
      %c0_153 = arith.constant 0 : index
      %186 = vector.load %arg8[%c1_150, %c1_151, %c0_152, %c0_153] : memref<3x3x128x64xf32, #tpu.memory_space<vmem>>, vector<1x1x128x64xf32>
      %187 = vector.shape_cast %186 : vector<1x1x128x64xf32> to vector<128x64xf32>
      %cst_154 = arith.constant dense<0.000000e+00> : vector<10x64xf32>
      %188 = tpu.matmul %185, %187, %cst_154 {dimension_numbers = #tpu.dot_dimension_numbers<[1], [0], [0], [1], [0, 0, 1, 1], [], []>} : vector<10x128xf32>, vector<128x64xf32>, vector<10x64xf32> -> vector<10x64xf32>
      %189 = arith.addf %184, %188 : vector<10x64xf32>
      %190 = vector.extract_strided_slice %179 {offsets = [2, 0], sizes = [10, 128], strides = [1, 1]} : vector<12x128xf32> to vector<10x128xf32>
      %c1_155 = arith.constant 1 : index
      %c2_156 = arith.constant 2 : index
      %c0_157 = arith.constant 0 : index
      %c0_158 = arith.constant 0 : index
      %191 = vector.load %arg8[%c1_155, %c2_156, %c0_157, %c0_158] : memref<3x3x128x64xf32, #tpu.memory_space<vmem>>, vector<1x1x128x64xf32>
      %192 = vector.shape_cast %191 : vector<1x1x128x64xf32> to vector<128x64xf32>
      %cst_159 = arith.constant dense<0.000000e+00> : vector<10x64xf32>
      %193 = tpu.matmul %190, %192, %cst_159 {dimension_numbers = #tpu.dot_dimension_numbers<[1], [0], [0], [1], [0, 0, 1, 1], [], []>} : vector<10x128xf32>, vector<128x64xf32>, vector<10x64xf32> -> vector<10x64xf32>
      %194 = arith.addf %189, %193 : vector<10x64xf32>
      %c2_i32_160 = arith.constant 2 : i32
      %195 = arith.addi %157, %c2_i32_160 : i32
      %196 = arith.index_cast %195 : i32 to index
      %c0_161 = arith.constant 0 : index
      %c0_162 = arith.constant 0 : index
      %197 = vector.load %arg19[%196, %c0_161, %c0_162] : memref<12x12x128xf32, #tpu.memory_space<vmem>>, vector<1x12x128xf32>
      %198 = vector.shape_cast %197 : vector<1x12x128xf32> to vector<12x128xf32>
      %199 = vector.extract_strided_slice %198 {offsets = [0, 0], sizes = [10, 128], strides = [1, 1]} : vector<12x128xf32> to vector<10x128xf32>
      %c2_163 = arith.constant 2 : index
      %c0_164 = arith.constant 0 : index
      %c0_165 = arith.constant 0 : index
      %c0_166 = arith.constant 0 : index
      %200 = vector.load %arg8[%c2_163, %c0_164, %c0_165, %c0_166] : memref<3x3x128x64xf32, #tpu.memory_space<vmem>>, vector<1x1x128x64xf32>
      %201 = vector.shape_cast %200 : vector<1x1x128x64xf32> to vector<128x64xf32>
      %cst_167 = arith.constant dense<0.000000e+00> : vector<10x64xf32>
      %202 = tpu.matmul %199, %201, %cst_167 {dimension_numbers = #tpu.dot_dimension_numbers<[1], [0], [0], [1], [0, 0, 1, 1], [], []>} : vector<10x128xf32>, vector<128x64xf32>, vector<10x64xf32> -> vector<10x64xf32>
      %203 = arith.addf %194, %202 : vector<10x64xf32>
      %204 = vector.extract_strided_slice %198 {offsets = [1, 0], sizes = [10, 128], strides = [1, 1]} : vector<12x128xf32> to vector<10x128xf32>
      %c2_168 = arith.constant 2 : index
      %c1_169 = arith.constant 1 : index
      %c0_170 = arith.constant 0 : index
      %c0_171 = arith.constant 0 : index
      %205 = vector.load %arg8[%c2_168, %c1_169, %c0_170, %c0_171] : memref<3x3x128x64xf32, #tpu.memory_space<vmem>>, vector<1x1x128x64xf32>
      %206 = vector.shape_cast %205 : vector<1x1x128x64xf32> to vector<128x64xf32>
      %cst_172 = arith.constant dense<0.000000e+00> : vector<10x64xf32>
      %207 = tpu.matmul %204, %206, %cst_172 {dimension_numbers = #tpu.dot_dimension_numbers<[1], [0], [0], [1], [0, 0, 1, 1], [], []>} : vector<10x128xf32>, vector<128x64xf32>, vector<10x64xf32> -> vector<10x64xf32>
      %208 = arith.addf %203, %207 : vector<10x64xf32>
      %209 = vector.extract_strided_slice %198 {offsets = [2, 0], sizes = [10, 128], strides = [1, 1]} : vector<12x128xf32> to vector<10x128xf32>
      %c2_173 = arith.constant 2 : index
      %c2_174 = arith.constant 2 : index
      %c0_175 = arith.constant 0 : index
      %c0_176 = arith.constant 0 : index
      %210 = vector.load %arg8[%c2_173, %c2_174, %c0_175, %c0_176] : memref<3x3x128x64xf32, #tpu.memory_space<vmem>>, vector<1x1x128x64xf32>
      %211 = vector.shape_cast %210 : vector<1x1x128x64xf32> to vector<128x64xf32>
      %cst_177 = arith.constant dense<0.000000e+00> : vector<10x64xf32>
      %212 = tpu.matmul %209, %211, %cst_177 {dimension_numbers = #tpu.dot_dimension_numbers<[1], [0], [0], [1], [0, 0, 1, 1], [], []>} : vector<10x128xf32>, vector<128x64xf32>, vector<10x64xf32> -> vector<10x64xf32>
      %213 = arith.addf %208, %212 : vector<10x64xf32>
      %214 = vector.broadcast %6 : vector<1x64xf32> to vector<10x64xf32>
      %215 = arith.addf %213, %214 : vector<10x64xf32>
      %cst_178 = arith.constant 0.000000e+00 : f32
      %216 = vector.broadcast %cst_178 : f32 to vector<10x64xf32>
      %217 = arith.maximumf %215, %216 : vector<10x64xf32>
      %c1_i32_179 = arith.constant 1 : i32
      %218 = arith.addi %157, %c1_i32_179 : i32
      %c0_i32_180 = arith.constant 0 : i32
      %219 = arith.addi %218, %c0_i32_180 : i32
      %220 = arith.index_cast %219 : i32 to index
      %c0_181 = arith.constant 0 : index
      %c0_182 = arith.constant 0 : index
      %221 = vector.load %arg19[%220, %c0_181, %c0_182] : memref<12x12x128xf32, #tpu.memory_space<vmem>>, vector<1x12x128xf32>
      %222 = vector.shape_cast %221 : vector<1x12x128xf32> to vector<12x128xf32>
      %223 = vector.extract_strided_slice %222 {offsets = [0, 0], sizes = [10, 128], strides = [1, 1]} : vector<12x128xf32> to vector<10x128xf32>
      %c0_183 = arith.constant 0 : index
      %c0_184 = arith.constant 0 : index
      %c0_185 = arith.constant 0 : index
      %c0_186 = arith.constant 0 : index
      %224 = vector.load %arg8[%c0_183, %c0_184, %c0_185, %c0_186] : memref<3x3x128x64xf32, #tpu.memory_space<vmem>>, vector<1x1x128x64xf32>
      %225 = vector.shape_cast %224 : vector<1x1x128x64xf32> to vector<128x64xf32>
      %cst_187 = arith.constant dense<0.000000e+00> : vector<10x64xf32>
      %226 = tpu.matmul %223, %225, %cst_187 {dimension_numbers = #tpu.dot_dimension_numbers<[1], [0], [0], [1], [0, 0, 1, 1], [], []>} : vector<10x128xf32>, vector<128x64xf32>, vector<10x64xf32> -> vector<10x64xf32>
      %227 = vector.extract_strided_slice %222 {offsets = [1, 0], sizes = [10, 128], strides = [1, 1]} : vector<12x128xf32> to vector<10x128xf32>
      %c0_188 = arith.constant 0 : index
      %c1_189 = arith.constant 1 : index
      %c0_190 = arith.constant 0 : index
      %c0_191 = arith.constant 0 : index
      %228 = vector.load %arg8[%c0_188, %c1_189, %c0_190, %c0_191] : memref<3x3x128x64xf32, #tpu.memory_space<vmem>>, vector<1x1x128x64xf32>
      %229 = vector.shape_cast %228 : vector<1x1x128x64xf32> to vector<128x64xf32>
      %cst_192 = arith.constant dense<0.000000e+00> : vector<10x64xf32>
      %230 = tpu.matmul %227, %229, %cst_192 {dimension_numbers = #tpu.dot_dimension_numbers<[1], [0], [0], [1], [0, 0, 1, 1], [], []>} : vector<10x128xf32>, vector<128x64xf32>, vector<10x64xf32> -> vector<10x64xf32>
      %231 = arith.addf %226, %230 : vector<10x64xf32>
      %232 = vector.extract_strided_slice %222 {offsets = [2, 0], sizes = [10, 128], strides = [1, 1]} : vector<12x128xf32> to vector<10x128xf32>
      %c0_193 = arith.constant 0 : index
      %c2_194 = arith.constant 2 : index
      %c0_195 = arith.constant 0 : index
      %c0_196 = arith.constant 0 : index
      %233 = vector.load %arg8[%c0_193, %c2_194, %c0_195, %c0_196] : memref<3x3x128x64xf32, #tpu.memory_space<vmem>>, vector<1x1x128x64xf32>
      %234 = vector.shape_cast %233 : vector<1x1x128x64xf32> to vector<128x64xf32>
      %cst_197 = arith.constant dense<0.000000e+00> : vector<10x64xf32>
      %235 = tpu.matmul %232, %234, %cst_197 {dimension_numbers = #tpu.dot_dimension_numbers<[1], [0], [0], [1], [0, 0, 1, 1], [], []>} : vector<10x128xf32>, vector<128x64xf32>, vector<10x64xf32> -> vector<10x64xf32>
      %236 = arith.addf %231, %235 : vector<10x64xf32>
      %c1_i32_198 = arith.constant 1 : i32
      %237 = arith.addi %218, %c1_i32_198 : i32
      %238 = arith.index_cast %237 : i32 to index
      %c0_199 = arith.constant 0 : index
      %c0_200 = arith.constant 0 : index
      %239 = vector.load %arg19[%238, %c0_199, %c0_200] : memref<12x12x128xf32, #tpu.memory_space<vmem>>, vector<1x12x128xf32>
      %240 = vector.shape_cast %239 : vector<1x12x128xf32> to vector<12x128xf32>
      %241 = vector.extract_strided_slice %240 {offsets = [0, 0], sizes = [10, 128], strides = [1, 1]} : vector<12x128xf32> to vector<10x128xf32>
      %c1_201 = arith.constant 1 : index
      %c0_202 = arith.constant 0 : index
      %c0_203 = arith.constant 0 : index
      %c0_204 = arith.constant 0 : index
      %242 = vector.load %arg8[%c1_201, %c0_202, %c0_203, %c0_204] : memref<3x3x128x64xf32, #tpu.memory_space<vmem>>, vector<1x1x128x64xf32>
      %243 = vector.shape_cast %242 : vector<1x1x128x64xf32> to vector<128x64xf32>
      %cst_205 = arith.constant dense<0.000000e+00> : vector<10x64xf32>
      %244 = tpu.matmul %241, %243, %cst_205 {dimension_numbers = #tpu.dot_dimension_numbers<[1], [0], [0], [1], [0, 0, 1, 1], [], []>} : vector<10x128xf32>, vector<128x64xf32>, vector<10x64xf32> -> vector<10x64xf32>
      %245 = arith.addf %236, %244 : vector<10x64xf32>
      %246 = vector.extract_strided_slice %240 {offsets = [1, 0], sizes = [10, 128], strides = [1, 1]} : vector<12x128xf32> to vector<10x128xf32>
      %c1_206 = arith.constant 1 : index
      %c1_207 = arith.constant 1 : index
      %c0_208 = arith.constant 0 : index
      %c0_209 = arith.constant 0 : index
      %247 = vector.load %arg8[%c1_206, %c1_207, %c0_208, %c0_209] : memref<3x3x128x64xf32, #tpu.memory_space<vmem>>, vector<1x1x128x64xf32>
      %248 = vector.shape_cast %247 : vector<1x1x128x64xf32> to vector<128x64xf32>
      %cst_210 = arith.constant dense<0.000000e+00> : vector<10x64xf32>
      %249 = tpu.matmul %246, %248, %cst_210 {dimension_numbers = #tpu.dot_dimension_numbers<[1], [0], [0], [1], [0, 0, 1, 1], [], []>} : vector<10x128xf32>, vector<128x64xf32>, vector<10x64xf32> -> vector<10x64xf32>
      %250 = arith.addf %245, %249 : vector<10x64xf32>
      %251 = vector.extract_strided_slice %240 {offsets = [2, 0], sizes = [10, 128], strides = [1, 1]} : vector<12x128xf32> to vector<10x128xf32>
      %c1_211 = arith.constant 1 : index
      %c2_212 = arith.constant 2 : index
      %c0_213 = arith.constant 0 : index
      %c0_214 = arith.constant 0 : index
      %252 = vector.load %arg8[%c1_211, %c2_212, %c0_213, %c0_214] : memref<3x3x128x64xf32, #tpu.memory_space<vmem>>, vector<1x1x128x64xf32>
      %253 = vector.shape_cast %252 : vector<1x1x128x64xf32> to vector<128x64xf32>
      %cst_215 = arith.constant dense<0.000000e+00> : vector<10x64xf32>
      %254 = tpu.matmul %251, %253, %cst_215 {dimension_numbers = #tpu.dot_dimension_numbers<[1], [0], [0], [1], [0, 0, 1, 1], [], []>} : vector<10x128xf32>, vector<128x64xf32>, vector<10x64xf32> -> vector<10x64xf32>
      %255 = arith.addf %250, %254 : vector<10x64xf32>
      %c2_i32_216 = arith.constant 2 : i32
      %256 = arith.addi %218, %c2_i32_216 : i32
      %257 = arith.index_cast %256 : i32 to index
      %c0_217 = arith.constant 0 : index
      %c0_218 = arith.constant 0 : index
      %258 = vector.load %arg19[%257, %c0_217, %c0_218] : memref<12x12x128xf32, #tpu.memory_space<vmem>>, vector<1x12x128xf32>
      %259 = vector.shape_cast %258 : vector<1x12x128xf32> to vector<12x128xf32>
      %260 = vector.extract_strided_slice %259 {offsets = [0, 0], sizes = [10, 128], strides = [1, 1]} : vector<12x128xf32> to vector<10x128xf32>
      %c2_219 = arith.constant 2 : index
      %c0_220 = arith.constant 0 : index
      %c0_221 = arith.constant 0 : index
      %c0_222 = arith.constant 0 : index
      %261 = vector.load %arg8[%c2_219, %c0_220, %c0_221, %c0_222] : memref<3x3x128x64xf32, #tpu.memory_space<vmem>>, vector<1x1x128x64xf32>
      %262 = vector.shape_cast %261 : vector<1x1x128x64xf32> to vector<128x64xf32>
      %cst_223 = arith.constant dense<0.000000e+00> : vector<10x64xf32>
      %263 = tpu.matmul %260, %262, %cst_223 {dimension_numbers = #tpu.dot_dimension_numbers<[1], [0], [0], [1], [0, 0, 1, 1], [], []>} : vector<10x128xf32>, vector<128x64xf32>, vector<10x64xf32> -> vector<10x64xf32>
      %264 = arith.addf %255, %263 : vector<10x64xf32>
      %265 = vector.extract_strided_slice %259 {offsets = [1, 0], sizes = [10, 128], strides = [1, 1]} : vector<12x128xf32> to vector<10x128xf32>
      %c2_224 = arith.constant 2 : index
      %c1_225 = arith.constant 1 : index
      %c0_226 = arith.constant 0 : index
      %c0_227 = arith.constant 0 : index
      %266 = vector.load %arg8[%c2_224, %c1_225, %c0_226, %c0_227] : memref<3x3x128x64xf32, #tpu.memory_space<vmem>>, vector<1x1x128x64xf32>
      %267 = vector.shape_cast %266 : vector<1x1x128x64xf32> to vector<128x64xf32>
      %cst_228 = arith.constant dense<0.000000e+00> : vector<10x64xf32>
      %268 = tpu.matmul %265, %267, %cst_228 {dimension_numbers = #tpu.dot_dimension_numbers<[1], [0], [0], [1], [0, 0, 1, 1], [], []>} : vector<10x128xf32>, vector<128x64xf32>, vector<10x64xf32> -> vector<10x64xf32>
      %269 = arith.addf %264, %268 : vector<10x64xf32>
      %270 = vector.extract_strided_slice %259 {offsets = [2, 0], sizes = [10, 128], strides = [1, 1]} : vector<12x128xf32> to vector<10x128xf32>
      %c2_229 = arith.constant 2 : index
      %c2_230 = arith.constant 2 : index
      %c0_231 = arith.constant 0 : index
      %c0_232 = arith.constant 0 : index
      %271 = vector.load %arg8[%c2_229, %c2_230, %c0_231, %c0_232] : memref<3x3x128x64xf32, #tpu.memory_space<vmem>>, vector<1x1x128x64xf32>
      %272 = vector.shape_cast %271 : vector<1x1x128x64xf32> to vector<128x64xf32>
      %cst_233 = arith.constant dense<0.000000e+00> : vector<10x64xf32>
      %273 = tpu.matmul %270, %272, %cst_233 {dimension_numbers = #tpu.dot_dimension_numbers<[1], [0], [0], [1], [0, 0, 1, 1], [], []>} : vector<10x128xf32>, vector<128x64xf32>, vector<10x64xf32> -> vector<10x64xf32>
      %274 = arith.addf %269, %273 : vector<10x64xf32>
      %275 = vector.broadcast %6 : vector<1x64xf32> to vector<10x64xf32>
      %276 = arith.addf %274, %275 : vector<10x64xf32>
      %cst_234 = arith.constant 0.000000e+00 : f32
      %277 = vector.broadcast %cst_234 : f32 to vector<10x64xf32>
      %278 = arith.maximumf %276, %277 : vector<10x64xf32>
      %279 = arith.maximumf %217, %278 : vector<10x64xf32>
      %280 = vector.shape_cast %279 : vector<10x64xf32> to vector<5x2x64xf32>
      %cst_235 = arith.constant dense<0xFF800000> : vector<5x64xf32>
      %281 = vector.multi_reduction <maximumf>, %280, %cst_235 [1] : vector<5x2x64xf32> to vector<5x64xf32>
      %282 = arith.index_cast %156 : i32 to index
      %c0_236 = arith.constant 0 : index
      %c0_237 = arith.constant 0 : index
      %283 = vector.load %arg20[%282, %c0_236, %c0_237] : memref<5x5x64xf32, #tpu.memory_space<vmem>>, vector<1x5x64xf32>
      %284 = vector.shape_cast %283 : vector<1x5x64xf32> to vector<5x64xf32>
      %285 = vector.shape_cast %281 : vector<5x64xf32> to vector<1x5x64xf32>
      tpu.vector_store %arg20[%282, %c0_236, %c0_237], %285 {strides = array<i32>} : memref<5x5x64xf32, #tpu.memory_space<vmem>>, vector<1x5x64xf32>,
    }
    %c5_i32_16 = arith.constant 5 : i32
    %c0_17 = arith.constant 0 : index
    %c0_18 = arith.constant 0 : index
    %8 = vector.load %arg11[%c0_17, %c0_18] : memref<1x128xf32, #tpu.memory_space<vmem>>, vector<1x128xf32>
    %c0_19 = arith.constant 0 : index
    %c0_20 = arith.constant 0 : index
    %c0_21 = arith.constant 0 : index
    %9 = vector.load %arg20[%c0_19, %c0_20, %c0_21] : memref<5x5x64xf32, #tpu.memory_space<vmem>>, vector<1x5x64xf32>
    %10 = vector.shape_cast %9 : vector<1x5x64xf32> to vector<5x64xf32>
    %11 = vector.extract_strided_slice %10 {offsets = [0, 0], sizes = [1, 64], strides = [1, 1]} : vector<5x64xf32> to vector<1x64xf32>
    %c0_22 = arith.constant 0 : index
    %c0_23 = arith.constant 0 : index
    %c0_24 = arith.constant 0 : index
    %12 = vector.load %arg10[%c0_22, %c0_23, %c0_24] : memref<25x64x128xf32, #tpu.memory_space<vmem>>, vector<1x64x128xf32>
    %13 = vector.shape_cast %12 : vector<1x64x128xf32> to vector<64x128xf32>
    %cst = arith.constant dense<0.000000e+00> : vector<1x128xf32>
    %14 = tpu.matmul %11, %13, %cst {dimension_numbers = #tpu.dot_dimension_numbers<[1], [0], [0], [1], [0, 0, 1, 1], [], []>} : vector<1x64xf32>, vector<64x128xf32>, vector<1x128xf32> -> vector<1x128xf32>
    %15 = arith.addf %8, %14 : vector<1x128xf32>
    %16 = vector.extract_strided_slice %10 {offsets = [1, 0], sizes = [1, 64], strides = [1, 1]} : vector<5x64xf32> to vector<1x64xf32>
    %c1 = arith.constant 1 : index
    %c0_25 = arith.constant 0 : index
    %c0_26 = arith.constant 0 : index
    %17 = vector.load %arg10[%c1, %c0_25, %c0_26] : memref<25x64x128xf32, #tpu.memory_space<vmem>>, vector<1x64x128xf32>
    %18 = vector.shape_cast %17 : vector<1x64x128xf32> to vector<64x128xf32>
    %cst_27 = arith.constant dense<0.000000e+00> : vector<1x128xf32>
    %19 = tpu.matmul %16, %18, %cst_27 {dimension_numbers = #tpu.dot_dimension_numbers<[1], [0], [0], [1], [0, 0, 1, 1], [], []>} : vector<1x64xf32>, vector<64x128xf32>, vector<1x128xf32> -> vector<1x128xf32>
    %20 = arith.addf %15, %19 : vector<1x128xf32>
    %21 = vector.extract_strided_slice %10 {offsets = [2, 0], sizes = [1, 64], strides = [1, 1]} : vector<5x64xf32> to vector<1x64xf32>
    %c2 = arith.constant 2 : index
    %c0_28 = arith.constant 0 : index
    %c0_29 = arith.constant 0 : index
    %22 = vector.load %arg10[%c2, %c0_28, %c0_29] : memref<25x64x128xf32, #tpu.memory_space<vmem>>, vector<1x64x128xf32>
    %23 = vector.shape_cast %22 : vector<1x64x128xf32> to vector<64x128xf32>
    %cst_30 = arith.constant dense<0.000000e+00> : vector<1x128xf32>
    %24 = tpu.matmul %21, %23, %cst_30 {dimension_numbers = #tpu.dot_dimension_numbers<[1], [0], [0], [1], [0, 0, 1, 1], [], []>} : vector<1x64xf32>, vector<64x128xf32>, vector<1x128xf32> -> vector<1x128xf32>
    %25 = arith.addf %20, %24 : vector<1x128xf32>
    %26 = vector.extract_strided_slice %10 {offsets = [3, 0], sizes = [1, 64], strides = [1, 1]} : vector<5x64xf32> to vector<1x64xf32>
    %c3 = arith.constant 3 : index
    %c0_31 = arith.constant 0 : index
    %c0_32 = arith.constant 0 : index
    %27 = vector.load %arg10[%c3, %c0_31, %c0_32] : memref<25x64x128xf32, #tpu.memory_space<vmem>>, vector<1x64x128xf32>
    %28 = vector.shape_cast %27 : vector<1x64x128xf32> to vector<64x128xf32>
    %cst_33 = arith.constant dense<0.000000e+00> : vector<1x128xf32>
    %29 = tpu.matmul %26, %28, %cst_33 {dimension_numbers = #tpu.dot_dimension_numbers<[1], [0], [0], [1], [0, 0, 1, 1], [], []>} : vector<1x64xf32>, vector<64x128xf32>, vector<1x128xf32> -> vector<1x128xf32>
    %30 = arith.addf %25, %29 : vector<1x128xf32>
    %31 = vector.extract_strided_slice %10 {offsets = [4, 0], sizes = [1, 64], strides = [1, 1]} : vector<5x64xf32> to vector<1x64xf32>
    %c4 = arith.constant 4 : index
    %c0_34 = arith.constant 0 : index
    %c0_35 = arith.constant 0 : index
    %32 = vector.load %arg10[%c4, %c0_34, %c0_35] : memref<25x64x128xf32, #tpu.memory_space<vmem>>, vector<1x64x128xf32>
    %33 = vector.shape_cast %32 : vector<1x64x128xf32> to vector<64x128xf32>
    %cst_36 = arith.constant dense<0.000000e+00> : vector<1x128xf32>
    %34 = tpu.matmul %31, %33, %cst_36 {dimension_numbers = #tpu.dot_dimension_numbers<[1], [0], [0], [1], [0, 0, 1, 1], [], []>} : vector<1x64xf32>, vector<64x128xf32>, vector<1x128xf32> -> vector<1x128xf32>
    %35 = arith.addf %30, %34 : vector<1x128xf32>
    %c1_37 = arith.constant 1 : index
    %c0_38 = arith.constant 0 : index
    %c0_39 = arith.constant 0 : index
    %36 = vector.load %arg20[%c1_37, %c0_38, %c0_39] : memref<5x5x64xf32, #tpu.memory_space<vmem>>, vector<1x5x64xf32>
    %37 = vector.shape_cast %36 : vector<1x5x64xf32> to vector<5x64xf32>
    %38 = vector.extract_strided_slice %37 {offsets = [0, 0], sizes = [1, 64], strides = [1, 1]} : vector<5x64xf32> to vector<1x64xf32>
    %c5 = arith.constant 5 : index
    %c0_40 = arith.constant 0 : index
    %c0_41 = arith.constant 0 : index
    %39 = vector.load %arg10[%c5, %c0_40, %c0_41] : memref<25x64x128xf32, #tpu.memory_space<vmem>>, vector<1x64x128xf32>
    %40 = vector.shape_cast %39 : vector<1x64x128xf32> to vector<64x128xf32>
    %cst_42 = arith.constant dense<0.000000e+00> : vector<1x128xf32>
    %41 = tpu.matmul %38, %40, %cst_42 {dimension_numbers = #tpu.dot_dimension_numbers<[1], [0], [0], [1], [0, 0, 1, 1], [], []>} : vector<1x64xf32>, vector<64x128xf32>, vector<1x128xf32> -> vector<1x128xf32>
    %42 = arith.addf %35, %41 : vector<1x128xf32>
    %43 = vector.extract_strided_slice %37 {offsets = [1, 0], sizes = [1, 64], strides = [1, 1]} : vector<5x64xf32> to vector<1x64xf32>
    %c6 = arith.constant 6 : index
    %c0_43 = arith.constant 0 : index
    %c0_44 = arith.constant 0 : index
    %44 = vector.load %arg10[%c6, %c0_43, %c0_44] : memref<25x64x128xf32, #tpu.memory_space<vmem>>, vector<1x64x128xf32>
    %45 = vector.shape_cast %44 : vector<1x64x128xf32> to vector<64x128xf32>
    %cst_45 = arith.constant dense<0.000000e+00> : vector<1x128xf32>
    %46 = tpu.matmul %43, %45, %cst_45 {dimension_numbers = #tpu.dot_dimension_numbers<[1], [0], [0], [1], [0, 0, 1, 1], [], []>} : vector<1x64xf32>, vector<64x128xf32>, vector<1x128xf32> -> vector<1x128xf32>
    %47 = arith.addf %42, %46 : vector<1x128xf32>
    %48 = vector.extract_strided_slice %37 {offsets = [2, 0], sizes = [1, 64], strides = [1, 1]} : vector<5x64xf32> to vector<1x64xf32>
    %c7 = arith.constant 7 : index
    %c0_46 = arith.constant 0 : index
    %c0_47 = arith.constant 0 : index
    %49 = vector.load %arg10[%c7, %c0_46, %c0_47] : memref<25x64x128xf32, #tpu.memory_space<vmem>>, vector<1x64x128xf32>
    %50 = vector.shape_cast %49 : vector<1x64x128xf32> to vector<64x128xf32>
    %cst_48 = arith.constant dense<0.000000e+00> : vector<1x128xf32>
    %51 = tpu.matmul %48, %50, %cst_48 {dimension_numbers = #tpu.dot_dimension_numbers<[1], [0], [0], [1], [0, 0, 1, 1], [], []>} : vector<1x64xf32>, vector<64x128xf32>, vector<1x128xf32> -> vector<1x128xf32>
    %52 = arith.addf %47, %51 : vector<1x128xf32>
    %53 = vector.extract_strided_slice %37 {offsets = [3, 0], sizes = [1, 64], strides = [1, 1]} : vector<5x64xf32> to vector<1x64xf32>
    %c8 = arith.constant 8 : index
    %c0_49 = arith.constant 0 : index
    %c0_50 = arith.constant 0 : index
    %54 = vector.load %arg10[%c8, %c0_49, %c0_50] : memref<25x64x128xf32, #tpu.memory_space<vmem>>, vector<1x64x128xf32>
    %55 = vector.shape_cast %54 : vector<1x64x128xf32> to vector<64x128xf32>
    %cst_51 = arith.constant dense<0.000000e+00> : vector<1x128xf32>
    %56 = tpu.matmul %53, %55, %cst_51 {dimension_numbers = #tpu.dot_dimension_numbers<[1], [0], [0], [1], [0, 0, 1, 1], [], []>} : vector<1x64xf32>, vector<64x128xf32>, vector<1x128xf32> -> vector<1x128xf32>
    %57 = arith.addf %52, %56 : vector<1x128xf32>
    %58 = vector.extract_strided_slice %37 {offsets = [4, 0], sizes = [1, 64], strides = [1, 1]} : vector<5x64xf32> to vector<1x64xf32>
    %c9 = arith.constant 9 : index
    %c0_52 = arith.constant 0 : index
    %c0_53 = arith.constant 0 : index
    %59 = vector.load %arg10[%c9, %c0_52, %c0_53] : memref<25x64x128xf32, #tpu.memory_space<vmem>>, vector<1x64x128xf32>
    %60 = vector.shape_cast %59 : vector<1x64x128xf32> to vector<64x128xf32>
    %cst_54 = arith.constant dense<0.000000e+00> : vector<1x128xf32>
    %61 = tpu.matmul %58, %60, %cst_54 {dimension_numbers = #tpu.dot_dimension_numbers<[1], [0], [0], [1], [0, 0, 1, 1], [], []>} : vector<1x64xf32>, vector<64x128xf32>, vector<1x128xf32> -> vector<1x128xf32>
    %62 = arith.addf %57, %61 : vector<1x128xf32>
    %c2_55 = arith.constant 2 : index
    %c0_56 = arith.constant 0 : index
    %c0_57 = arith.constant 0 : index
    %63 = vector.load %arg20[%c2_55, %c0_56, %c0_57] : memref<5x5x64xf32, #tpu.memory_space<vmem>>, vector<1x5x64xf32>
    %64 = vector.shape_cast %63 : vector<1x5x64xf32> to vector<5x64xf32>
    %65 = vector.extract_strided_slice %64 {offsets = [0, 0], sizes = [1, 64], strides = [1, 1]} : vector<5x64xf32> to vector<1x64xf32>
    %c10 = arith.constant 10 : index
    %c0_58 = arith.constant 0 : index
    %c0_59 = arith.constant 0 : index
    %66 = vector.load %arg10[%c10, %c0_58, %c0_59] : memref<25x64x128xf32, #tpu.memory_space<vmem>>, vector<1x64x128xf32>
    %67 = vector.shape_cast %66 : vector<1x64x128xf32> to vector<64x128xf32>
    %cst_60 = arith.constant dense<0.000000e+00> : vector<1x128xf32>
    %68 = tpu.matmul %65, %67, %cst_60 {dimension_numbers = #tpu.dot_dimension_numbers<[1], [0], [0], [1], [0, 0, 1, 1], [], []>} : vector<1x64xf32>, vector<64x128xf32>, vector<1x128xf32> -> vector<1x128xf32>
    %69 = arith.addf %62, %68 : vector<1x128xf32>
    %70 = vector.extract_strided_slice %64 {offsets = [1, 0], sizes = [1, 64], strides = [1, 1]} : vector<5x64xf32> to vector<1x64xf32>
    %c11 = arith.constant 11 : index
    %c0_61 = arith.constant 0 : index
    %c0_62 = arith.constant 0 : index
    %71 = vector.load %arg10[%c11, %c0_61, %c0_62] : memref<25x64x128xf32, #tpu.memory_space<vmem>>, vector<1x64x128xf32>
    %72 = vector.shape_cast %71 : vector<1x64x128xf32> to vector<64x128xf32>
    %cst_63 = arith.constant dense<0.000000e+00> : vector<1x128xf32>
    %73 = tpu.matmul %70, %72, %cst_63 {dimension_numbers = #tpu.dot_dimension_numbers<[1], [0], [0], [1], [0, 0, 1, 1], [], []>} : vector<1x64xf32>, vector<64x128xf32>, vector<1x128xf32> -> vector<1x128xf32>
    %74 = arith.addf %69, %73 : vector<1x128xf32>
    %75 = vector.extract_strided_slice %64 {offsets = [2, 0], sizes = [1, 64], strides = [1, 1]} : vector<5x64xf32> to vector<1x64xf32>
    %c12 = arith.constant 12 : index
    %c0_64 = arith.constant 0 : index
    %c0_65 = arith.constant 0 : index
    %76 = vector.load %arg10[%c12, %c0_64, %c0_65] : memref<25x64x128xf32, #tpu.memory_space<vmem>>, vector<1x64x128xf32>
    %77 = vector.shape_cast %76 : vector<1x64x128xf32> to vector<64x128xf32>
    %cst_66 = arith.constant dense<0.000000e+00> : vector<1x128xf32>
    %78 = tpu.matmul %75, %77, %cst_66 {dimension_numbers = #tpu.dot_dimension_numbers<[1], [0], [0], [1], [0, 0, 1, 1], [], []>} : vector<1x64xf32>, vector<64x128xf32>, vector<1x128xf32> -> vector<1x128xf32>
    %79 = arith.addf %74, %78 : vector<1x128xf32>
    %80 = vector.extract_strided_slice %64 {offsets = [3, 0], sizes = [1, 64], strides = [1, 1]} : vector<5x64xf32> to vector<1x64xf32>
    %c13 = arith.constant 13 : index
    %c0_67 = arith.constant 0 : index
    %c0_68 = arith.constant 0 : index
    %81 = vector.load %arg10[%c13, %c0_67, %c0_68] : memref<25x64x128xf32, #tpu.memory_space<vmem>>, vector<1x64x128xf32>
    %82 = vector.shape_cast %81 : vector<1x64x128xf32> to vector<64x128xf32>
    %cst_69 = arith.constant dense<0.000000e+00> : vector<1x128xf32>
    %83 = tpu.matmul %80, %82, %cst_69 {dimension_numbers = #tpu.dot_dimension_numbers<[1], [0], [0], [1], [0, 0, 1, 1], [], []>} : vector<1x64xf32>, vector<64x128xf32>, vector<1x128xf32> -> vector<1x128xf32>
    %84 = arith.addf %79, %83 : vector<1x128xf32>
    %85 = vector.extract_strided_slice %64 {offsets = [4, 0], sizes = [1, 64], strides = [1, 1]} : vector<5x64xf32> to vector<1x64xf32>
    %c14 = arith.constant 14 : index
    %c0_70 = arith.constant 0 : index
    %c0_71 = arith.constant 0 : index
    %86 = vector.load %arg10[%c14, %c0_70, %c0_71] : memref<25x64x128xf32, #tpu.memory_space<vmem>>, vector<1x64x128xf32>
    %87 = vector.shape_cast %86 : vector<1x64x128xf32> to vector<64x128xf32>
    %cst_72 = arith.constant dense<0.000000e+00> : vector<1x128xf32>
    %88 = tpu.matmul %85, %87, %cst_72 {dimension_numbers = #tpu.dot_dimension_numbers<[1], [0], [0], [1], [0, 0, 1, 1], [], []>} : vector<1x64xf32>, vector<64x128xf32>, vector<1x128xf32> -> vector<1x128xf32>
    %89 = arith.addf %84, %88 : vector<1x128xf32>
    %c3_73 = arith.constant 3 : index
    %c0_74 = arith.constant 0 : index
    %c0_75 = arith.constant 0 : index
    %90 = vector.load %arg20[%c3_73, %c0_74, %c0_75] : memref<5x5x64xf32, #tpu.memory_space<vmem>>, vector<1x5x64xf32>
    %91 = vector.shape_cast %90 : vector<1x5x64xf32> to vector<5x64xf32>
    %92 = vector.extract_strided_slice %91 {offsets = [0, 0], sizes = [1, 64], strides = [1, 1]} : vector<5x64xf32> to vector<1x64xf32>
    %c15 = arith.constant 15 : index
    %c0_76 = arith.constant 0 : index
    %c0_77 = arith.constant 0 : index
    %93 = vector.load %arg10[%c15, %c0_76, %c0_77] : memref<25x64x128xf32, #tpu.memory_space<vmem>>, vector<1x64x128xf32>
    %94 = vector.shape_cast %93 : vector<1x64x128xf32> to vector<64x128xf32>
    %cst_78 = arith.constant dense<0.000000e+00> : vector<1x128xf32>
    %95 = tpu.matmul %92, %94, %cst_78 {dimension_numbers = #tpu.dot_dimension_numbers<[1], [0], [0], [1], [0, 0, 1, 1], [], []>} : vector<1x64xf32>, vector<64x128xf32>, vector<1x128xf32> -> vector<1x128xf32>
    %96 = arith.addf %89, %95 : vector<1x128xf32>
    %97 = vector.extract_strided_slice %91 {offsets = [1, 0], sizes = [1, 64], strides = [1, 1]} : vector<5x64xf32> to vector<1x64xf32>
    %c16 = arith.constant 16 : index
    %c0_79 = arith.constant 0 : index
    %c0_80 = arith.constant 0 : index
    %98 = vector.load %arg10[%c16, %c0_79, %c0_80] : memref<25x64x128xf32, #tpu.memory_space<vmem>>, vector<1x64x128xf32>
    %99 = vector.shape_cast %98 : vector<1x64x128xf32> to vector<64x128xf32>
    %cst_81 = arith.constant dense<0.000000e+00> : vector<1x128xf32>
    %100 = tpu.matmul %97, %99, %cst_81 {dimension_numbers = #tpu.dot_dimension_numbers<[1], [0], [0], [1], [0, 0, 1, 1], [], []>} : vector<1x64xf32>, vector<64x128xf32>, vector<1x128xf32> -> vector<1x128xf32>
    %101 = arith.addf %96, %100 : vector<1x128xf32>
    %102 = vector.extract_strided_slice %91 {offsets = [2, 0], sizes = [1, 64], strides = [1, 1]} : vector<5x64xf32> to vector<1x64xf32>
    %c17 = arith.constant 17 : index
    %c0_82 = arith.constant 0 : index
    %c0_83 = arith.constant 0 : index
    %103 = vector.load %arg10[%c17, %c0_82, %c0_83] : memref<25x64x128xf32, #tpu.memory_space<vmem>>, vector<1x64x128xf32>
    %104 = vector.shape_cast %103 : vector<1x64x128xf32> to vector<64x128xf32>
    %cst_84 = arith.constant dense<0.000000e+00> : vector<1x128xf32>
    %105 = tpu.matmul %102, %104, %cst_84 {dimension_numbers = #tpu.dot_dimension_numbers<[1], [0], [0], [1], [0, 0, 1, 1], [], []>} : vector<1x64xf32>, vector<64x128xf32>, vector<1x128xf32> -> vector<1x128xf32>
    %106 = arith.addf %101, %105 : vector<1x128xf32>
    %107 = vector.extract_strided_slice %91 {offsets = [3, 0], sizes = [1, 64], strides = [1, 1]} : vector<5x64xf32> to vector<1x64xf32>
    %c18 = arith.constant 18 : index
    %c0_85 = arith.constant 0 : index
    %c0_86 = arith.constant 0 : index
    %108 = vector.load %arg10[%c18, %c0_85, %c0_86] : memref<25x64x128xf32, #tpu.memory_space<vmem>>, vector<1x64x128xf32>
    %109 = vector.shape_cast %108 : vector<1x64x128xf32> to vector<64x128xf32>
    %cst_87 = arith.constant dense<0.000000e+00> : vector<1x128xf32>
    %110 = tpu.matmul %107, %109, %cst_87 {dimension_numbers = #tpu.dot_dimension_numbers<[1], [0], [0], [1], [0, 0, 1, 1], [], []>} : vector<1x64xf32>, vector<64x128xf32>, vector<1x128xf32> -> vector<1x128xf32>
    %111 = arith.addf %106, %110 : vector<1x128xf32>
    %112 = vector.extract_strided_slice %91 {offsets = [4, 0], sizes = [1, 64], strides = [1, 1]} : vector<5x64xf32> to vector<1x64xf32>
    %c19 = arith.constant 19 : index
    %c0_88 = arith.constant 0 : index
    %c0_89 = arith.constant 0 : index
    %113 = vector.load %arg10[%c19, %c0_88, %c0_89] : memref<25x64x128xf32, #tpu.memory_space<vmem>>, vector<1x64x128xf32>
    %114 = vector.shape_cast %113 : vector<1x64x128xf32> to vector<64x128xf32>
    %cst_90 = arith.constant dense<0.000000e+00> : vector<1x128xf32>
    %115 = tpu.matmul %112, %114, %cst_90 {dimension_numbers = #tpu.dot_dimension_numbers<[1], [0], [0], [1], [0, 0, 1, 1], [], []>} : vector<1x64xf32>, vector<64x128xf32>, vector<1x128xf32> -> vector<1x128xf32>
    %116 = arith.addf %111, %115 : vector<1x128xf32>
    %c4_91 = arith.constant 4 : index
    %c0_92 = arith.constant 0 : index
    %c0_93 = arith.constant 0 : index
    %117 = vector.load %arg20[%c4_91, %c0_92, %c0_93] : memref<5x5x64xf32, #tpu.memory_space<vmem>>, vector<1x5x64xf32>
    %118 = vector.shape_cast %117 : vector<1x5x64xf32> to vector<5x64xf32>
    %119 = vector.extract_strided_slice %118 {offsets = [0, 0], sizes = [1, 64], strides = [1, 1]} : vector<5x64xf32> to vector<1x64xf32>
    %c20 = arith.constant 20 : index
    %c0_94 = arith.constant 0 : index
    %c0_95 = arith.constant 0 : index
    %120 = vector.load %arg10[%c20, %c0_94, %c0_95] : memref<25x64x128xf32, #tpu.memory_space<vmem>>, vector<1x64x128xf32>
    %121 = vector.shape_cast %120 : vector<1x64x128xf32> to vector<64x128xf32>
    %cst_96 = arith.constant dense<0.000000e+00> : vector<1x128xf32>
    %122 = tpu.matmul %119, %121, %cst_96 {dimension_numbers = #tpu.dot_dimension_numbers<[1], [0], [0], [1], [0, 0, 1, 1], [], []>} : vector<1x64xf32>, vector<64x128xf32>, vector<1x128xf32> -> vector<1x128xf32>
    %123 = arith.addf %116, %122 : vector<1x128xf32>
    %124 = vector.extract_strided_slice %118 {offsets = [1, 0], sizes = [1, 64], strides = [1, 1]} : vector<5x64xf32> to vector<1x64xf32>
    %c21 = arith.constant 21 : index
    %c0_97 = arith.constant 0 : index
    %c0_98 = arith.constant 0 : index
    %125 = vector.load %arg10[%c21, %c0_97, %c0_98] : memref<25x64x128xf32, #tpu.memory_space<vmem>>, vector<1x64x128xf32>
    %126 = vector.shape_cast %125 : vector<1x64x128xf32> to vector<64x128xf32>
    %cst_99 = arith.constant dense<0.000000e+00> : vector<1x128xf32>
    %127 = tpu.matmul %124, %126, %cst_99 {dimension_numbers = #tpu.dot_dimension_numbers<[1], [0], [0], [1], [0, 0, 1, 1], [], []>} : vector<1x64xf32>, vector<64x128xf32>, vector<1x128xf32> -> vector<1x128xf32>
    %128 = arith.addf %123, %127 : vector<1x128xf32>
    %129 = vector.extract_strided_slice %118 {offsets = [2, 0], sizes = [1, 64], strides = [1, 1]} : vector<5x64xf32> to vector<1x64xf32>
    %c22 = arith.constant 22 : index
    %c0_100 = arith.constant 0 : index
    %c0_101 = arith.constant 0 : index
    %130 = vector.load %arg10[%c22, %c0_100, %c0_101] : memref<25x64x128xf32, #tpu.memory_space<vmem>>, vector<1x64x128xf32>
    %131 = vector.shape_cast %130 : vector<1x64x128xf32> to vector<64x128xf32>
    %cst_102 = arith.constant dense<0.000000e+00> : vector<1x128xf32>
    %132 = tpu.matmul %129, %131, %cst_102 {dimension_numbers = #tpu.dot_dimension_numbers<[1], [0], [0], [1], [0, 0, 1, 1], [], []>} : vector<1x64xf32>, vector<64x128xf32>, vector<1x128xf32> -> vector<1x128xf32>
    %133 = arith.addf %128, %132 : vector<1x128xf32>
    %134 = vector.extract_strided_slice %118 {offsets = [3, 0], sizes = [1, 64], strides = [1, 1]} : vector<5x64xf32> to vector<1x64xf32>
    %c23 = arith.constant 23 : index
    %c0_103 = arith.constant 0 : index
    %c0_104 = arith.constant 0 : index
    %135 = vector.load %arg10[%c23, %c0_103, %c0_104] : memref<25x64x128xf32, #tpu.memory_space<vmem>>, vector<1x64x128xf32>
    %136 = vector.shape_cast %135 : vector<1x64x128xf32> to vector<64x128xf32>
    %cst_105 = arith.constant dense<0.000000e+00> : vector<1x128xf32>
    %137 = tpu.matmul %134, %136, %cst_105 {dimension_numbers = #tpu.dot_dimension_numbers<[1], [0], [0], [1], [0, 0, 1, 1], [], []>} : vector<1x64xf32>, vector<64x128xf32>, vector<1x128xf32> -> vector<1x128xf32>
    %138 = arith.addf %133, %137 : vector<1x128xf32>
    %139 = vector.extract_strided_slice %118 {offsets = [4, 0], sizes = [1, 64], strides = [1, 1]} : vector<5x64xf32> to vector<1x64xf32>
    %c24 = arith.constant 24 : index
    %c0_106 = arith.constant 0 : index
    %c0_107 = arith.constant 0 : index
    %140 = vector.load %arg10[%c24, %c0_106, %c0_107] : memref<25x64x128xf32, #tpu.memory_space<vmem>>, vector<1x64x128xf32>
    %141 = vector.shape_cast %140 : vector<1x64x128xf32> to vector<64x128xf32>
    %cst_108 = arith.constant dense<0.000000e+00> : vector<1x128xf32>
    %142 = tpu.matmul %139, %141, %cst_108 {dimension_numbers = #tpu.dot_dimension_numbers<[1], [0], [0], [1], [0, 0, 1, 1], [], []>} : vector<1x64xf32>, vector<64x128xf32>, vector<1x128xf32> -> vector<1x128xf32>
    %143 = arith.addf %138, %142 : vector<1x128xf32>
    %c0_109 = arith.constant 0 : index
    %c0_110 = arith.constant 0 : index
    %144 = vector.load %arg12[%c0_109, %c0_110] : memref<128x64xf32, #tpu.memory_space<vmem>>, vector<128x64xf32>
    %cst_111 = arith.constant dense<0.000000e+00> : vector<1x64xf32>
    %145 = tpu.matmul %143, %144, %cst_111 {dimension_numbers = #tpu.dot_dimension_numbers<[1], [0], [0], [1], [0, 0, 1, 1], [], []>} : vector<1x128xf32>, vector<128x64xf32>, vector<1x64xf32> -> vector<1x64xf32>
    %c0_112 = arith.constant 0 : index
    %c0_113 = arith.constant 0 : index
    %146 = vector.load %arg13[%c0_112, %c0_113] : memref<1x64xf32, #tpu.memory_space<vmem>>, vector<1x64xf32>
    %147 = arith.addf %145, %146 : vector<1x64xf32>
    %c0_114 = arith.constant 0 : index
    %c0_115 = arith.constant 0 : index
    %148 = vector.load %arg14[%c0_114, %c0_115] : memref<64x10xf32, #tpu.memory_space<vmem>>, vector<64x10xf32>
    %cst_116 = arith.constant dense<0.000000e+00> : vector<1x10xf32>
    %149 = tpu.matmul %147, %148, %cst_116 {dimension_numbers = #tpu.dot_dimension_numbers<[1], [0], [0], [1], [0, 0, 1, 1], [], []>} : vector<1x64xf32>, vector<64x10xf32>, vector<1x10xf32> -> vector<1x10xf32>
    %c0_117 = arith.constant 0 : index
    %c0_118 = arith.constant 0 : index
    %150 = vector.load %arg15[%c0_117, %c0_118] : memref<1x10xf32, #tpu.memory_space<vmem>>, vector<1x10xf32>
    %151 = arith.addf %149, %150 : vector<1x10xf32>
    %c0_119 = arith.constant 0 : index
    %c0_120 = arith.constant 0 : index
    %c0_121 = arith.constant 0 : index
    %152 = vector.load %arg16[%c0_119, %c0_120, %c0_121] : memref<1x1x10xf32, #tpu.memory_space<vmem>>, vector<1x1x10xf32>
    %153 = vector.shape_cast %152 : vector<1x1x10xf32> to vector<1x10xf32>
    %154 = vector.shape_cast %151 : vector<1x10xf32> to vector<1x1x10xf32>
    tpu.vector_store %arg16[%c0_119, %c0_120, %c0_121], %154 {strides = array<i32>} : memref<1x1x10xf32, #tpu.memory_space<vmem>>, vector<1x1x10xf32>,
    return
  }
  func.func @transform_0(%arg0: i32) -> (i32, i32, i32, i32) {
    %c0_i32 = arith.constant 0 : i32
    %c0_i32_0 = arith.constant 0 : i32
    %c0_i32_1 = arith.constant 0 : i32
    %c0_i32_2 = arith.constant 0 : i32
    return %arg0, %c0_i32, %c0_i32_0, %c0_i32_1 : i32, i32, i32, i32
  }
  func.func @transform_1(%arg0: i32) -> (i32, i32, i32, i32) {
    %c0_i32 = arith.constant 0 : i32
    %c0_i32_0 = arith.constant 0 : i32
    %c0_i32_1 = arith.constant 0 : i32
    %c0_i32_2 = arith.constant 0 : i32
    %c0_i32_3 = arith.constant 0 : i32
    return %c0_i32, %c0_i32_0, %c0_i32_1, %c0_i32_2 : i32, i32, i32, i32
  }
  func.func @transform_2(%arg0: i32) -> (i32, i32) {
    %c0_i32 = arith.constant 0 : i32
    %c0_i32_0 = arith.constant 0 : i32
    %c0_i32_1 = arith.constant 0 : i32
    return %c0_i32, %c0_i32_0 : i32, i32
  }
  func.func @transform_3(%arg0: i32) -> (i32, i32, i32, i32) {
    %c0_i32 = arith.constant 0 : i32
    %c0_i32_0 = arith.constant 0 : i32
    %c0_i32_1 = arith.constant 0 : i32
    %c0_i32_2 = arith.constant 0 : i32
    %c0_i32_3 = arith.constant 0 : i32
    return %c0_i32, %c0_i32_0, %c0_i32_1, %c0_i32_2 : i32, i32, i32, i32
  }
  func.func @transform_4(%arg0: i32) -> (i32, i32) {
    %c0_i32 = arith.constant 0 : i32
    %c0_i32_0 = arith.constant 0 : i32
    %c0_i32_1 = arith.constant 0 : i32
    return %c0_i32, %c0_i32_0 : i32, i32
  }
  func.func @transform_5(%arg0: i32) -> (i32, i32, i32, i32) {
    %c0_i32 = arith.constant 0 : i32
    %c0_i32_0 = arith.constant 0 : i32
    %c0_i32_1 = arith.constant 0 : i32
    %c0_i32_2 = arith.constant 0 : i32
    %c0_i32_3 = arith.constant 0 : i32
    return %c0_i32, %c0_i32_0, %c0_i32_1, %c0_i32_2 : i32, i32, i32, i32
  }
  func.func @transform_6(%arg0: i32) -> (i32, i32) {
    %c0_i32 = arith.constant 0 : i32
    %c0_i32_0 = arith.constant 0 : i32
    %c0_i32_1 = arith.constant 0 : i32
    return %c0_i32, %c0_i32_0 : i32, i32
  }
  func.func @transform_7(%arg0: i32) -> (i32, i32, i32, i32) {
    %c0_i32 = arith.constant 0 : i32
    %c0_i32_0 = arith.constant 0 : i32
    %c0_i32_1 = arith.constant 0 : i32
    %c0_i32_2 = arith.constant 0 : i32
    %c0_i32_3 = arith.constant 0 : i32
    return %c0_i32, %c0_i32_0, %c0_i32_1, %c0_i32_2 : i32, i32, i32, i32
  }
  func.func @transform_8(%arg0: i32) -> (i32, i32) {
    %c0_i32 = arith.constant 0 : i32
    %c0_i32_0 = arith.constant 0 : i32
    %c0_i32_1 = arith.constant 0 : i32
    return %c0_i32, %c0_i32_0 : i32, i32
  }
  func.func @transform_9(%arg0: i32) -> (i32, i32, i32) {
    %c0_i32 = arith.constant 0 : i32
    %c0_i32_0 = arith.constant 0 : i32
    %c0_i32_1 = arith.constant 0 : i32
    %c0_i32_2 = arith.constant 0 : i32
    return %c0_i32, %c0_i32_0, %c0_i32_1 : i32, i32, i32
  }
  func.func @transform_10(%arg0: i32) -> (i32, i32) {
    %c0_i32 = arith.constant 0 : i32
    %c0_i32_0 = arith.constant 0 : i32
    %c0_i32_1 = arith.constant 0 : i32
    return %c0_i32, %c0_i32_0 : i32, i32
  }
  func.func @transform_11(%arg0: i32) -> (i32, i32) {
    %c0_i32 = arith.constant 0 : i32
    %c0_i32_0 = arith.constant 0 : i32
    %c0_i32_1 = arith.constant 0 : i32
    return %c0_i32, %c0_i32_0 : i32, i32
  }
  func.func @transform_12(%arg0: i32) -> (i32, i32) {
    %c0_i32 = arith.constant 0 : i32
    %c0_i32_0 = arith.constant 0 : i32
    %c0_i32_1 = arith.constant 0 : i32
    return %c0_i32, %c0_i32_0 : i32, i32
  }
  func.func @transform_13(%arg0: i32) -> (i32, i32) {
    %c0_i32 = arith.constant 0 : i32
    %c0_i32_0 = arith.constant 0 : i32
    %c0_i32_1 = arith.constant 0 : i32
    return %c0_i32, %c0_i32_0 : i32, i32
  }
  func.func @transform_14(%arg0: i32) -> (i32, i32) {
    %c0_i32 = arith.constant 0 : i32
    %c0_i32_0 = arith.constant 0 : i32
    %c0_i32_1 = arith.constant 0 : i32
    return %c0_i32, %c0_i32_0 : i32, i32
  }
  func.func @transform_15(%arg0: i32) -> (i32, i32, i32) {
    %c0_i32 = arith.constant 0 : i32
    %c0_i32_0 = arith.constant 0 : i32
    %c0_i32_1 = arith.constant 0 : i32
    return %arg0, %c0_i32, %c0_i32_0 : i32, i32, i32
  }
}

</mosaic_0001>

<bundles_post_ra>
// kernel: cnn_basic_forward.1
= control target key start
LH: loop header
LB: loop body
LE: loop exit
PB: predicated region body
PF: predicated region fallthrough
CT: control target
= control target key end

     0   :  { %s15860_s0 = inlined_call_operand.vmem [shape: f32[2,32,32,3], index: 0, kind: input, shape index: {}]   ;;  %s15861_s1 = inlined_call_operand.vmem [shape: f32[3,3,3,32], index: 1, kind: input, shape index: {}]   ;;  %s15862_s2 = inlined_call_operand.vmem [shape: f32[1,32], index: 2, kind: input, shape index: {}]   ;;  %s15863_s3 = inlined_call_operand.vmem [shape: f32[3,3,32,64], index: 3, kind: input, shape index: {}]   ;;  %s15864_s4 = inlined_call_operand.vmem [shape: f32[1,64], index: 4, kind: input, shape index: {}]   ;;  %s15865_s5 = inlined_call_operand.vmem [shape: f32[3,3,64,128], index: 5, kind: input, shape index: {}]   ;;  %s15866_s6 = inlined_call_operand.vmem [shape: f32[1,128], index: 6, kind: input, shape index: {}]   ;;  %s15867_s7 = inlined_call_operand.vmem [shape: f32[3,3,128,64], index: 7, kind: input, shape index: {}]   ;;  %s15868_s8 = inlined_call_operand.vmem [shape: f32[1,64], index: 8, kind: input, shape index: {}]   ;;  %s15869_s9 = inlined_call_operand.vmem [shape: f32[25,64,128], index: 9, kind: input, shape index: {}]   ;;  %s15870_s10 = inlined_call_operand.vmem [shape: f32[1,128], index: 10, kind: input, shape index: {}]   ;;  %s15871_s11 = inlined_call_operand.vmem [shape: f32[128,64], index: 11, kind: input, shape index: {}]   ;;  %s15872_s12 = inlined_call_operand.vmem [shape: f32[1,64], index: 12, kind: input, shape index: {}]   ;;  %s15873_s13 = inlined_call_operand.vmem [shape: f32[64,10], index: 13, kind: input, shape index: {}]   ;;  %s15874_s14 = inlined_call_operand.vmem [shape: f32[1,10], index: 14, kind: input, shape index: {}]   ;;  %s15875_s15 = inlined_call_operand.hbm [shape: f32[2,1,10], index: 15, kind: output, shape index: {}]  }
   0x1   :  { %15881 = sst [smem:[#allocation13_spill]] %s15860_s0 }
   0x2   :  { %15882 = sst [smem:[#allocation14_spill]] %s15861_s1 }
   0x3   :  { %15883 = sst [smem:[#allocation15_spill]] %s15862_s2 }
   0x4   :  { %20 = vsyncpa [#allocation7], 0 }
   0x5   :  { %22 = vsyncpa [#allocation7 + $0x1], 0  ;;  %s13369_s18 = smov 0   ;;  %s13371_s19 = smov 0  }
   0x6   :  { %s13373_s20 = smov 0   ;;  %s13375_s21 = smov 0  }
   0x7 LB: > { %15884 = sst [smem:[#allocation9_spill]] %s13262_s20  ;;  %s13390_s22 = sadd.s32 4294967295, %s13266_s21   ;;  %s13266_s21 = sphi %s13375_s21, %s15895_s21   ;;  %s13262_s20 = sphi %s13373_s20, %s15897_s20   ;;  %s13258_s19 = sphi %s13371_s19, %s15899_s19   ;;  %s13254_s18 = sphi %s13369_s18, %s15898_s18  }
   0x8   : > { %s8550_s23 = sadd.s32 4294967294, %s13266_s21   ;;  %s13394_s24 = sadd.s32 1, %s13266_s21  }
   0x9   : > { %15885 = sst [smem:[#allocation10_spill]] %s13394_s24  ;;  %s355_s25 = sadd.s32 1, %s13262_s20 }
   0xa   : > { %s352_s26 = ssub.s32 %s13266_s21, %s13394_s24  ;;  %p365_p0 = scmp.ne.s32.totalorder %s13262_s20, %s13258_s19 }
   0xb   : > { %p353_p1 = scmp.eq.s32.totalorder %s352_s26, 0  ;;  %p366_p2 = scmp.eq.s32.totalorder %s13390_s22, 1 }
   0xc   : > { %p371_p3 = scmp.ne.s32.totalorder %s13258_s19, %s13254_s18  ;;  %p372_p4 = scmp.eq.s32.totalorder %s8550_s23, 1 }
   0xd   : > { %s13405_s27 = scalar_select %p353_p1, %s13262_s20, %s355_s25  }
   0xe   : > { %p13407_p5 = por %p366_p2, %p365_p0  ;;  %p13411_p6 = por %p372_p4, %p371_p3 }
   0xf   : > { %15886 = sst [smem:[#allocation11_spill]] %s13405_s27  ;;  %p8553_p7 = scmp.ge.s32.totalorder %s13266_s21, 1 }
  0x10   : > { %s15888_s29 = scalar_select %p13411_p6, 1, 0 }
  0x11   : > { %p440_p8 = scmp.lt.s32.totalorder %s13266_s21, 3 }
  0x12   : > { %15889 = sst [smem:[#allocation12_spill]] %s15888_s29 }
  0x13   : > { %p441_p9 = pnand %p8553_p7, %p440_p8 }
  0x14   : > { %s15880_s30 = sand.u32 (!%p441_p9), 1, %s13258_s19   ;;  %p487_p10 = scmp.lt.s32.totalorder (!%p441_p9), %s13390_s22, 1 }
  0x15   : > { %444 = sbr.rel (%p441_p9) target bundleno = 2340 (0x924), region = 80  ;;  %s15890_s2 = sld [smem:[#allocation15_spill]] (!%p441_p9) }
  0x16   : > { %s15891_s0 = sld [smem:[#allocation13_spill]] (!%p441_p9)  ;;  %s13432_s24 = scalar_lea.vmem (!%p441_p9), [#allocation6], %s15880_s30 }
  0x17   : > { %s13434_s29 = smov (!%p441_p9), 0  }
  0x1b   : > { %v13422_v0 = vld [vmem:[%s15890_s2] ss:$0 sm:$0xff] (!%p441_p9) }
  0x1c   : > { %s488_s23 = scalar_select %p487_p10, %s13390_s22, 1 }
  0x1e   : > { %s9202_s25 = sshll.u32 %s488_s23, 10 }
  0x1f   : > { %s13428_s20 = scalar_lea.vmem %s15891_s0, %s9202_s25 }
  0x20 LB: >> { %s15892_s1 = sld [smem:[#allocation14_spill]]  ;;  %vm529_vm0 = vcmask 1042432   ;;  %s8556_s17 = sshll.u32 %s13270_s29, 5  ;;  %vm512_vm1 = vcmask 1046528   ;;  %vm520_vm2 = vcmask 23552   ;;  %vm716_vm3 = vcmask 1045504   ;;  %s13270_s29 = sphi %s13434_s29, %s498_s29  }
  0x21   : >> { %s13463_s27 = scalar_lea.vmem %s13428_s20, %s8556_s17  ;;  %vm1497_vm4 = vcmask 261120   ;;  %vm1501_vm5 = vcmask 259072   ;;  %s498_s29 = sadd.s32 1, %s13270_s29  }
  0x22   : >> { %v501_v5 = vld [vmem:[%s13463_s27] sm:$0xff]  ;;  %v13469_v6 = vld [vmem:[%s13463_s27 + $0x8] sm:$0xff]  ;;  %v503_v12 = vld [vmem:[%s13463_s27 + $0x10] sm:$0xff]  ;;  %p495_p11 = scmp.ge.s32.totalorder %s498_s29, 30  }
  0x23   : >> { %v13472_v7 = vld [vmem:[%s13463_s27 + $0x20] sm:$0xff]  ;;  %v513_v8 = vrot.slane %v501_v5, 1  ;;  %v514_v9 = vrot.slane %v13469_v6, 1  ;;  %v13476_v10 = vld [vmem:[%s13463_s27 + $0x28] sm:$0xff]  ;;  %v13481_v13 = vld [vmem:[%s13463_s27 + $0x30] sm:$0xff]  ;;  %v516_v15 = vrot.slane %v503_v12, 1 }
  0x24   : >> { %v939_v11 = vrot.slane %v13472_v7, 1  ;;  %v940_v14 = vrot.slane %v13476_v10, 1  ;;  %v942_v16 = vrot.slane %v13481_v13, 1  ;;  %v13486_v17 = vld [vmem:[%s13463_s27 + $0x18] sm:$0xff]  ;;  %v1048_v20 = vrot.slane %v13472_v7, 2  ;;  %v8598_v40 = vld [vmem:[%s13463_s27 + $0x40] sm:$0xff] }
  0x25   : >> { %v515_v18 = vsel %vm512_vm1, %v513_v8, %v514_v9  ;;  %v518_v19 = vrot.slane %v13486_v17, 1  ;;  %v1049_v21 = vrot.slane %v13476_v10, 2  ;;  %v517_v23 = vsel %vm512_vm1, %v514_v9, %v516_v15  ;;  %v13511_v29 = vld [vmem:[%s13463_s27 + $0x38] sm:$0xff]  ;;  %v8599_v43 = vld [vmem:[%s13463_s27 + $0x48] sm:$0xff]  ;;  %v8600_v47 = vld [vmem:[%s13463_s27 + $0x50] sm:$0xff]  ;;  %s13615_s23 = smov (%p495_p11), 0  }
  0x26   : >> { %v8557_v1 = vld [vmem:[%s15892_s1 + $0x4] sm:$0x7]  ;;  %v13445_v2 = vld [vmem:[%s15892_s1 + $0x10] sm:$0x7]  ;;  %v505_v3 = vld [vmem:[%s15892_s1] sm:$0x7]  ;;  %10067 = vmatprep.mubr.msk.f32.mxu1 %vm520_vm2, %v515_v18  ;;  %v941_v22 = vsel %vm512_vm1, %v939_v11, %v940_v14  ;;  %v943_v24 = vsel %vm512_vm1, %v940_v14, %v942_v16 }
  0x27   : >> { %10065 = vmatprep.subr.msk.mxu1 %vm529_vm0, %v8557_v1  ;;  %10097 = vmatprep.subr.msk.mxu0 %vm529_vm0, %v13445_v2  ;;  %v8591_v4 = vld [vmem:[%s15892_s1 + $0x14] sm:$0x7]  ;;  %v519_v25 = vsel %vm512_vm1, %v516_v15, %v518_v19  ;;  %v8568_v26 = vld [vmem:[%s15892_s1 + $0x8] sm:$0x7]  ;;  %v1050_v27 = vsel %vm716_vm3, %v1048_v20, %v1049_v21  ;;  %v8602_v28 = vld [vmem:[%s15892_s1 + $0x18] sm:$0x7] }
  0x28   : >> { %10066 = vmatpush3.msk.msra.mxu1 %vm529_vm0, %v8557_v1  ;;  %10098 = vmatpush3.msk.msra.mxu0 %vm529_vm0, %v13445_v2  ;;  %v1051_v30 = vrot.slane %v13481_v13, 2  ;;  %v1053_v31 = vrot.slane %v13511_v29, 2  ;;  %v717_v33 = vrot.slane %v501_v5, 2  ;;  %v718_v34 = vrot.slane %v13469_v6, 2  ;;  %v8579_v36 = vld [vmem:[%s15892_s1 + $0xc] sm:$0x7] }
  0x29   : >> { %10073 = vmatprep.subr.msk.mxu1 %vm529_vm0, %v505_v3  ;;  %10105 = vmatprep.subr.msk.mxu0 %vm529_vm0, %v8591_v4  ;;  %v720_v37 = vrot.slane %v503_v12, 2  ;;  %v8608_v38 = vld [vmem:[%s15892_s1 + $0x1c] sm:$0x7]  ;;  %v722_v41 = vrot.slane %v13486_v17, 2  ;;  %v1270_v44 = vrot.slane %v8598_v40, 1  ;;  %v1271_v46 = vrot.slane %v8599_v43, 1 }
  0x2a   : >> { %10099 = vmatprep.mubr.msk.f32.mxu0 %vm520_vm2, %v941_v22  ;;  %10068 = vmatmul.mubr.msk.f32.vlgmr.msra.gmra.mrb[0].mxu1 %vm520_vm2, %v517_v23  ;;  %v1052_v32 = vsel %vm716_vm3, %v1049_v21, %v1051_v30  ;;  %v1054_v35 = vsel %vm716_vm3, %v1051_v30, %v1053_v31  ;;  %v719_v39 = vsel %vm716_vm3, %v717_v33, %v718_v34  ;;  %v8614_v48 = vld [vmem:[%s15892_s1 + $0x20] sm:$0x7]  ;;  %v1273_v49 = vrot.slane %v8600_v47, 1  ;;  %v8601_v50 = vld [vmem:[%s13463_s27 + $0x58] sm:$0xff]  ;;  %s1496_s27 = scalar_lea.vmem [#allocation2], %s8556_s17 }
  0x2b   : >> { %10074 = vmatpush3.msk.msra.mxu1 %vm529_vm0, %v505_v3  ;;  %10100 = vmatmul.mubr.msk.f32.vlgmr.msra.gmra.mrb[0].mxu0 %vm520_vm2, %v943_v24  ;;  %v721_v42 = vsel %vm716_vm3, %v718_v34, %v720_v37  ;;  %v723_v45 = vsel %vm716_vm3, %v720_v37, %v722_v41  ;;  %v1272_v51 = vsel %vm512_vm1, %v1270_v44, %v1271_v46  ;;  %v1275_v52 = vrot.slane %v8601_v50, 1 }
  0x2c   : >> { %10106 = vmatpush3.msk.msra.mxu0 %vm529_vm0, %v8591_v4  ;;  %10070 = vmatprep.mubr.msk.f32.mxu1 %vm520_vm2, %v519_v25  ;;  %v1274_v53 = vsel %vm512_vm1, %v1271_v46, %v1273_v49  ;;  %v944_v54 = vrot.slane %v13511_v29, 1  ;;  %v1379_v55 = vrot.slane %v8598_v40, 2  ;;  %v1380_v56 = vrot.slane %v8599_v43, 2 }
  0x2d   : >> { %10081 = vmatprep.subr.msk.mxu1 %vm529_vm0, %v8568_v26  ;;  %10107 = vmatprep.mubr.msk.f32.mxu0 %vm520_vm2, %v1050_v27  ;;  %v1276_v57 = vsel %vm512_vm1, %v1273_v49, %v1275_v52  ;;  %v1382_v58 = vrot.slane %v8600_v47, 2  ;;  %v1384_v60 = vrot.slane %v8601_v50, 2 }
  0x2e   : >> { %10071 = vmatmul.mubr.msk.f32.gmra.mrb[2].mxu1 %vm520_vm2, %v518_v19  ;;  %10113 = vmatprep.subr.msk.mxu0 %vm529_vm0, %v8602_v28  ;;  %v945_v59 = vsel %vm512_vm1, %v942_v16, %v944_v54  ;;  %v1381_v61 = vsel %vm716_vm3, %v1379_v55, %v1380_v56 }
  0x2f   : >> { %10075 = vmatprep.mubr.msk.f32.mxu1 %vm520_vm2, %v501_v5  ;;  %v1383_v62 = vsel %vm716_vm3, %v1380_v56, %v1382_v58  ;;  %v1385_v63 = vsel %vm716_vm3, %v1382_v58, %v1384_v60 }
  0x32   : >> { %10076 = vmatmul.mubr.msk.f32.vlgmr.msra.gmra.mrb[0].mxu1 %vm520_vm2, %v13469_v6 }
  0x33   : >> { %10082 = vmatpush3.msk.msra.mxu1 %vm529_vm0, %v8568_v26  ;;  %10108 = vmatmul.mubr.msk.f32.vlgmr.msra.gmra.mrb[0].mxu0 %vm520_vm2, %v1052_v32 }
  0x34   : >> { %10114 = vmatpush3.msk.msra.mxu0 %vm529_vm0, %v8602_v28  ;;  %10078 = vmatprep.mubr.msk.f32.mxu1 %vm520_vm2, %v503_v12 }
  0x35   : >> { %10110 = vmatprep.mubr.msk.f32.mxu0 %vm520_vm2, %v1054_v35  ;;  %10089 = vmatprep.subr.msk.mxu1 %vm529_vm0, %v8579_v36 }
  0x36   : >> { %10079 = vmatmul.mubr.msk.f32.gmra.mrb[2].mxu1 %vm520_vm2, %v13486_v17  ;;  %10121 = vmatprep.subr.msk.mxu0 %vm529_vm0, %v8608_v38  ;;  %v13613_v17 = vld [vmem:[%s15864_s4] ss:$0 sm:$0xff] (%p495_p11) }
  0x37   : >> { %10111 = vmatmul.mubr.msk.f32.gmra.mrb[2].mxu0 %vm520_vm2, %v1053_v31  ;;  %10083 = vmatprep.mubr.msk.f32.mxu1 %vm520_vm2, %v719_v39 }
  0x38   : >> { %10115 = vmatprep.mubr.msk.f32.mxu0 %vm520_vm2, %v8598_v40 }
  0x3a   : >> { %10084 = vmatmul.mubr.msk.f32.vlgmr.msra.gmra.mrb[0].mxu1 %vm520_vm2, %v721_v42 }
  0x3b   : >> { %10090 = vmatpush3.msk.msra.mxu1 %vm529_vm0, %v8579_v36  ;;  %10116 = vmatmul.mubr.msk.f32.vlgmr.msra.gmra.mrb[0].mxu0 %vm520_vm2, %v8599_v43 }
  0x3c   : >> { %10122 = vmatpush3.msk.msra.mxu0 %vm529_vm0, %v8608_v38  ;;  %10086 = vmatprep.mubr.msk.f32.mxu1 %vm520_vm2, %v723_v45 }
  0x3d   : >> { %10118 = vmatprep.mubr.msk.f32.mxu0 %vm520_vm2, %v8600_v47  ;;  %12919 = vmatprep.subr.msk.mxu1 %vm529_vm0, %v13445_v2 }
  0x3e   : >> { %10087 = vmatmul.mubr.msk.f32.gmra.mrb[2].mxu1 %vm520_vm2, %v722_v41  ;;  %10129 = vmatprep.subr.msk.mxu0 %vm529_vm0, %v8614_v48 }
  0x3f   : >> { %10119 = vmatmul.mubr.msk.f32.gmra.mrb[2].mxu0 %vm520_vm2, %v8601_v50  ;;  %10091 = vmatprep.mubr.msk.f32.mxu1 %vm520_vm2, %v13472_v7 }
  0x40   : >> { %10123 = vmatprep.mubr.msk.f32.mxu0 %vm520_vm2, %v1272_v51 }
  0x42   : >> { %10092 = vmatmul.mubr.msk.f32.vlgmr.msra.gmra.mrb[0].mxu1 %vm520_vm2, %v13476_v10 }
  0x43   : >> { %12920 = vmatpush3.msk.msra.mxu1 %vm529_vm0, %v13445_v2  ;;  %10124 = vmatmul.mubr.msk.f32.vlgmr.msra.gmra.mrb[0].mxu0 %vm520_vm2, %v1274_v53 }
  0x44   : >> { %10130 = vmatpush3.msk.msra.mxu0 %vm529_vm0, %v8614_v48  ;;  %10094 = vmatprep.mubr.msk.f32.mxu1 %vm520_vm2, %v13481_v13 }
  0x45   : >> { %10126 = vmatprep.mubr.msk.f32.mxu0 %vm520_vm2, %v1276_v57 }
  0x46   : >> { %10095 = vmatmul.mubr.msk.f32.gmra.mrb[2].mxu1 %vm520_vm2, %v13511_v29 }
  0x47   : >> { %10127 = vmatmul.mubr.msk.f32.gmra.mrb[2].mxu0 %vm520_vm2, %v1275_v52  ;;  %10102 = vmatprep.mubr.msk.f32.mxu1 %vm520_vm2, %v945_v59 }
  0x48   : >> { %10131 = vmatprep.mubr.msk.f32.mxu0 %vm520_vm2, %v1381_v61 }
  0x4b   : >> { %10132 = vmatmul.mubr.msk.f32.vlgmr.msra.gmra.mrb[0].mxu0 %vm520_vm2, %v1383_v62 }
  0x4c   : >> { %10134 = vmatprep.mubr.msk.f32.mxu0 %vm520_vm2, %v1385_v63 }
  0x4e   : >> { %10103 = vmatmul.mubr.msk.f32.vlgmr.msra.gmra.mrb[2].mxu1 %vm520_vm2, %v944_v54 }
  0x4f   : >> { %10135 = vmatmul.mubr.msk.f32.gmra.mrb[2].mxu0 %vm520_vm2, %v1384_v60 }
 0x115   : >> { %v10093_v1 = vpop.f32.mrb[0].mxu1 }
 0x116   : >> { %v914_v2 = vpop.f32.mrb[1].mxu1 }
 0x11e   : >> { %v10133_v3 = vpop.f32.mrb[0].mxu0 }
 0x11f   : >> { %v12921_v4 = vadd.f32 %v10133_v3, %v10093_v1  ;;  %v1463_v5 = vpop.f32.mrb[1].mxu0 }
 0x120   : >> { %v12922_v6 = vadd.f32 %v1463_v5, %v914_v2 }
 0x121   : >> { %v1493_v7 = vadd.f32 %v12921_v4, %v13422_v0  ;;  %v10104_v8 = vpop.f32.mrb[2].mxu1 }
 0x122   : >> { %v1492_v9 = vadd.f32 %v12922_v6, %v13422_v0  ;;  %v10136_v10 = vpop.f32.mrb[2].mxu0  ;;  %v1033_v11 = vpop.f32.mrb[3].mxu1  ;;  %497 = sbr.rel (!%p495_p11) target bundleno = 32 (0x20), region = 221 }
 0x123   : >> { %1499 = vst.msk [vmem:[%s1496_s27 + $0x8] sm:$0xff] %vm1497_vm4, %v1493_v7  ;;  %v12923_v12 = vadd.f32 %v10136_v10, %v10104_v8  ;;  %v1473_v13 = vpop.f32.mrb[3].mxu0 }
 0x124   : >> { %1498 = vst.msk [vmem:[%s1496_s27] sm:$0xff] %vm1497_vm4, %v1492_v9  ;;  %v12924_v14 = vadd.f32 %v1473_v13, %v1033_v11 }
 0x125   : >> { %v1495_v15 = vadd.f32 %v12923_v12, %v13422_v0 }
 0x126   : >> { %v1494_v16 = vadd.f32 %v12924_v14, %v13422_v0 }
 0x127   : >> { %1502 = vst.msk [vmem:[%s1496_s27 + $0x18] sm:$0x3f] %vm1501_vm5, %v1495_v15 }
 0x128   : >> { %1500 = vst.msk [vmem:[%s1496_s27 + $0x10] sm:$0xff] %vm1497_vm4, %v1494_v16 }
 0x129 LB: >> { %v8623_v18 = vld [vmem:[%s15863_s3 + $0x20] sm:$0xff]  ;;  %v8624_v0 = vld [vmem:[%s15863_s3 + $0x28] sm:$0xff]  ;;  %v8625_v19 = vld [vmem:[%s15863_s3 + $0x30] sm:$0xff]  ;;  %s9203_s0 = sshll.u32 %s13274_s23, 6  ;;  %vm3442_vm6 = vcmask 517120   ;;  %vm3555_vm7 = vcmask 1041409   ;;  %s13274_s23 = sphi %s13615_s23, %s1509_s23  }
 0x12a   : >> { %v11719_v20 = vpack.c.bf16 %v8624_v0, %v8623_v18  ;;  %v8626_v21 = vld [vmem:[%s15863_s3 + $0x38] sm:$0xff]  ;;  %v1517_v23 = vld [vmem:[%s15863_s3] sm:$0xff]  ;;  %v1518_v24 = vld [vmem:[%s15863_s3 + $0x8] sm:$0xff]  ;;  %s13639_s29 = scalar_lea.vmem [#allocation2], %s9203_s0  ;;  %vm3557_vm8 = vcmask 1042434   ;;  %vm3559_vm9 = vcmask 1043459  }
 0x12b   : >> { %v11723_v22 = vpack.c.bf16 %v8626_v21, %v8625_v19  ;;  %v11727_v36 = vpack.c.bf16 %v1518_v24, %v1517_v23  ;;  %v1519_v42 = vld [vmem:[%s15863_s3 + $0x10] sm:$0xff]  ;;  %v1520_v43 = vld [vmem:[%s15863_s3 + $0x18] sm:$0xff]  ;;  %v8635_v51 = vld [vmem:[%s15863_s3 + $0x40] sm:$0xff]  ;;  %vm3561_vm10 = vcmask 1044484   ;;  %vm3563_vm11 = vcmask 1045509   ;;  %s8746_s30 = sshll.u32 %s13274_s23, 4 }
 0x12c   : >> { %11720 = vmatprep.subr.bf16.mxu0 %v11719_v20  ;;  %11792 = vmatprep.subr.bf16.mxu1 %v11719_v20  ;;  %v11731_v50 = vpack.c.bf16 %v1520_v43, %v1519_v42  ;;  %v8636_v52 = vld [vmem:[%s15863_s3 + $0x48] sm:$0xff]  ;;  %v8637_v54 = vld [vmem:[%s15863_s3 + $0x50] sm:$0xff]  ;;  %v8638_v55 = vld [vmem:[%s15863_s3 + $0x58] sm:$0xff]  ;;  %vm3565_vm12 = vcmask 1046534   ;;  %vm3567_vm13 = vcmask 1047559   ;;  %vm3578_vm14 = vcmask 523264  }
 0x12d   : >> { %11722 = vmatpush3.bf16.msra.mxu0 %v11719_v20  ;;  %11794 = vmatpush3.bf16.msra.mxu1 %v11719_v20  ;;  %v11735_v53 = vpack.c.bf16 %v8636_v52, %v8635_v51  ;;  %v11739_v58 = vpack.c.bf16 %v8638_v55, %v8637_v54  ;;  %v8649_v61 = vld [vmem:[%s15863_s3 + $0x60] sm:$0xff]  ;;  %v8650_v62 = vld [vmem:[%s15863_s3 + $0x68] sm:$0xff]  ;;  %v8651_v7 = vld [vmem:[%s15863_s3 + $0x70] sm:$0xff]  ;;  %s3577_s25 = scalar_lea.vmem [#allocation3], %s8746_s30  ;;  %vm3580_vm15 = vcmask 521216   ;;  %s1509_s23 = sadd.s32 1, %s13274_s23  }
 0x12e   : >> { %11724 = vmatprep.subr.bf16.mxu0 %v11723_v22  ;;  %11796 = vmatprep.subr.bf16.mxu1 %v11723_v22  ;;  %v11743_v4 = vpack.c.bf16 %v8650_v62, %v8649_v61  ;;  %v8652_v8 = vld [vmem:[%s15863_s3 + $0x78] sm:$0xff]  ;;  %v8657_v14 = vld [vmem:[%s15863_s3 + $0x80] sm:$0xff]  ;;  %v8658_v15 = vld [vmem:[%s15863_s3 + $0x88] sm:$0xff]  ;;  %p1506_p12 = scmp.ge.s32.totalorder %s1509_s23, 14  }
 0x12f   : >> { %v13642_v25 = vld [vmem:[%s13639_s29] sm:$0xff]  ;;  %v13645_v26 = vld [vmem:[%s13639_s29 + $0x8] sm:$0xff]  ;;  %v13657_v32 = vld [vmem:[%s13639_s29 + $0x10] sm:$0xff]  ;;  %v11747_v13 = vpack.c.bf16 %v8652_v8, %v8651_v7  ;;  %v11751_v18 = vpack.c.bf16 %v8658_v15, %v8657_v14  ;;  %s14040_s0 = smov (%p1506_p12), 0  }
 0x130   : >> { %v13648_v27 = vld [vmem:[%s13639_s29 + $0x20] sm:$0xff]  ;;  %v1531_v28 = vrot.slane %v13642_v25, 1  ;;  %v1532_v29 = vrot.slane %v13645_v26, 1  ;;  %v13653_v30 = vld [vmem:[%s13639_s29 + $0x28] sm:$0xff]  ;;  %v13660_v33 = vld [vmem:[%s13639_s29 + $0x30] sm:$0xff]  ;;  %v1534_v35 = vrot.slane %v13657_v32, 1 }
 0x131   : >> { %v1953_v31 = vrot.slane %v13648_v27, 1  ;;  %v1954_v34 = vrot.slane %v13653_v30, 1  ;;  %v1956_v37 = vrot.slane %v13660_v33, 1  ;;  %v13666_v38 = vld [vmem:[%s13639_s29 + $0x18] sm:$0x3f]  ;;  %11726 = vmatpush3.bf16.msra.mxu0 %v11723_v22  ;;  %11798 = vmatpush3.bf16.msra.mxu1 %v11723_v22  ;;  %v1731_v56 = vrot.slane %v13642_v25, 2 }
 0x132   : >> { %v1533_v39 = vsel %vm512_vm1, %v1531_v28, %v1532_v29  ;;  %v1536_v40 = vrot.slane %v13666_v38, 1  ;;  %v13671_v41 = vld [vmem:[%s13639_s29 + $0x38] sm:$0x3f]  ;;  %v1535_v45 = vsel %vm512_vm1, %v1532_v29, %v1534_v35  ;;  %11728 = vmatprep.subr.bf16.mxu0 %v11727_v36  ;;  %11800 = vmatprep.subr.bf16.mxu1 %v11727_v36  ;;  %v1732_v57 = vrot.slane %v13645_v26, 2  ;;  %v13785_v16 = vld [vmem:[%s13639_s29 + $0x40] sm:$0xff]  ;;  %v8659_v0 = vld [vmem:[%s15863_s3 + $0x90] sm:$0xff] }
 0x133   : >> { %v13680_v44 = vsel %vm512_vm1, %v1953_v31, %v1954_v34  ;;  %v13684_v46 = vsel %vm512_vm1, %v1954_v34, %v1956_v37  ;;  %v13687_v47 = vrot.slane %v13671_v41, 1  ;;  %10145 = vmatprep.mubr.msk.f32.mxu0 %vm1497_vm4, %v1533_v39  ;;  %v2062_v59 = vrot.slane %v13648_v27, 2  ;;  %v8660_v19 = vld [vmem:[%s15863_s3 + $0x98] sm:$0xff]  ;;  %v13797_v20 = vld [vmem:[%s13639_s29 + $0x48] sm:$0xff]  ;;  %v13804_v21 = vld [vmem:[%s13639_s29 + $0x50] sm:$0xff] }
 0x134   : >> { %10271 = vmatprep.mubr.msk.f32.mxu1 %vm1497_vm4, %v13680_v44  ;;  %v1537_v48 = vsel %vm512_vm1, %v1534_v35, %v1536_v40  ;;  %10146 = vmatmul.mubr.msk.f32.vlgmr.msra.gmra.mrb[0].mxu0 %vm1497_vm4, %v1535_v45  ;;  %v2063_v60 = vrot.slane %v13653_v30, 2  ;;  %v1734_v63 = vrot.slane %v13657_v32, 2  ;;  %v2065_v1 = vrot.slane %v13660_v33, 2  ;;  %v13820_v28 = vld [vmem:[%s13639_s29 + $0x58] sm:$0x3f]  ;;  %v8679_v39 = vld [vmem:[%s15863_s3 + $0xc0] sm:$0xff] }
 0x135   : >> { %v13695_v49 = vsel %vm512_vm1, %v1956_v37, %v13687_v47  ;;  %10272 = vmatmul.mubr.msk.f32.vlgmr.msra.gmra.mrb[0].mxu1 %vm1497_vm4, %v13684_v46  ;;  %11730 = vmatpush3.bf16.msra.mxu0 %v11727_v36  ;;  %v1733_v2 = vsel %vm716_vm3, %v1731_v56, %v1732_v57  ;;  %v1736_v5 = vrot.slane %v13666_v38, 2  ;;  %v13748_v6 = vrot.slane %v13671_v41, 2  ;;  %v8681_v45 = vld [vmem:[%s15863_s3 + $0xd0] sm:$0xff]  ;;  %v8688_v51 = vld [vmem:[%s15863_s3 + $0xe8] sm:$0xff]  ;;  %v8730_v52 = vld [vmem:[%s13639_s29 + $0x60] sm:$0xff] }
 0x136   : >> { %11802 = vmatpush3.bf16.msra.mxu1 %v11727_v36  ;;  %10148 = vmatprep.mubr.msk.f32.mxu0 %vm1497_vm4, %v1537_v48  ;;  %v13744_v3 = vsel %vm716_vm3, %v2062_v59, %v2063_v60  ;;  %v1735_v9 = vsel %vm716_vm3, %v1732_v57, %v1734_v63  ;;  %v13762_v10 = vsel %vm716_vm3, %v2063_v60, %v2065_v1  ;;  %v2284_v23 = vrot.slane %v13785_v16, 1  ;;  %v8689_v54 = vld [vmem:[%s15863_s3 + $0xf0] sm:$0xff]  ;;  %v8690_v55 = vld [vmem:[%s15863_s3 + $0xf8] sm:$0xff]  ;;  %v8731_v56 = vld [vmem:[%s13639_s29 + $0x68] sm:$0xff] }
 0x137   : >> { %10274 = vmatprep.mubr.msk.f32.mxu1 %vm1497_vm4, %v13695_v49  ;;  %11732 = vmatprep.subr.bf16.mxu0 %v11731_v50  ;;  %v1737_v11 = vsel %vm716_vm3, %v1734_v63, %v1736_v5  ;;  %v13770_v12 = vsel %vm716_vm3, %v2065_v1, %v13748_v6  ;;  %v11755_v22 = vpack.c.bf16 %v8660_v19, %v8659_v0  ;;  %v2285_v24 = vrot.slane %v13797_v20, 1  ;;  %v8732_v57 = vld [vmem:[%s13639_s29 + $0x70] sm:$0xff]  ;;  %v8695_v61 = vld [vmem:[%s15863_s3 + $0x100] sm:$0xff]  ;;  %v8696_v62 = vld [vmem:[%s15863_s3 + $0x108] sm:$0xff] }
 0x138   : >> { %11804 = vmatprep.subr.bf16.mxu1 %v11731_v50  ;;  %10149 = vmatmul.mubr.msk.f32.gmra.mrb[2].mxu0 %vm1497_vm4, %v1536_v40  ;;  %v13830_v31 = vrot.slane %v13820_v28, 1  ;;  %v2393_v37 = vrot.slane %v13785_v16, 2  ;;  %v8680_v40 = vld [vmem:[%s15863_s3 + $0xc8] sm:$0xff]  ;;  %v3145_v59 = vrot.slane %v8730_v52, 1  ;;  %v3146_v60 = vrot.slane %v8731_v56, 1 }
 0x139   : >> { %10275 = vmatmul.mubr.msk.f32.gmra.mrb[2].mxu1 %vm1497_vm4, %v13687_v47  ;;  %11734 = vmatpush3.bf16.msra.mxu0 %v11731_v50  ;;  %v13827_v29 = vsel %vm512_vm1, %v2284_v23, %v2285_v24  ;;  %v11767_v43 = vpack.c.bf16 %v8680_v40, %v8679_v39  ;;  %v3148_v63 = vrot.slane %v8732_v57, 1  ;;  %v8733_v1 = vld [vmem:[%s13639_s29 + $0x78] sm:$0x3f]  ;;  %v3373_v19 = vlaneseq }
 0x13a   : >> { %11806 = vmatpush3.bf16.msra.mxu1 %v11731_v50  ;;  %10159 = vmatprep.mubr.msk.f32.mxu0 %vm1497_vm4, %v13642_v25  ;;  %v8665_v25 = vld [vmem:[%s15863_s3 + $0xa0] sm:$0xff] }
 0x13b   : >> { %10285 = vmatprep.mubr.msk.f32.mxu1 %vm1497_vm4, %v13648_v27  ;;  %11736 = vmatprep.subr.bf16.mxu0 %v11735_v53  ;;  %v8687_v50 = vld [vmem:[%s15863_s3 + $0xe0] sm:$0xff]  ;;  %v3149_v7 = vsel %vm512_vm1, %v3146_v60, %v3148_v63 }
 0x13c   : >> { %11808 = vmatprep.subr.bf16.mxu1 %v11735_v53  ;;  %10160 = vmatmul.mubr.msk.f32.vlgmr.msra.gmra.mrb[0].mxu0 %vm1497_vm4, %v13645_v26  ;;  %v8666_v26 = vld [vmem:[%s15863_s3 + $0xa8] sm:$0xff] }
 0x13d   : >> { %10286 = vmatmul.mubr.msk.f32.vlgmr.msra.gmra.mrb[0].mxu1 %vm1497_vm4, %v13653_v30  ;;  %11738 = vmatpush3.bf16.msra.mxu0 %v11735_v53 }
 0x13e   : >> { %11810 = vmatpush3.bf16.msra.mxu1 %v11735_v53  ;;  %10162 = vmatprep.mubr.msk.f32.mxu0 %vm1497_vm4, %v13657_v32  ;;  %v8667_v32 = vld [vmem:[%s15863_s3 + $0xb0] sm:$0xff]  ;;  %v11775_v53 = vpack.c.bf16 %v8688_v51, %v8687_v50 }
 0x13f   : >> { %10288 = vmatprep.mubr.msk.f32.mxu1 %vm1497_vm4, %v13660_v33  ;;  %11740 = vmatprep.subr.bf16.mxu0 %v11739_v58 }
 0x140   : >> { %11812 = vmatprep.subr.bf16.mxu1 %v11739_v58  ;;  %10163 = vmatmul.mubr.msk.f32.gmra.mrb[2].mxu0 %vm1497_vm4, %v13666_v38  ;;  %v2394_v38 = vrot.slane %v13797_v20, 2 }
 0x141   : >> { %10289 = vmatmul.mubr.msk.f32.gmra.mrb[2].mxu1 %vm1497_vm4, %v13671_v41  ;;  %11742 = vmatpush3.bf16.msra.mxu0 %v11739_v58 }
 0x142   : >> { %11814 = vmatpush3.bf16.msra.mxu1 %v11739_v58  ;;  %10173 = vmatprep.mubr.msk.f32.mxu0 %vm1497_vm4, %v1733_v2  ;;  %v13871_v42 = vsel %vm716_vm3, %v2393_v37, %v2394_v38  ;;  %v11779_v58 = vpack.c.bf16 %v8690_v55, %v8689_v54  ;;  %v3147_v2 = vsel %vm512_vm1, %v3145_v59, %v3146_v60 }
 0x143   : >> { %10299 = vmatprep.mubr.msk.f32.mxu1 %vm1497_vm4, %v13744_v3  ;;  %11744 = vmatprep.subr.bf16.mxu0 %v11743_v4 }
 0x144   : >> { %11816 = vmatprep.subr.bf16.mxu1 %v11743_v4  ;;  %10174 = vmatmul.mubr.msk.f32.vlgmr.msra.gmra.mrb[0].mxu0 %vm1497_vm4, %v1735_v9 }
 0x145   : >> { %10300 = vmatmul.mubr.msk.f32.vlgmr.msra.gmra.mrb[0].mxu1 %vm1497_vm4, %v13762_v10  ;;  %11746 = vmatpush3.bf16.msra.mxu0 %v11743_v4 }
 0x146   : >> { %11818 = vmatpush3.bf16.msra.mxu1 %v11743_v4  ;;  %10176 = vmatprep.mubr.msk.f32.mxu0 %vm1497_vm4, %v1737_v11  ;;  %v3150_v4 = vrot.slane %v8733_v1, 1  ;;  %v3250_v11 = vrot.slane %v8731_v56, 2 }
 0x147   : >> { %10302 = vmatprep.mubr.msk.f32.mxu1 %vm1497_vm4, %v13770_v12  ;;  %11748 = vmatprep.subr.bf16.mxu0 %v11747_v13 }
 0x148   : >> { %11820 = vmatprep.subr.bf16.mxu1 %v11747_v13  ;;  %10177 = vmatmul.mubr.msk.f32.gmra.mrb[2].mxu0 %vm1497_vm4, %v1736_v5  ;;  %v8697_v5 = vld [vmem:[%s15863_s3 + $0x110] sm:$0xff]  ;;  %v3151_v8 = vsel %vm512_vm1, %v3148_v63, %v3150_v4 }
 0x149   : >> { %10303 = vmatmul.mubr.msk.f32.gmra.mrb[2].mxu1 %vm1497_vm4, %v13748_v6  ;;  %11750 = vmatpush3.bf16.msra.mxu0 %v11747_v13 }
 0x14a   : >> { %11822 = vmatpush3.bf16.msra.mxu1 %v11747_v13  ;;  %10187 = vmatprep.mubr.msk.f32.mxu0 %vm1497_vm4, %v13648_v27  ;;  %v2287_v27 = vrot.slane %v13804_v21, 1  ;;  %v3254_v13 = vrot.slane %v8733_v1, 2 }
 0x14b   : >> { %10313 = vmatprep.mubr.msk.f32.mxu1 %vm1497_vm4, %v13785_v16  ;;  %11752 = vmatprep.subr.bf16.mxu0 %v11751_v18 }
 0x14c   : >> { %11824 = vmatprep.subr.bf16.mxu1 %v11751_v18  ;;  %10188 = vmatmul.mubr.msk.f32.vlgmr.msra.gmra.mrb[0].mxu0 %vm1497_vm4, %v13653_v30  ;;  %v11759_v30 = vpack.c.bf16 %v8666_v26, %v8665_v25  ;;  %v13843_v34 = vsel %vm512_vm1, %v2285_v24, %v2287_v27  ;;  %v13851_v35 = vsel %vm512_vm1, %v2287_v27, %v13830_v31 }
 0x14d   : >> { %10314 = vmatmul.mubr.msk.f32.vlgmr.msra.gmra.mrb[0].mxu1 %vm1497_vm4, %v13797_v20  ;;  %11754 = vmatpush3.bf16.msra.mxu0 %v11751_v18 }
 0x14e   : >> { %11826 = vmatpush3.bf16.msra.mxu1 %v11751_v18  ;;  %10190 = vmatprep.mubr.msk.f32.mxu0 %vm1497_vm4, %v13660_v33  ;;  %v8668_v33 = vld [vmem:[%s15863_s3 + $0xb8] sm:$0xff]  ;;  %v13284_v18 = vmov 1983009808  }
 0x14f   : >> { %10316 = vmatprep.mubr.msk.f32.mxu1 %vm1497_vm4, %v13804_v21  ;;  %11756 = vmatprep.subr.bf16.mxu0 %v11755_v22  ;;  %v11763_v36 = vpack.c.bf16 %v8668_v33, %v8667_v32  ;;  %v3371_v0 = vunpack.c.l.s4 %v13284_v18 }
 0x150   : >> { %11828 = vmatprep.subr.bf16.mxu1 %v11755_v22  ;;  %10191 = vmatmul.mubr.msk.f32.gmra.mrb[2].mxu0 %vm1497_vm4, %v13671_v41  ;;  %v2396_v41 = vrot.slane %v13804_v21, 2 }
 0x151   : >> { %10317 = vmatmul.mubr.msk.f32.gmra.mrb[2].mxu1 %vm1497_vm4, %v13820_v28  ;;  %11758 = vmatpush3.bf16.msra.mxu0 %v11755_v22 }
 0x152   : >> { %11830 = vmatpush3.bf16.msra.mxu1 %v11755_v22  ;;  %10201 = vmatprep.mubr.msk.f32.mxu0 %vm1497_vm4, %v13680_v44  ;;  %v13874_v44 = vrot.slane %v13820_v28, 2  ;;  %v13887_v48 = vsel %vm716_vm3, %v2394_v38, %v2396_v41 }
 0x153   : >> { %10327 = vmatprep.mubr.msk.f32.mxu1 %vm1497_vm4, %v13827_v29  ;;  %11760 = vmatprep.subr.bf16.mxu0 %v11759_v30 }
 0x154   : >> { %11832 = vmatprep.subr.bf16.mxu1 %v11759_v30  ;;  %10202 = vmatmul.mubr.msk.f32.vlgmr.msra.gmra.mrb[0].mxu0 %vm1497_vm4, %v13684_v46  ;;  %v8682_v46 = vld [vmem:[%s15863_s3 + $0xd8] sm:$0xff] }
 0x155   : >> { %10328 = vmatmul.mubr.msk.f32.vlgmr.msra.gmra.mrb[0].mxu1 %vm1497_vm4, %v13843_v34  ;;  %11762 = vmatpush3.bf16.msra.mxu0 %v11759_v30 }
 0x156   : >> { %11834 = vmatpush3.bf16.msra.mxu1 %v11759_v30  ;;  %10204 = vmatprep.mubr.msk.f32.mxu0 %vm1497_vm4, %v13695_v49  ;;  %v11771_v49 = vpack.c.bf16 %v8682_v46, %v8681_v45 }
 0x157   : >> { %10330 = vmatprep.mubr.msk.f32.mxu1 %vm1497_vm4, %v13851_v35  ;;  %11764 = vmatprep.subr.bf16.mxu0 %v11763_v36 }
 0x158   : >> { %11836 = vmatprep.subr.bf16.mxu1 %v11763_v36  ;;  %10205 = vmatmul.mubr.msk.f32.gmra.mrb[2].mxu0 %vm1497_vm4, %v13687_v47  ;;  %v13895_v47 = vsel %vm716_vm3, %v2396_v41, %v13874_v44 }
 0x159   : >> { %10331 = vmatmul.mubr.msk.f32.gmra.mrb[2].mxu1 %vm1497_vm4, %v13830_v31  ;;  %11766 = vmatpush3.bf16.msra.mxu0 %v11763_v36 }
 0x15a   : >> { %11838 = vmatpush3.bf16.msra.mxu1 %v11763_v36  ;;  %10215 = vmatprep.mubr.msk.f32.mxu0 %vm1497_vm4, %v13744_v3  ;;  %v11783_v3 = vpack.c.bf16 %v8696_v62, %v8695_v61 }
 0x15b   : >> { %10341 = vmatprep.mubr.msk.f32.mxu1 %vm1497_vm4, %v13871_v42  ;;  %11768 = vmatprep.subr.bf16.mxu0 %v11767_v43 }
 0x15c   : >> { %11840 = vmatprep.subr.bf16.mxu1 %v11767_v43  ;;  %10216 = vmatmul.mubr.msk.f32.vlgmr.msra.gmra.mrb[0].mxu0 %vm1497_vm4, %v13762_v10  ;;  %v3249_v10 = vrot.slane %v8730_v52, 2 }
 0x15d   : >> { %10342 = vmatmul.mubr.msk.f32.vlgmr.msra.gmra.mrb[0].mxu1 %vm1497_vm4, %v13887_v48  ;;  %11770 = vmatpush3.bf16.msra.mxu0 %v11767_v43 }
 0x15e   : >> { %11842 = vmatpush3.bf16.msra.mxu1 %v11767_v43  ;;  %10218 = vmatprep.mubr.msk.f32.mxu0 %vm1497_vm4, %v13770_v12  ;;  %v3252_v12 = vrot.slane %v8732_v57, 2  ;;  %v3251_v14 = vsel %vm716_vm3, %v3249_v10, %v3250_v11 }
 0x15f   : >> { %10344 = vmatprep.mubr.msk.f32.mxu1 %vm1497_vm4, %v13895_v47  ;;  %11772 = vmatprep.subr.bf16.mxu0 %v11771_v49 }
 0x160   : >> { %11844 = vmatprep.subr.bf16.mxu1 %v11771_v49  ;;  %10219 = vmatmul.mubr.msk.f32.gmra.mrb[2].mxu0 %vm1497_vm4, %v13748_v6  ;;  %v8698_v6 = vld [vmem:[%s15863_s3 + $0x118] sm:$0xff]  ;;  %v3253_v15 = vsel %vm716_vm3, %v3250_v11, %v3252_v12 }
 0x161   : >> { %10345 = vmatmul.mubr.msk.f32.gmra.mrb[2].mxu1 %vm1497_vm4, %v13874_v44  ;;  %11774 = vmatpush3.bf16.msra.mxu0 %v11771_v49  ;;  %v11787_v9 = vpack.c.bf16 %v8698_v6, %v8697_v5 }
 0x162   : >> { %11846 = vmatpush3.bf16.msra.mxu1 %v11771_v49  ;;  %10229 = vmatprep.mubr.msk.f32.mxu0 %vm1497_vm4, %v13785_v16  ;;  %v3255_v16 = vsel %vm716_vm3, %v3252_v12, %v3254_v13 }
 0x163   : >> { %10355 = vmatprep.mubr.msk.f32.mxu1 %vm1497_vm4, %v8730_v52  ;;  %11776 = vmatprep.subr.bf16.mxu0 %v11775_v53 }
 0x164   : >> { %11848 = vmatprep.subr.bf16.mxu1 %v11775_v53  ;;  %10230 = vmatmul.mubr.msk.f32.vlgmr.msra.gmra.mrb[0].mxu0 %vm1497_vm4, %v13797_v20  ;;  %v3372_v20 = vunpack.c.0.s8 %v3371_v0 }
 0x165   : >> { %10356 = vmatmul.mubr.msk.f32.vlgmr.msra.gmra.mrb[0].mxu1 %vm1497_vm4, %v8731_v56  ;;  %11778 = vmatpush3.bf16.msra.mxu0 %v11775_v53 }
 0x166   : >> { %11850 = vmatpush3.bf16.msra.mxu1 %v11775_v53  ;;  %10232 = vmatprep.mubr.msk.f32.mxu0 %vm1497_vm4, %v13804_v21  ;;  %v3374_v21 = vshrl.u32 %v3373_v19, 7 }
 0x167   : >> { %10358 = vmatprep.mubr.msk.f32.mxu1 %vm1497_vm4, %v8732_v57  ;;  %11780 = vmatprep.subr.bf16.mxu0 %v11779_v58 }
 0x168   : >> { %11852 = vmatprep.subr.bf16.mxu1 %v11779_v58  ;;  %10233 = vmatmul.mubr.msk.f32.gmra.mrb[2].mxu0 %vm1497_vm4, %v13820_v28  ;;  %v13983_v32 = vsub.s32 %v3372_v20, %v3374_v21 }
 0x169   : >> { %10359 = vmatmul.mubr.msk.f32.gmra.mrb[2].mxu1 %vm1497_vm4, %v8733_v1  ;;  %11782 = vmatpush3.bf16.msra.mxu0 %v11779_v58 }
 0x16a   : >> { %11854 = vmatpush3.bf16.msra.mxu1 %v11779_v58  ;;  %10243 = vmatprep.mubr.msk.f32.mxu0 %vm1497_vm4, %v13827_v29 }
 0x16b   : >> { %10369 = vmatprep.mubr.msk.f32.mxu1 %vm1497_vm4, %v3147_v2  ;;  %11784 = vmatprep.subr.bf16.mxu0 %v11783_v3 }
 0x16c   : >> { %11856 = vmatprep.subr.bf16.mxu1 %v11783_v3  ;;  %10244 = vmatmul.mubr.msk.f32.vlgmr.msra.gmra.mrb[0].mxu0 %vm1497_vm4, %v13843_v34 }
 0x16d   : >> { %10370 = vmatmul.mubr.msk.f32.vlgmr.msra.gmra.mrb[0].mxu1 %vm1497_vm4, %v3149_v7  ;;  %11786 = vmatpush3.bf16.msra.mxu0 %v11783_v3 }
 0x16e   : >> { %11858 = vmatpush3.bf16.msra.mxu1 %v11783_v3  ;;  %10246 = vmatprep.mubr.msk.f32.mxu0 %vm1497_vm4, %v13851_v35 }
 0x16f   : >> { %10372 = vmatprep.mubr.msk.f32.mxu1 %vm1497_vm4, %v3151_v8  ;;  %11788 = vmatprep.subr.bf16.mxu0 %v11787_v9 }
 0x170   : >> { %11860 = vmatprep.subr.bf16.mxu1 %v11787_v9  ;;  %10247 = vmatmul.mubr.msk.f32.gmra.mrb[2].mxu0 %vm1497_vm4, %v13830_v31 }
 0x171   : >> { %10373 = vmatmul.mubr.msk.f32.gmra.mrb[2].mxu1 %vm1497_vm4, %v3150_v4  ;;  %11790 = vmatpush3.bf16.msra.mxu0 %v11787_v9 }
 0x172   : >> { %11862 = vmatpush3.bf16.msra.mxu1 %v11787_v9  ;;  %10257 = vmatprep.mubr.msk.f32.mxu0 %vm1497_vm4, %v13871_v42 }
 0x173   : >> { %10383 = vmatprep.mubr.msk.f32.mxu1 %vm1497_vm4, %v3251_v14 }
 0x174   : >> { %10258 = vmatmul.mubr.msk.f32.vlgmr.msra.gmra.mrb[0].mxu0 %vm1497_vm4, %v13887_v48 }
 0x175   : >> { %10384 = vmatmul.mubr.msk.f32.vlgmr.msra.gmra.mrb[0].mxu1 %vm1497_vm4, %v3253_v15  ;;  %10260 = vmatprep.mubr.msk.f32.mxu0 %vm1497_vm4, %v13895_v47 }
 0x176   : >> { %10386 = vmatprep.mubr.msk.f32.mxu1 %vm1497_vm4, %v3255_v16 }
 0x178   : >> { %10261 = vmatmul.mubr.msk.f32.gmra.mrb[2].mxu0 %vm1497_vm4, %v13874_v44 }
 0x179   : >> { %10387 = vmatmul.mubr.msk.f32.gmra.mrb[2].mxu1 %vm1497_vm4, %v3254_v13 }
 0x247   : >> { %v10259_v22 = vpop.f32.mrb[0].mxu0 }
 0x248   : >> { %v10385_v23 = vpop.f32.mrb[0].mxu1  ;;  %v2504_v24 = vadd.f32 %v10259_v22, %v13613_v17  ;;  %v2474_v26 = vpop.f32.mrb[1].mxu0 }
 0x249   : >> { %v3354_v25 = vadd.f32 %v10385_v23, %v13613_v17  ;;  %v3330_v27 = vpop.f32.mrb[1].mxu1  ;;  %v2503_v28 = vadd.f32 %v13613_v17, %v2474_v26 }
 0x24a   : >> { %v3353_v29 = vadd.f32 %v13613_v17, %v3330_v27  ;;  %v2508_v30 = vmax.f32 %v2504_v24, 0.0 }
 0x24b   : >> { %v3358_v31 = vmax.f32 %v3354_v25, 0.0  ;;  %v2507_v33 = vmax.f32 %v2503_v28, 0.0  ;;  %v10262_v35 = vpop.f32.mrb[2].mxu0 }
 0x24c   : >> { %v3357_v34 = vmax.f32 %v3353_v29, 0.0  ;;  %v10388_v36 = vpop.f32.mrb[2].mxu1  ;;  %v2506_v38 = vadd.f32 %v10262_v35, %v13613_v17  ;;  %v2484_v40 = vpop.f32.mrb[3].mxu0 }
 0x24d   : >> { %v3362_v37 = vmax.f32 %v2508_v30, %v3358_v31  ;;  %v3356_v39 = vadd.f32 %v10388_v36, %v13613_v17  ;;  %v3340_v41 = vpop.f32.mrb[3].mxu1  ;;  %v13988_v43 = vadd.f32 %v13613_v17, %v2484_v40 }
 0x24e   : >> { %v3361_v42 = vmax.f32 %v2507_v33, %v3357_v34  ;;  %v2510_v46 = vmax.f32 %v2506_v38, 0.0  ;;  %v13994_v51 = vadd.f32 %v13613_v17, %v3340_v41 }
 0x24f   : >> { %v3386_v44 = vcombine.high %v3362_v37, %v3362_v37  ;;  %v3393_v45 = vrot.slane %v3362_v37, %v13983_v32  ;;  %v3360_v48 = vmax.f32 %v3356_v39, 0.0  ;;  %v2509_v50 = vmax.f32 %v13988_v43, 0.0 }
 0x250   : >> { %v3369_v47 = vcombine.high %v3361_v42, %v3361_v42  ;;  %v3376_v49 = vrot.slane %v3361_v42, %v13983_v32  ;;  %v3359_v33 = vmax.f32 %v13994_v51, 0.0 }
 0x251   : >> { %v3400_v52 = vrot.slane %v3386_v44, %v13983_v32  ;;  %v3401_v53 = vcombine.high %v3393_v45, %v3393_v45  ;;  %v3471_v54 = vsel %vm3442_vm6, %v3393_v45, -inf  ;;  %v3364_v55 = vmax.f32 %v2510_v46, %v3360_v48 }
 0x252   : >> { %v3472_v56 = vrot.slane %v3471_v54, 4  ;;  %v3383_v57 = vrot.slane %v3369_v47, %v13983_v32  ;;  %v3384_v58 = vcombine.high %v3376_v49, %v3376_v49  ;;  %v3443_v59 = vsel %vm3442_vm6, %v3376_v49, -inf }
 0x253   : >> { %v3402_v60 = vcombine.high %v3400_v52, %v3400_v52  ;;  %v3478_v61 = vsel %vm3442_vm6, %v3401_v53, -inf  ;;  %v3485_v62 = vsel %vm3442_vm6, %v3400_v52, -inf  ;;  %v3444_v63 = vrot.slane %v3443_v59, 4 }
 0x254   : >> { %v3473_v1 = vmax.f32 %v3471_v54, %v3472_v56  ;;  %v3479_v2 = vrot.slane %v3478_v61, 4  ;;  %v3486_v3 = vrot.slane %v3485_v62, 4  ;;  %v3385_v4 = vcombine.high %v3383_v57, %v3383_v57 }
 0x255   : >> { %v3492_v5 = vsel %vm3442_vm6, %v3402_v60, -inf  ;;  %v3445_v6 = vmax.f32 %v3443_v59, %v3444_v63  ;;  %v3450_v7 = vsel %vm3442_vm6, %v3384_v58, -inf  ;;  %v3457_v8 = vsel %vm3442_vm6, %v3383_v57, -inf }
 0x256   : >> { %v3474_v9 = vrot.slane %v3473_v1, 2  ;;  %v3480_v10 = vmax.f32 %v3478_v61, %v3479_v2  ;;  %v3487_v11 = vmax.f32 %v3485_v62, %v3486_v3  ;;  %v3493_v12 = vrot.slane %v3492_v5, 4 }
 0x257   : >> { %v3446_v13 = vrot.slane %v3445_v6, 2  ;;  %v3451_v14 = vrot.slane %v3450_v7, 4  ;;  %v3458_v15 = vrot.slane %v3457_v8, 4  ;;  %v3464_v16 = vsel %vm3442_vm6, %v3385_v4, -inf }
 0x258   : >> { %v3475_v18 = vmax.f32 %v3473_v1, %v3474_v9  ;;  %v3481_v0 = vrot.slane %v3480_v10, 2  ;;  %v3488_v19 = vrot.slane %v3487_v11, 2  ;;  %v3494_v20 = vmax.f32 %v3492_v5, %v3493_v12 }
 0x259   : >> { %v3447_v21 = vmax.f32 %v3445_v6, %v3446_v13  ;;  %v3452_v22 = vmax.f32 %v3450_v7, %v3451_v14  ;;  %v3459_v23 = vmax.f32 %v3457_v8, %v3458_v15  ;;  %v3465_v24 = vrot.slane %v3464_v16, 4 }
 0x25a   : >> { %v3476_v25 = vrot.slane %v3475_v18, 1  ;;  %v3482_v26 = vmax.f32 %v3480_v10, %v3481_v0  ;;  %v3489_v27 = vmax.f32 %v3487_v11, %v3488_v19  ;;  %v3495_v28 = vrot.slane %v3494_v20, 2 }
 0x25b   : >> { %v3453_v29 = vrot.slane %v3452_v22, 2  ;;  %v3460_v30 = vrot.slane %v3459_v23, 2  ;;  %v3466_v31 = vmax.f32 %v3464_v16, %v3465_v24  ;;  %v3448_v35 = vrot.slane %v3447_v21, 1 }
 0x25c   : >> { %v3483_v34 = vrot.slane %v3482_v26, 1  ;;  %v3477_v39 = vmax.f32 %v3475_v18, %v3476_v25  ;;  %v3490_v40 = vrot.slane %v3489_v27, 1  ;;  %v3496_v41 = vmax.f32 %v3494_v20, %v3495_v28 }
 0x25d   : >> { %v3454_v36 = vmax.f32 %v3452_v22, %v3453_v29  ;;  %v3461_v37 = vmax.f32 %v3459_v23, %v3460_v30  ;;  %v3467_v38 = vrot.slane %v3466_v31, 2  ;;  %v3426_v42 = vrot.slane %v3364_v55, %v13983_v32 }
 0x25e   : >> { %v3363_v48 = vmax.f32 %v2509_v50, %v3359_v33  ;;  %v3484_v47 = vmax.f32 %v3482_v26, %v3483_v34  ;;  %v3449_v49 = vmax.f32 %v3447_v21, %v3448_v35  ;;  %v3491_v58 = vmax.f32 %v3489_v27, %v3490_v40 }
 0x25f   : >> { %v3455_v44 = vrot.slane %v3454_v36, 1  ;;  %v3462_v45 = vrot.slane %v3461_v37, 1  ;;  %v3468_v46 = vmax.f32 %v3466_v31, %v3467_v38  ;;  %v3427_v51 = vcombine.high %v3426_v42, %v3426_v42 }
 0x260   : >> { %v3527_v52 = vsel %vm3442_vm6, %v3426_v42, -inf  ;;  %v3403_v55 = vcombine.high %v3363_v48, %v3363_v48  ;;  %v3410_v60 = vrot.slane %v3363_v48, %v13983_v32  ;;  %v3497_v61 = vrot.slane %v3496_v41, 1 }
 0x261   : >> { %v3456_v53 = vmax.f32 %v3454_v36, %v3455_v44  ;;  %v3463_v54 = vmax.f32 %v3461_v37, %v3462_v45  ;;  %v3469_v56 = vrot.slane %v3468_v46, 1  ;;  %v3528_v57 = vrot.slane %v3527_v52, 4 }
 0x262   : >> { %v3534_v59 = vsel %vm3442_vm6, %v3427_v51, -inf  ;;  %v3417_v1 = vrot.slane %v3403_v55, %v13983_v32  ;;  %v3418_v2 = vcombine.high %v3410_v60, %v3410_v60  ;;  %v3499_v3 = vsel %vm3442_vm6, %v3410_v60, -inf }
 0x263   : >> { %v3470_v62 = vmax.f32 %v3468_v46, %v3469_v56  ;;  %v3556_v43 = vsel %vm3555_vm7, %v3456_v53, %v3449_v49  ;;  %v3535_v50 = vrot.slane %v3534_v59, 4  ;;  %v3529_v5 = vmax.f32 %v3527_v52, %v3528_v57  ;;  %v14038_v57 = vld [vmem:[%s15866_s6] ss:$0 sm:$0xff] (%p1506_p12) }
 0x264   : >> { %v3558_v63 = vsel %vm3557_vm8, %v3463_v54, %v3556_v43  ;;  %v3500_v7 = vrot.slane %v3499_v3, 4  ;;  %v3419_v9 = vcombine.high %v3417_v1, %v3417_v1  ;;  %v3506_v10 = vsel %vm3442_vm6, %v3418_v2, -inf }
 0x265   : >> { %v3560_v4 = vsel %vm3559_vm9, %v3470_v62, %v3558_v63  ;;  %v3536_v6 = vmax.f32 %v3534_v59, %v3535_v50  ;;  %v3513_v11 = vsel %vm3442_vm6, %v3417_v1, -inf  ;;  %v3498_v12 = vmax.f32 %v3496_v41, %v3497_v61 }
 0x266   : >> { %v3562_v8 = vsel %vm3561_vm10, %v3477_v39, %v3560_v4  ;;  %v3501_v14 = vmax.f32 %v3499_v3, %v3500_v7  ;;  %v3507_v16 = vrot.slane %v3506_v10, 4  ;;  %v3514_v18 = vrot.slane %v3513_v11, 4 }
 0x267   : >> { %v3564_v13 = vsel %vm3563_vm11, %v3484_v47, %v3562_v8  ;;  %v3520_v0 = vsel %vm3442_vm6, %v3419_v9, -inf  ;;  %v3530_v20 = vrot.slane %v3529_v5, 2  ;;  %v3537_v21 = vrot.slane %v3536_v6, 2 }
 0x268   : >> { %v3566_v15 = vsel %vm3565_vm12, %v3491_v58, %v3564_v13  ;;  %v3502_v22 = vrot.slane %v3501_v14, 2  ;;  %v3508_v23 = vmax.f32 %v3506_v10, %v3507_v16  ;;  %v3515_v24 = vmax.f32 %v3513_v11, %v3514_v18 }
 0x269   : >> { %v3568_v19 = vsel %vm3567_vm13, %v3498_v12, %v3566_v15  ;;  %v3521_v25 = vrot.slane %v3520_v0, 4  ;;  %v3531_v30 = vmax.f32 %v3529_v5, %v3530_v20  ;;  %v3538_v31 = vmax.f32 %v3536_v6, %v3537_v21 }
 0x26a   : >> { %3579 = vst.msk [vmem:[%s3577_s25] sm:$0xff] %vm3578_vm14, %v3568_v19  ;;  %v3503_v26 = vmax.f32 %v3501_v14, %v3502_v22  ;;  %v3509_v27 = vrot.slane %v3508_v23, 2  ;;  %v3516_v28 = vrot.slane %v3515_v24, 2 }
 0x26b   : >> { %v3522_v29 = vmax.f32 %v3520_v0, %v3521_v25  ;;  %v3532_v40 = vrot.slane %v3531_v30, 1  ;;  %v3539_v41 = vrot.slane %v3538_v31, 1 }
 0x26c   : >> { %v3504_v33 = vrot.slane %v3503_v26, 1  ;;  %v3510_v34 = vmax.f32 %v3508_v23, %v3509_v27  ;;  %v3517_v35 = vmax.f32 %v3515_v24, %v3516_v28 }
 0x26d   : >> { %v3523_v36 = vrot.slane %v3522_v29, 2  ;;  %v3533_v49 = vmax.f32 %v3531_v30, %v3532_v40  ;;  %v3540_v52 = vmax.f32 %v3538_v31, %v3539_v41 }
 0x26e   : >> { %v3511_v37 = vrot.slane %v3510_v34, 1  ;;  %v3518_v38 = vrot.slane %v3517_v35, 1  ;;  %v3505_v42 = vmax.f32 %v3503_v26, %v3504_v33 }
 0x26f   : >> { %v3524_v39 = vmax.f32 %v3522_v29, %v3523_v36 }
 0x270   : >> { %v3512_v44 = vmax.f32 %v3510_v34, %v3511_v37  ;;  %v3519_v45 = vmax.f32 %v3517_v35, %v3518_v38 }
 0x271   : >> { %v3525_v46 = vrot.slane %v3524_v39, 1 }
 0x272   : >> { %v3569_v47 = vsel %vm3555_vm7, %v3512_v44, %v3505_v42  ;;  %1508 = sbr.rel (!%p1506_p12) target bundleno = 297 (0x129), region = 232 }
 0x273   : >> { %v3526_v48 = vmax.f32 %v3524_v39, %v3525_v46  ;;  %v3570_v51 = vsel %vm3557_vm8, %v3519_v45, %v3569_v47 }
 0x275   : >> { %v3571_v53 = vsel %vm3559_vm9, %v3526_v48, %v3570_v51 }
 0x276   : >> { %v3572_v54 = vsel %vm3561_vm10, %v3533_v49, %v3571_v53 }
 0x277   : >> { %v3573_v56 = vsel %vm3563_vm11, %v3540_v52, %v3572_v54 }
 0x278   : >> { %3581 = vst.msk [vmem:[%s3577_s25 + $0x8] sm:$0x3f] %vm3580_vm15, %v3573_v56 }
 0x279 LB: >> { %v8748_v58 = vld [vmem:[%s15865_s5 + $0x40] sm:$0xff]  ;;  %v8749_v17 = vld [vmem:[%s15865_s5 + $0x48] sm:$0xff]  ;;  %v8750_v61 = vld [vmem:[%s15865_s5 + $0x50] sm:$0xff]  ;;  %s8747_s26 = sshll.u32 %s13278_s0, 4  ;;  %s3588_s0 = sadd.s32 1, %s13278_s0   ;;  %s13278_s0 = sphi %s14040_s0, %s3588_s0  }
 0x27a   : >> { %v8783_v59 = vld [vmem:[%s15865_s5 + $0x100] sm:$0xff]  ;;  %v11863_v55 = vpack.c.bf16 %v8749_v17, %v8748_v58  ;;  %v8784_v60 = vld [vmem:[%s15865_s5 + $0x108] sm:$0xff]  ;;  %v8751_v62 = vld [vmem:[%s15865_s5 + $0x58] sm:$0xff]  ;;  %s14084_s29 = scalar_lea.vmem [#allocation3], %s8747_s26  ;;  %s4443_s23 = scalar_lea.vmem [#allocation4], %s8747_s26 }
 0x27b   : >> { %v11927_v43 = vpack.c.bf16 %v8784_v60, %v8783_v59  ;;  %v11867_v50 = vpack.c.bf16 %v8751_v62, %v8750_v61  ;;  %v8785_v63 = vld [vmem:[%s15865_s5 + $0x110] sm:$0xff]  ;;  %v8786_v1 = vld [vmem:[%s15865_s5 + $0x118] sm:$0xff]  ;;  %v8752_v2 = vld [vmem:[%s15865_s5 + $0x60] sm:$0xff]  ;;  %p3585_p13 = scmp.ge.s32.totalorder %s3588_s0, 12  }
 0x27c   : >> { %11864 = vmatprep.subr.bf16.mxu1 %v11863_v55  ;;  %v11931_v3 = vpack.c.bf16 %v8786_v1, %v8785_v63  ;;  %v8753_v4 = vld [vmem:[%s15865_s5 + $0x68] sm:$0xff]  ;;  %v8787_v5 = vld [vmem:[%s15865_s5 + $0x120] sm:$0xff]  ;;  %v8754_v11 = vld [vmem:[%s15865_s5 + $0x70] sm:$0xff]  ;;  %s14338_s30 = smov (%p3585_p13), 0  }
 0x27d   : >> { %v8788_v6 = vld [vmem:[%s15865_s5 + $0x128] sm:$0xff]  ;;  %11928 = vmatprep.subr.bf16.mxu0 %v11927_v43  ;;  %11866 = vmatpush3.bf16.msra.mxu1 %v11863_v55  ;;  %v11871_v7 = vpack.c.bf16 %v8753_v4, %v8752_v2  ;;  %v8755_v12 = vld [vmem:[%s15865_s5 + $0x78] sm:$0xff]  ;;  %v8789_v16 = vld [vmem:[%s15865_s5 + $0x130] sm:$0xff] }
 0x27e   : >> { %11930 = vmatpush3.bf16.msra.mxu0 %v11927_v43  ;;  %11868 = vmatprep.subr.bf16.mxu1 %v11867_v50  ;;  %v11935_v10 = vpack.c.bf16 %v8788_v6, %v8787_v5  ;;  %v8790_v18 = vld [vmem:[%s15865_s5 + $0x138] sm:$0xff]  ;;  %v11875_v22 = vpack.c.bf16 %v8755_v12, %v8754_v11  ;;  %v3593_v24 = vld [vmem:[%s15865_s5] sm:$0xff]  ;;  %v3594_v25 = vld [vmem:[%s15865_s5 + $0x8] sm:$0xff] }
 0x27f   : >> { %v14087_v8 = vld [vmem:[%s14084_s29] sm:$0xff]  ;;  %v14090_v9 = vld [vmem:[%s14084_s29 + $0x8] sm:$0x3f]  ;;  %11932 = vmatprep.subr.bf16.mxu0 %v11931_v3  ;;  %v14101_v15 = vld [vmem:[%s14084_s29 + $0x10] sm:$0xff]  ;;  %v11939_v23 = vpack.c.bf16 %v8790_v18, %v8789_v16  ;;  %v11879_v29 = vpack.c.bf16 %v3594_v25, %v3593_v24 }
 0x280   : >> { %v3613_v13 = vrot.slane %v14087_v8, 1  ;;  %v3614_v14 = vrot.slane %v14090_v9, 1  ;;  %v14110_v0 = vld [vmem:[%s14084_s29 + $0x18] sm:$0x3f]  ;;  %v3975_v19 = vrot.slane %v14101_v15, 1  ;;  %v8793_v27 = vld [vmem:[%s15865_s5 + $0x140] sm:$0xff] }
 0x281   : >> { %11870 = vmatpush3.bf16.msra.mxu1 %v11867_v50  ;;  %v3976_v21 = vrot.slane %v14110_v0, 1  ;;  %v8794_v28 = vld [vmem:[%s15865_s5 + $0x148] sm:$0xff]  ;;  %v3595_v31 = vld [vmem:[%s15865_s5 + $0x10] sm:$0xff]  ;;  %v3596_v33 = vld [vmem:[%s15865_s5 + $0x18] sm:$0xff]  ;;  %v4068_v36 = vrot.slane %v14101_v15, 2  ;;  %v4069_v37 = vrot.slane %v14110_v0, 2 }
 0x282   : >> { %v3615_v20 = vsel %vm512_vm1, %v3613_v13, %v3614_v14  ;;  %11934 = vmatpush3.bf16.msra.mxu0 %v11931_v3  ;;  %11872 = vmatprep.subr.bf16.mxu1 %v11871_v7  ;;  %v11943_v30 = vpack.c.bf16 %v8794_v28, %v8793_v27  ;;  %v8795_v34 = vld [vmem:[%s15865_s5 + $0x150] sm:$0xff]  ;;  %v8796_v35 = vld [vmem:[%s15865_s5 + $0x158] sm:$0xff]  ;;  %v11883_v38 = vpack.c.bf16 %v3596_v33, %v3595_v31  ;;  %v3597_v40 = vld [vmem:[%s15865_s5 + $0x20] sm:$0xff]  ;;  %v3785_v63 = vrot.slane %v14087_v8, 2 }
 0x283   : >> { %11936 = vmatprep.subr.bf16.mxu0 %v11935_v10  ;;  %10405 = vmatprep.mubr.msk.f32.mxu1 %vm3578_vm14, %v3615_v20  ;;  %v3977_v26 = vsel %vm512_vm1, %v3975_v19, %v3976_v21  ;;  %v11947_v39 = vpack.c.bf16 %v8796_v35, %v8795_v34  ;;  %v3598_v41 = vld [vmem:[%s15865_s5 + $0x28] sm:$0xff]  ;;  %v8797_v42 = vld [vmem:[%s15865_s5 + $0x160] sm:$0xff]  ;;  %v4070_v45 = vsel %vm716_vm3, %v4068_v36, %v4069_v37  ;;  %v3599_v47 = vld [vmem:[%s15865_s5 + $0x30] sm:$0xff]  ;;  %v3786_v1 = vrot.slane %v14090_v9, 2 }
 0x284   : >> { %10481 = vmatprep.mubr.msk.f32.mxu0 %vm3578_vm14, %v3977_v26  ;;  %v8798_v44 = vld [vmem:[%s15865_s5 + $0x168] sm:$0xff]  ;;  %v11887_v46 = vpack.c.bf16 %v3598_v41, %v3597_v40  ;;  %v3600_v49 = vld [vmem:[%s15865_s5 + $0x38] sm:$0xff]  ;;  %v8799_v51 = vld [vmem:[%s15865_s5 + $0x170] sm:$0xff] }
 0x285   : >> { %11874 = vmatpush3.bf16.msra.mxu1 %v11871_v7  ;;  %v11951_v48 = vpack.c.bf16 %v8798_v44, %v8797_v42  ;;  %v8800_v52 = vld [vmem:[%s15865_s5 + $0x178] sm:$0xff]  ;;  %v11891_v53 = vpack.c.bf16 %v3600_v49, %v3599_v47  ;;  %v8760_v56 = vld [vmem:[%s15865_s5 + $0x80] sm:$0xff]  ;;  %v8761_v58 = vld [vmem:[%s15865_s5 + $0x88] sm:$0xff] }
 0x286   : >> { %11938 = vmatpush3.bf16.msra.mxu0 %v11935_v10  ;;  %11876 = vmatprep.subr.bf16.mxu1 %v11875_v22  ;;  %v11955_v54 = vpack.c.bf16 %v8800_v52, %v8799_v51  ;;  %v8806_v17 = vld [vmem:[%s15865_s5 + $0x180] sm:$0xff]  ;;  %v8807_v59 = vld [vmem:[%s15865_s5 + $0x188] sm:$0xff]  ;;  %v11895_v55 = vpack.c.bf16 %v8761_v58, %v8760_v56  ;;  %v8762_v61 = vld [vmem:[%s15865_s5 + $0x90] sm:$0xff] }
 0x287   : >> { %11940 = vmatprep.subr.bf16.mxu0 %v11939_v23  ;;  %v11959_v60 = vpack.c.bf16 %v8807_v59, %v8806_v17  ;;  %v8763_v62 = vld [vmem:[%s15865_s5 + $0x98] sm:$0xff]  ;;  %v8808_v43 = vld [vmem:[%s15865_s5 + $0x190] sm:$0xff]  ;;  %v8764_v4 = vld [vmem:[%s15865_s5 + $0xa0] sm:$0xff] }
 0x288   : >> { %v8809_v50 = vld [vmem:[%s15865_s5 + $0x198] sm:$0xff]  ;;  %v11899_v2 = vpack.c.bf16 %v8763_v62, %v8762_v61  ;;  %v8765_v5 = vld [vmem:[%s15865_s5 + $0xa8] sm:$0xff]  ;;  %v8810_v6 = vld [vmem:[%s15865_s5 + $0x1a0] sm:$0xff] }
 0x289   : >> { %11878 = vmatpush3.bf16.msra.mxu1 %v11875_v22  ;;  %v11963_v3 = vpack.c.bf16 %v8809_v50, %v8808_v43  ;;  %v8811_v7 = vld [vmem:[%s15865_s5 + $0x1a8] sm:$0xff]  ;;  %v14217_v10 = vld [vmem:[%s14084_s29 + $0x20] sm:$0xff]  ;;  %v11903_v11 = vpack.c.bf16 %v8765_v5, %v8764_v4  ;;  %v8766_v12 = vld [vmem:[%s15865_s5 + $0xb0] sm:$0xff] }
 0x28a   : >> { %11942 = vmatpush3.bf16.msra.mxu0 %v11939_v23  ;;  %11880 = vmatprep.subr.bf16.mxu1 %v11879_v29  ;;  %v8767_v13 = vld [vmem:[%s15865_s5 + $0xb8] sm:$0xff]  ;;  %v8773_v20 = vld [vmem:[%s15865_s5 + $0xc0] sm:$0xff]  ;;  %v8817_v23 = vld [vmem:[%s15865_s5 + $0x1c8] sm:$0xff]  ;;  %v4258_v31 = vrot.slane %v14217_v10, 1 }
 0x28b   : >> { %11944 = vmatprep.subr.bf16.mxu0 %v11943_v30  ;;  %v8813_v16 = vld [vmem:[%s15865_s5 + $0x1b8] sm:$0xff]  ;;  %v11907_v18 = vpack.c.bf16 %v8767_v13, %v8766_v12  ;;  %v8816_v22 = vld [vmem:[%s15865_s5 + $0x1c0] sm:$0xff]  ;;  %v8775_v26 = vld [vmem:[%s15865_s5 + $0xd0] sm:$0xff] }
 0x28c   : >> { %10406 = vmatmul.mubr.msk.f32.vlgmr.msra.gmra.mrb[0].mxu1 %vm3578_vm14, %v3614_v14  ;;  %v8812_v14 = vld [vmem:[%s15865_s5 + $0x1b0] sm:$0xff]  ;;  %v11975_v25 = vpack.c.bf16 %v8817_v23, %v8816_v22  ;;  %v8776_v27 = vld [vmem:[%s15865_s5 + $0xd8] sm:$0xff]  ;;  %v14253_v28 = vld [vmem:[%s14084_s29 + $0x28] sm:$0x3f] }
 0x28d   : >> { %11882 = vmatpush3.bf16.msra.mxu1 %v11879_v29  ;;  %10482 = vmatmul.mubr.msk.f32.vlgmr.msra.gmra.mrb[0].mxu0 %vm3578_vm14, %v3976_v21  ;;  %v11971_v19 = vpack.c.bf16 %v8813_v16, %v8812_v14  ;;  %v8774_v21 = vld [vmem:[%s15865_s5 + $0xc8] sm:$0xff]  ;;  %v8818_v29 = vld [vmem:[%s15865_s5 + $0x1d0] sm:$0xff]  ;;  %v4259_v33 = vrot.slane %v14253_v28, 1  ;;  %v11915_v34 = vpack.c.bf16 %v8776_v27, %v8775_v26  ;;  %v8777_v36 = vld [vmem:[%s15865_s5 + $0xe0] sm:$0xff] }
 0x28e   : >> { %11946 = vmatpush3.bf16.msra.mxu0 %v11943_v30  ;;  %11884 = vmatprep.subr.bf16.mxu1 %v11883_v38  ;;  %v11911_v24 = vpack.c.bf16 %v8774_v21, %v8773_v20  ;;  %v8819_v30 = vld [vmem:[%s15865_s5 + $0x1d8] sm:$0xff]  ;;  %v8779_v44 = vld [vmem:[%s15865_s5 + $0xf0] sm:$0xff]  ;;  %v8827_v51 = vld [vmem:[%s15865_s5 + $0x208] sm:$0xff] }
 0x28f   : >> { %11948 = vmatprep.subr.bf16.mxu0 %v11947_v39  ;;  %10424 = vmatprep.mubr.msk.f32.mxu1 %vm3578_vm14, %v14087_v8  ;;  %v3787_v8 = vsel %vm716_vm3, %v3785_v63, %v3786_v1  ;;  %v11979_v35 = vpack.c.bf16 %v8819_v30, %v8818_v29  ;;  %v4260_v40 = vsel %vm512_vm1, %v4258_v31, %v4259_v33  ;;  %v8828_v56 = vld [vmem:[%s15865_s5 + $0x210] sm:$0xff]  ;;  %v8829_v58 = vld [vmem:[%s15865_s5 + $0x218] sm:$0xff] }
 0x290   : >> { %10500 = vmatprep.mubr.msk.f32.mxu0 %vm3578_vm14, %v4070_v45  ;;  %v8780_v45 = vld [vmem:[%s15865_s5 + $0xf8] sm:$0xff]  ;;  %v11995_v17 = vpack.c.bf16 %v8829_v58, %v8828_v56  ;;  %v8832_v62 = vld [vmem:[%s15865_s5 + $0x230] sm:$0xff] }
 0x291   : >> { %11886 = vmatpush3.bf16.msra.mxu1 %v11883_v38  ;;  %v8820_v38 = vld [vmem:[%s15865_s5 + $0x1e0] sm:$0xff]  ;;  %v11923_v47 = vpack.c.bf16 %v8780_v45, %v8779_v44 }
 0x292   : >> { %11950 = vmatpush3.bf16.msra.mxu0 %v11947_v39  ;;  %11888 = vmatprep.subr.bf16.mxu1 %v11887_v46  ;;  %v8821_v39 = vld [vmem:[%s15865_s5 + $0x1e8] sm:$0xff] }
 0x293   : >> { %11952 = vmatprep.subr.bf16.mxu0 %v11951_v48  ;;  %v11983_v42 = vpack.c.bf16 %v8821_v39, %v8820_v38 }
 0x295   : >> { %11890 = vmatpush3.bf16.msra.mxu1 %v11887_v46  ;;  %v8822_v46 = vld [vmem:[%s15865_s5 + $0x1f0] sm:$0xff] }
 0x296   : >> { %11954 = vmatpush3.bf16.msra.mxu0 %v11951_v48  ;;  %11892 = vmatprep.subr.bf16.mxu1 %v11891_v53  ;;  %v8823_v48 = vld [vmem:[%s15865_s5 + $0x1f8] sm:$0xff] }
 0x297   : >> { %11956 = vmatprep.subr.bf16.mxu0 %v11955_v54  ;;  %v11987_v49 = vpack.c.bf16 %v8823_v48, %v8822_v46 }
 0x299   : >> { %11894 = vmatpush3.bf16.msra.mxu1 %v11891_v53  ;;  %v4351_v53 = vrot.slane %v14217_v10, 2 }
 0x29a   : >> { %11958 = vmatpush3.bf16.msra.mxu0 %v11955_v54  ;;  %11896 = vmatprep.subr.bf16.mxu1 %v11895_v55  ;;  %v4352_v54 = vrot.slane %v14253_v28, 2 }
 0x29b   : >> { %11960 = vmatprep.subr.bf16.mxu0 %v11959_v60 }
 0x29c   : >> { %10425 = vmatmul.mubr.msk.f32.vlgmr.msra.gmra.mrb[0].mxu1 %vm3578_vm14, %v14090_v9  ;;  %v11967_v9 = vpack.c.bf16 %v8811_v7, %v8810_v6  ;;  %v4353_v59 = vsel %vm716_vm3, %v4351_v53, %v4352_v54  ;;  %v14336_v7 = vld [vmem:[%s15868_s8] ss:$0 sm:$0xff] (%p3585_p13) }
 0x29d   : >> { %11898 = vmatpush3.bf16.msra.mxu1 %v11895_v55  ;;  %10501 = vmatmul.mubr.msk.f32.vlgmr.msra.gmra.mrb[0].mxu0 %vm3578_vm14, %v4069_v37  ;;  %v8778_v37 = vld [vmem:[%s15865_s5 + $0xe8] sm:$0xff]  ;;  %v8830_v55 = vld [vmem:[%s15865_s5 + $0x220] sm:$0xff] }
 0x29e   : >> { %11962 = vmatpush3.bf16.msra.mxu0 %v11959_v60  ;;  %11900 = vmatprep.subr.bf16.mxu1 %v11899_v2  ;;  %v11919_v41 = vpack.c.bf16 %v8778_v37, %v8777_v36  ;;  %v8831_v60 = vld [vmem:[%s15865_s5 + $0x228] sm:$0xff] }
 0x29f   : >> { %11964 = vmatprep.subr.bf16.mxu0 %v11963_v3  ;;  %10443 = vmatprep.mubr.msk.f32.mxu1 %vm3578_vm14, %v3787_v8  ;;  %v11999_v61 = vpack.c.bf16 %v8831_v60, %v8830_v55 }
 0x2a0   : >> { %10519 = vmatprep.mubr.msk.f32.mxu0 %vm3578_vm14, %v14217_v10 }
 0x2a1   : >> { %11902 = vmatpush3.bf16.msra.mxu1 %v11899_v2 }
 0x2a2   : >> { %11966 = vmatpush3.bf16.msra.mxu0 %v11963_v3  ;;  %11904 = vmatprep.subr.bf16.mxu1 %v11903_v11 }
 0x2a3   : >> { %11968 = vmatprep.subr.bf16.mxu0 %v11967_v9 }
 0x2a5   : >> { %11906 = vmatpush3.bf16.msra.mxu1 %v11903_v11 }
 0x2a6   : >> { %11970 = vmatpush3.bf16.msra.mxu0 %v11967_v9  ;;  %11908 = vmatprep.subr.bf16.mxu1 %v11907_v18 }
 0x2a7   : >> { %11972 = vmatprep.subr.bf16.mxu0 %v11971_v19 }
 0x2a9   : >> { %11910 = vmatpush3.bf16.msra.mxu1 %v11907_v18 }
 0x2aa   : >> { %11974 = vmatpush3.bf16.msra.mxu0 %v11971_v19  ;;  %11912 = vmatprep.subr.bf16.mxu1 %v11911_v24 }
 0x2ab   : >> { %11976 = vmatprep.subr.bf16.mxu0 %v11975_v25 }
 0x2ac   : >> { %10444 = vmatmul.mubr.msk.f32.vlgmr.msra.gmra.mrb[0].mxu1 %vm3578_vm14, %v3786_v1 }
 0x2ad   : >> { %11914 = vmatpush3.bf16.msra.mxu1 %v11911_v24  ;;  %10520 = vmatmul.mubr.msk.f32.vlgmr.msra.gmra.mrb[0].mxu0 %vm3578_vm14, %v14253_v28 }
 0x2ae   : >> { %11978 = vmatpush3.bf16.msra.mxu0 %v11975_v25  ;;  %11916 = vmatprep.subr.bf16.mxu1 %v11915_v34 }
 0x2af   : >> { %11980 = vmatprep.subr.bf16.mxu0 %v11979_v35  ;;  %10462 = vmatprep.mubr.msk.f32.mxu1 %vm3578_vm14, %v14101_v15  ;;  %v8826_v15 = vld [vmem:[%s15865_s5 + $0x200] sm:$0xff] }
 0x2b0   : >> { %10538 = vmatprep.mubr.msk.f32.mxu0 %vm3578_vm14, %v4260_v40  ;;  %v11991_v52 = vpack.c.bf16 %v8827_v51, %v8826_v15 }
 0x2b1   : >> { %11918 = vmatpush3.bf16.msra.mxu1 %v11915_v34 }
 0x2b2   : >> { %11982 = vmatpush3.bf16.msra.mxu0 %v11979_v35  ;;  %11920 = vmatprep.subr.bf16.mxu1 %v11919_v41 }
 0x2b3   : >> { %11984 = vmatprep.subr.bf16.mxu0 %v11983_v42 }
 0x2b5   : >> { %11922 = vmatpush3.bf16.msra.mxu1 %v11919_v41 }
 0x2b6   : >> { %11986 = vmatpush3.bf16.msra.mxu0 %v11983_v42  ;;  %11924 = vmatprep.subr.bf16.mxu1 %v11923_v47 }
 0x2b7   : >> { %11988 = vmatprep.subr.bf16.mxu0 %v11987_v49 }
 0x2b9   : >> { %11926 = vmatpush3.bf16.msra.mxu1 %v11923_v47 }
 0x2ba   : >> { %11990 = vmatpush3.bf16.msra.mxu0 %v11987_v49 }
 0x2bb   : >> { %11992 = vmatprep.subr.bf16.mxu0 %v11991_v52 }
 0x2bc   : >> { %10463 = vmatmul.mubr.msk.f32.vlgmr.msra.gmra.mrb[0].mxu1 %vm3578_vm14, %v14110_v0  ;;  %v8833_v0 = vld [vmem:[%s15865_s5 + $0x238] sm:$0xff] }
 0x2bd   : >> { %10539 = vmatmul.mubr.msk.f32.vlgmr.msra.gmra.mrb[0].mxu0 %vm3578_vm14, %v4259_v33  ;;  %v12003_v43 = vpack.c.bf16 %v8833_v0, %v8832_v62 }
 0x2be   : >> { %11994 = vmatpush3.bf16.msra.mxu0 %v11991_v52  ;;  %10557 = vmatprep.mubr.msk.f32.mxu0 %vm3578_vm14, %v4353_v59 }
 0x2bf   : >> { %11996 = vmatprep.subr.bf16.mxu0 %v11995_v17 }
 0x2c2   : >> { %11998 = vmatpush3.bf16.msra.mxu0 %v11995_v17 }
 0x2c3   : >> { %12000 = vmatprep.subr.bf16.mxu0 %v11999_v61 }
 0x2c6   : >> { %12002 = vmatpush3.bf16.msra.mxu0 %v11999_v61 }
 0x2c7   : >> { %12004 = vmatprep.subr.bf16.mxu0 %v12003_v43 }
 0x2ca   : >> { %12006 = vmatpush3.bf16.msra.mxu0 %v12003_v43 }
 0x2cd   : >> { %10558 = vmatmul.mubr.msk.f32.vlgmr.msra.gmra.mrb[0].mxu0 %vm3578_vm14, %v4352_v54 }
 0x38f   : >> { %v10464_v50 = vpop.f32.mrb[0].mxu1 }
 0x390   : >> { %v3955_v63 = vpop.f32.mrb[1].mxu1 }
 0x3a0   : >> { %v10559_v1 = vpop.f32.mrb[0].mxu0  ;;  %3587 = sbr.rel (!%p3585_p13) target bundleno = 633 (0x279), region = 243 }
 0x3a1   : >> { %v13017_v2 = vadd.f32 %v10559_v1, %v10464_v50  ;;  %v4424_v3 = vpop.f32.mrb[1].mxu0 }
 0x3a2   : >> { %v13018_v4 = vadd.f32 %v4424_v3, %v3955_v63 }
 0x3a3   : >> { %v4442_v5 = vadd.f32 %v13017_v2, %v14038_v57 }
 0x3a4   : >> { %v4441_v6 = vadd.f32 %v13018_v4, %v14038_v57 }
 0x3a5   : >> { %4445 = vst [vmem:[%s4443_s23 + $0x8] sm:$0xf] %v4442_v5 }
 0x3a6   : >> { %4444 = vst [vmem:[%s4443_s23] sm:$0xff] %v4441_v6 }
 0x3a7 LB: >> { %v8839_v8 = vld [vmem:[%s15867_s7 + $0x80] sm:$0xff]  ;;  %v8840_v57 = vld [vmem:[%s15867_s7 + $0x88] sm:$0xff]  ;;  %v8841_v10 = vld [vmem:[%s15867_s7 + $0x90] sm:$0xff]  ;;  %s9207_s25 = sshll.u32 %s13282_s30, 5  ;;  %vm6152_vm0 = vcmask 520192   ;;  %s13282_s30 = sphi %s14338_s30, %s4452_s30  }
 0x3a8   : >> { %v12007_v11 = vpack.c.bf16 %v8840_v57, %v8839_v8  ;;  %v8842_v9 = vld [vmem:[%s15867_s7 + $0x98] sm:$0xff]  ;;  %v8843_v13 = vld [vmem:[%s15867_s7 + $0xa0] sm:$0xff]  ;;  %v8844_v14 = vld [vmem:[%s15867_s7 + $0xa8] sm:$0xff]  ;;  %s14362_s16 = scalar_lea.vmem [#allocation4], %s9207_s25 }
 0x3a9   : >> { %v12011_v12 = vpack.c.bf16 %v8842_v9, %v8841_v10  ;;  %v12015_v16 = vpack.c.bf16 %v8844_v14, %v8843_v13  ;;  %v8845_v20 = vld [vmem:[%s15867_s7 + $0xb0] sm:$0xff]  ;;  %v8846_v21 = vld [vmem:[%s15867_s7 + $0xb8] sm:$0xff]  ;;  %v8847_v30 = vld [vmem:[%s15867_s7 + $0xc0] sm:$0xff] }
 0x3aa   : >> { %12008 = vmatprep.subr.bf16.mxu0 %v12007_v11  ;;  %12296 = vmatprep.subr.bf16.mxu1 %v12007_v11  ;;  %v12019_v29 = vpack.c.bf16 %v8846_v21, %v8845_v20  ;;  %v8848_v31 = vld [vmem:[%s15867_s7 + $0xc8] sm:$0xff]  ;;  %v8849_v35 = vld [vmem:[%s15867_s7 + $0xd0] sm:$0xff]  ;;  %v8850_v36 = vld [vmem:[%s15867_s7 + $0xd8] sm:$0xff] }
 0x3ab   : >> { %12010 = vmatpush3.bf16.msra.mxu0 %v12007_v11  ;;  %12298 = vmatpush3.bf16.msra.mxu1 %v12007_v11  ;;  %v12023_v34 = vpack.c.bf16 %v8848_v31, %v8847_v30  ;;  %v12027_v37 = vpack.c.bf16 %v8850_v36, %v8849_v35  ;;  %v8851_v38 = vld [vmem:[%s15867_s7 + $0xe0] sm:$0xff]  ;;  %v8852_v39 = vld [vmem:[%s15867_s7 + $0xe8] sm:$0xff]  ;;  %v8853_v41 = vld [vmem:[%s15867_s7 + $0xf0] sm:$0xff] }
 0x3ac   : >> { %12012 = vmatprep.subr.bf16.mxu0 %v12011_v12  ;;  %12300 = vmatprep.subr.bf16.mxu1 %v12011_v12  ;;  %v12031_v40 = vpack.c.bf16 %v8852_v39, %v8851_v38  ;;  %v8854_v42 = vld [vmem:[%s15867_s7 + $0xf8] sm:$0xff]  ;;  %v4458_v45 = vld [vmem:[%s15867_s7] sm:$0xff]  ;;  %v4459_v46 = vld [vmem:[%s15867_s7 + $0x8] sm:$0xff] }
 0x3ad   : >> { %v14365_v18 = vld [vmem:[%s14362_s16] sm:$0xff]  ;;  %v14368_v19 = vld [vmem:[%s14362_s16 + $0x8] sm:$0xf]  ;;  %v14379_v24 = vld [vmem:[%s14362_s16 + $0x10] sm:$0xff]  ;;  %v12035_v44 = vpack.c.bf16 %v8854_v42, %v8853_v41  ;;  %v12039_v48 = vpack.c.bf16 %v4459_v46, %v4458_v45 }
 0x3ae   : >> { %v4494_v22 = vrot.slane %v14365_v18, 1  ;;  %v4495_v23 = vrot.slane %v14368_v19, 1  ;;  %v14382_v25 = vld [vmem:[%s14362_s16 + $0x18] sm:$0xf]  ;;  %v4867_v26 = vrot.slane %v14379_v24, 1  ;;  %v4460_v47 = vld [vmem:[%s15867_s7 + $0x10] sm:$0xff] }
 0x3af   : >> { %12014 = vmatpush3.bf16.msra.mxu0 %v12011_v12  ;;  %12302 = vmatpush3.bf16.msra.mxu1 %v12011_v12  ;;  %v14387_v28 = vrot.slane %v14382_v25, 1  ;;  %v4461_v49 = vld [vmem:[%s15867_s7 + $0x18] sm:$0xff]  ;;  %v4462_v51 = vld [vmem:[%s15867_s7 + $0x20] sm:$0xff]  ;;  %v4463_v52 = vld [vmem:[%s15867_s7 + $0x28] sm:$0xff]  ;;  %v4667_v57 = vrot.slane %v14365_v18, 2  ;;  %v4668_v10 = vrot.slane %v14368_v19, 2 }
 0x3b0   : >> { %v4496_v27 = vsel %vm512_vm1, %v4494_v22, %v4495_v23  ;;  %12016 = vmatprep.subr.bf16.mxu0 %v12015_v16  ;;  %12304 = vmatprep.subr.bf16.mxu1 %v12015_v16  ;;  %v12043_v15 = vpack.c.bf16 %v4461_v49, %v4460_v47  ;;  %v12047_v53 = vpack.c.bf16 %v4463_v52, %v4462_v51  ;;  %v4464_v54 = vld [vmem:[%s15867_s7 + $0x30] sm:$0xff]  ;;  %v4465_v56 = vld [vmem:[%s15867_s7 + $0x38] sm:$0xff]  ;;  %v4466_v17 = vld [vmem:[%s15867_s7 + $0x40] sm:$0xff]  ;;  %v4966_v11 = vrot.slane %v14379_v24, 2 }
 0x3b1   : >> { %10592 = vmatprep.mubr.f32.mxu0 %v4496_v27  ;;  %v14397_v33 = vsel %vm512_vm1, %v4867_v26, %v14387_v28  ;;  %v12051_v58 = vpack.c.bf16 %v4465_v56, %v4464_v54  ;;  %v4467_v59 = vld [vmem:[%s15867_s7 + $0x48] sm:$0xff]  ;;  %v4468_v60 = vld [vmem:[%s15867_s7 + $0x50] sm:$0xff]  ;;  %v4469_v61 = vld [vmem:[%s15867_s7 + $0x58] sm:$0xff]  ;;  %v14485_v9 = vrot.slane %v14382_v25, 2 }
 0x3b2   : >> { %10907 = vmatprep.mubr.f32.mxu1 %v14397_v33  ;;  %v12055_v55 = vpack.c.bf16 %v4467_v59, %v4466_v17  ;;  %v12059_v62 = vpack.c.bf16 %v4469_v61, %v4468_v60  ;;  %v4470_v0 = vld [vmem:[%s15867_s7 + $0x60] sm:$0xff]  ;;  %v4471_v43 = vld [vmem:[%s15867_s7 + $0x68] sm:$0xff]  ;;  %v4472_v63 = vld [vmem:[%s15867_s7 + $0x70] sm:$0xff] }
 0x3b3   : >> { %12018 = vmatpush3.bf16.msra.mxu0 %v12015_v16  ;;  %12306 = vmatpush3.bf16.msra.mxu1 %v12015_v16  ;;  %v12063_v50 = vpack.c.bf16 %v4471_v43, %v4470_v0  ;;  %v4473_v1 = vld [vmem:[%s15867_s7 + $0x78] sm:$0xff]  ;;  %v8855_v3 = vld [vmem:[%s15867_s7 + $0x100] sm:$0xff]  ;;  %v8856_v4 = vld [vmem:[%s15867_s7 + $0x108] sm:$0xff]  ;;  %v4669_v16 = vsel %vm716_vm3, %v4667_v57, %v4668_v10 }
 0x3b4   : >> { %12020 = vmatprep.subr.bf16.mxu0 %v12019_v29  ;;  %12308 = vmatprep.subr.bf16.mxu1 %v12019_v29  ;;  %v12067_v2 = vpack.c.bf16 %v4473_v1, %v4472_v63  ;;  %v12071_v5 = vpack.c.bf16 %v8856_v4, %v8855_v3  ;;  %v8857_v6 = vld [vmem:[%s15867_s7 + $0x110] sm:$0xff]  ;;  %v8858_v8 = vld [vmem:[%s15867_s7 + $0x118] sm:$0xff]  ;;  %v8859_v13 = vld [vmem:[%s15867_s7 + $0x120] sm:$0xff] }
 0x3b5   : >> { %v12075_v12 = vpack.c.bf16 %v8858_v8, %v8857_v6  ;;  %v8860_v14 = vld [vmem:[%s15867_s7 + $0x128] sm:$0xff]  ;;  %v8861_v21 = vld [vmem:[%s15867_s7 + $0x130] sm:$0xff]  ;;  %v8862_v22 = vld [vmem:[%s15867_s7 + $0x138] sm:$0xff] }
 0x3b6   : >> { %v12079_v20 = vpack.c.bf16 %v8860_v14, %v8859_v13  ;;  %v8863_v26 = vld [vmem:[%s15867_s7 + $0x140] sm:$0xff]  ;;  %v8864_v27 = vld [vmem:[%s15867_s7 + $0x148] sm:$0xff]  ;;  %v8865_v30 = vld [vmem:[%s15867_s7 + $0x150] sm:$0xff] }
 0x3b7   : >> { %12022 = vmatpush3.bf16.msra.mxu0 %v12019_v29  ;;  %12310 = vmatpush3.bf16.msra.mxu1 %v12019_v29  ;;  %v12087_v29 = vpack.c.bf16 %v8864_v27, %v8863_v26  ;;  %v8866_v31 = vld [vmem:[%s15867_s7 + $0x158] sm:$0xff]  ;;  %v8867_v35 = vld [vmem:[%s15867_s7 + $0x160] sm:$0xff]  ;;  %v8868_v36 = vld [vmem:[%s15867_s7 + $0x168] sm:$0xff] }
 0x3b8   : >> { %12024 = vmatprep.subr.bf16.mxu0 %v12023_v34  ;;  %12312 = vmatprep.subr.bf16.mxu1 %v12023_v34  ;;  %v8869_v38 = vld [vmem:[%s15867_s7 + $0x170] sm:$0xff]  ;;  %v8870_v39 = vld [vmem:[%s15867_s7 + $0x178] sm:$0xff]  ;;  %v8875_v41 = vld [vmem:[%s15867_s7 + $0x180] sm:$0xff] }
 0x3b9   : >> { %v8876_v42 = vld [vmem:[%s15867_s7 + $0x188] sm:$0xff]  ;;  %v8877_v45 = vld [vmem:[%s15867_s7 + $0x190] sm:$0xff]  ;;  %v8878_v46 = vld [vmem:[%s15867_s7 + $0x198] sm:$0xff] }
 0x3ba   : >> { %v8879_v47 = vld [vmem:[%s15867_s7 + $0x1a0] sm:$0xff]  ;;  %v8880_v49 = vld [vmem:[%s15867_s7 + $0x1a8] sm:$0xff]  ;;  %v8881_v52 = vld [vmem:[%s15867_s7 + $0x1b0] sm:$0xff] }
 0x3bb   : >> { %12026 = vmatpush3.bf16.msra.mxu0 %v12023_v34  ;;  %12314 = vmatpush3.bf16.msra.mxu1 %v12023_v34  ;;  %v12091_v34 = vpack.c.bf16 %v8866_v31, %v8865_v30  ;;  %v12111_v51 = vpack.c.bf16 %v8880_v49, %v8879_v47  ;;  %v8883_v54 = vld [vmem:[%s15867_s7 + $0x1c0] sm:$0xff]  ;;  %v8884_v56 = vld [vmem:[%s15867_s7 + $0x1c8] sm:$0xff]  ;;  %v8886_v17 = vld [vmem:[%s15867_s7 + $0x1d8] sm:$0xff] }
 0x3bc   : >> { %12028 = vmatprep.subr.bf16.mxu0 %v12027_v37  ;;  %12316 = vmatprep.subr.bf16.mxu1 %v12027_v37  ;;  %v8888_v60 = vld [vmem:[%s15867_s7 + $0x1e8] sm:$0xff]  ;;  %v8890_v0 = vld [vmem:[%s15867_s7 + $0x1f8] sm:$0xff]  ;;  %v8893_v3 = vld [vmem:[%s15867_s7 + $0x210] sm:$0xff] }
 0x3bd   : >> { %v8892_v63 = vld [vmem:[%s15867_s7 + $0x208] sm:$0xff]  ;;  %v8894_v4 = vld [vmem:[%s15867_s7 + $0x218] sm:$0xff]  ;;  %v8895_v57 = vld [vmem:[%s15867_s7 + $0x220] sm:$0xff] }
 0x3be   : >> { %v12139_v8 = vpack.c.bf16 %v8894_v4, %v8893_v3  ;;  %v8897_v13 = vld [vmem:[%s15867_s7 + $0x230] sm:$0xff]  ;;  %v8898_v14 = vld [vmem:[%s15867_s7 + $0x238] sm:$0xff]  ;;  %v8903_v26 = vld [vmem:[%s15867_s7 + $0x260] sm:$0xff] }
 0x3bf   : >> { %12030 = vmatpush3.bf16.msra.mxu0 %v12027_v37  ;;  %12318 = vmatpush3.bf16.msra.mxu1 %v12027_v37  ;;  %v12095_v37 = vpack.c.bf16 %v8868_v36, %v8867_v35  ;;  %v8904_v27 = vld [vmem:[%s15867_s7 + $0x268] sm:$0xff]  ;;  %v8905_v30 = vld [vmem:[%s15867_s7 + $0x270] sm:$0xff]  ;;  %v8906_v31 = vld [vmem:[%s15867_s7 + $0x278] sm:$0xff] }
 0x3c0   : >> { %12032 = vmatprep.subr.bf16.mxu0 %v12031_v40  ;;  %12320 = vmatprep.subr.bf16.mxu1 %v12031_v40  ;;  %v8907_v35 = vld [vmem:[%s15867_s7 + $0x280] sm:$0xff]  ;;  %v8908_v36 = vld [vmem:[%s15867_s7 + $0x288] sm:$0xff]  ;;  %v8913_v47 = vld [vmem:[%s15867_s7 + $0x2b0] sm:$0xff] }
 0x3c1   : >> { %v8914_v49 = vld [vmem:[%s15867_s7 + $0x2b8] sm:$0xff]  ;;  %v14733_v3 = vld [vmem:[%s14362_s16 + $0x30] sm:$0xff] }
 0x3c3   : >> { %12034 = vmatpush3.bf16.msra.mxu0 %v12031_v40  ;;  %12322 = vmatpush3.bf16.msra.mxu1 %v12031_v40  ;;  %v12099_v40 = vpack.c.bf16 %v8870_v39, %v8869_v38  ;;  %v8909_v38 = vld [vmem:[%s15867_s7 + $0x290] sm:$0xff]  ;;  %v8910_v39 = vld [vmem:[%s15867_s7 + $0x298] sm:$0xff] }
 0x3c4   : >> { %12036 = vmatprep.subr.bf16.mxu0 %v12035_v44  ;;  %12324 = vmatprep.subr.bf16.mxu1 %v12035_v44 }
 0x3c7   : >> { %12038 = vmatpush3.bf16.msra.mxu0 %v12035_v44  ;;  %12326 = vmatpush3.bf16.msra.mxu1 %v12035_v44  ;;  %v12103_v44 = vpack.c.bf16 %v8876_v42, %v8875_v41  ;;  %v12171_v42 = vpack.c.bf16 %v8910_v39, %v8909_v38  ;;  %v8948_v38 = vld [vmem:[%s15867_s7 + $0x3a8] sm:$0xff] }
 0x3c8   : >> { %12040 = vmatprep.subr.bf16.mxu0 %v12039_v48  ;;  %12328 = vmatprep.subr.bf16.mxu1 %v12039_v48 }
 0x3ca   : >> { %10593 = vmatmul.mubr.f32.vlgmr.msra.gmra.mrb[0].mxu0 %v4495_v23  ;;  %10908 = vmatmul.mubr.f32.vlgmr.msra.gmra.mrb[0].mxu1 %v14387_v28  ;;  %v12083_v23 = vpack.c.bf16 %v8862_v22, %v8861_v21  ;;  %v8901_v21 = vld [vmem:[%s15867_s7 + $0x250] sm:$0xff]  ;;  %v8902_v22 = vld [vmem:[%s15867_s7 + $0x258] sm:$0xff] }
 0x3cb   : >> { %12042 = vmatpush3.bf16.msra.mxu0 %v12039_v48  ;;  %12330 = vmatpush3.bf16.msra.mxu1 %v12039_v48  ;;  %v12107_v48 = vpack.c.bf16 %v8878_v46, %v8877_v45  ;;  %v8912_v45 = vld [vmem:[%s15867_s7 + $0x2a8] sm:$0xff] }
 0x3cc   : >> { %12044 = vmatprep.subr.bf16.mxu0 %v12043_v15  ;;  %12332 = vmatprep.subr.bf16.mxu1 %v12043_v15 }
 0x3cd   : >> { %10627 = vmatprep.mubr.f32.mxu0 %v14365_v18  ;;  %10942 = vmatprep.mubr.f32.mxu1 %v14379_v24  ;;  %v14500_v18 = vsel %vm716_vm3, %v4966_v11, %v14485_v9 }
 0x3cf   : >> { %12046 = vmatpush3.bf16.msra.mxu0 %v12043_v15  ;;  %12334 = vmatpush3.bf16.msra.mxu1 %v12043_v15  ;;  %v14555_v15 = vld [vmem:[%s14362_s16 + $0x20] sm:$0xff] }
 0x3d0   : >> { %12048 = vmatprep.subr.bf16.mxu0 %v12047_v53  ;;  %12336 = vmatprep.subr.bf16.mxu1 %v12047_v53 }
 0x3d3   : >> { %12050 = vmatpush3.bf16.msra.mxu0 %v12047_v53  ;;  %12338 = vmatpush3.bf16.msra.mxu1 %v12047_v53  ;;  %v8882_v53 = vld [vmem:[%s15867_s7 + $0x1b8] sm:$0xff] }
 0x3d4   : >> { %12052 = vmatprep.subr.bf16.mxu0 %v12051_v58  ;;  %12340 = vmatprep.subr.bf16.mxu1 %v12051_v58 }
 0x3d7   : >> { %12054 = vmatpush3.bf16.msra.mxu0 %v12051_v58  ;;  %12342 = vmatpush3.bf16.msra.mxu1 %v12051_v58  ;;  %v8885_v58 = vld [vmem:[%s15867_s7 + $0x1d0] sm:$0xff] }
 0x3d8   : >> { %12056 = vmatprep.subr.bf16.mxu0 %v12055_v55  ;;  %12344 = vmatprep.subr.bf16.mxu1 %v12055_v55  ;;  %v12123_v59 = vpack.c.bf16 %v8886_v17, %v8885_v58  ;;  %v8921_v17 = vld [vmem:[%s15867_s7 + $0x2f0] sm:$0xff] }
 0x3db   : >> { %12058 = vmatpush3.bf16.msra.mxu0 %v12055_v55  ;;  %12346 = vmatpush3.bf16.msra.mxu1 %v12055_v55  ;;  %v8887_v55 = vld [vmem:[%s15867_s7 + $0x1e0] sm:$0xff] }
 0x3dc   : >> { %12060 = vmatprep.subr.bf16.mxu0 %v12059_v62  ;;  %12348 = vmatprep.subr.bf16.mxu1 %v12059_v62  ;;  %v12127_v61 = vpack.c.bf16 %v8888_v60, %v8887_v55  ;;  %v8927_v60 = vld [vmem:[%s15867_s7 + $0x300] sm:$0xff] }
 0x3df   : >> { %12062 = vmatpush3.bf16.msra.mxu0 %v12059_v62  ;;  %12350 = vmatpush3.bf16.msra.mxu1 %v12059_v62  ;;  %v8889_v62 = vld [vmem:[%s15867_s7 + $0x1f0] sm:$0xff] }
 0x3e0   : >> { %12064 = vmatprep.subr.bf16.mxu0 %v12063_v50  ;;  %12352 = vmatprep.subr.bf16.mxu1 %v12063_v50  ;;  %v12131_v43 = vpack.c.bf16 %v8890_v0, %v8889_v62  ;;  %v8929_v0 = vld [vmem:[%s15867_s7 + $0x310] sm:$0xff] }
 0x3e3   : >> { %12066 = vmatpush3.bf16.msra.mxu0 %v12063_v50  ;;  %12354 = vmatpush3.bf16.msra.mxu1 %v12063_v50  ;;  %v8891_v50 = vld [vmem:[%s15867_s7 + $0x200] sm:$0xff] }
 0x3e4   : >> { %12068 = vmatprep.subr.bf16.mxu0 %v12067_v2  ;;  %12356 = vmatprep.subr.bf16.mxu1 %v12067_v2  ;;  %v12135_v1 = vpack.c.bf16 %v8892_v63, %v8891_v50  ;;  %v8931_v63 = vld [vmem:[%s15867_s7 + $0x320] sm:$0xff] }
 0x3e7   : >> { %12070 = vmatpush3.bf16.msra.mxu0 %v12067_v2  ;;  %12358 = vmatpush3.bf16.msra.mxu1 %v12067_v2  ;;  %v14596_v2 = vld [vmem:[%s14362_s16 + $0x28] sm:$0xf] }
 0x3e8   : >> { %12072 = vmatprep.subr.bf16.mxu0 %v12071_v5  ;;  %12360 = vmatprep.subr.bf16.mxu1 %v12071_v5  ;;  %v14606_v6 = vrot.slane %v14596_v2, 1  ;;  %v14666_v41 = vrot.slane %v14596_v2, 2 }
 0x3ea   : >> { %10628 = vmatmul.mubr.f32.vlgmr.msra.gmra.mrb[0].mxu0 %v14368_v19  ;;  %10943 = vmatmul.mubr.f32.vlgmr.msra.gmra.mrb[0].mxu1 %v14382_v25  ;;  %v12115_v19 = vpack.c.bf16 %v8882_v53, %v8881_v52  ;;  %v8916_v52 = vld [vmem:[%s15867_s7 + $0x2c8] sm:$0xff]  ;;  %v8917_v53 = vld [vmem:[%s15867_s7 + $0x2d0] sm:$0xff] }
 0x3eb   : >> { %12074 = vmatpush3.bf16.msra.mxu0 %v12071_v5  ;;  %12362 = vmatpush3.bf16.msra.mxu1 %v12071_v5  ;;  %v5166_v5 = vrot.slane %v14555_v15, 1 }
 0x3ec   : >> { %12076 = vmatprep.subr.bf16.mxu0 %v12075_v12  ;;  %12364 = vmatprep.subr.bf16.mxu1 %v12075_v12 }
 0x3ed   : >> { %10662 = vmatprep.mubr.f32.mxu0 %v4669_v16  ;;  %10977 = vmatprep.mubr.f32.mxu1 %v14500_v18  ;;  %v14618_v11 = vsel %vm512_vm1, %v5166_v5, %v14606_v6  ;;  %v8899_v16 = vld [vmem:[%s15867_s7 + $0x240] sm:$0xff]  ;;  %v8933_v5 = vld [vmem:[%s15867_s7 + $0x330] sm:$0xff] }
 0x3ef   : >> { %12078 = vmatpush3.bf16.msra.mxu0 %v12075_v12  ;;  %12366 = vmatpush3.bf16.msra.mxu1 %v12075_v12 }
 0x3f0   : >> { %12080 = vmatprep.subr.bf16.mxu0 %v12079_v20  ;;  %12368 = vmatprep.subr.bf16.mxu1 %v12079_v20 }
 0x3f3   : >> { %12082 = vmatpush3.bf16.msra.mxu0 %v12079_v20  ;;  %12370 = vmatpush3.bf16.msra.mxu1 %v12079_v20  ;;  %v8900_v20 = vld [vmem:[%s15867_s7 + $0x248] sm:$0xff] }
 0x3f4   : >> { %12084 = vmatprep.subr.bf16.mxu0 %v12083_v23  ;;  %12372 = vmatprep.subr.bf16.mxu1 %v12083_v23 }
 0x3f7   : >> { %12086 = vmatpush3.bf16.msra.mxu0 %v12083_v23  ;;  %12374 = vmatpush3.bf16.msra.mxu1 %v12083_v23  ;;  %v12155_v23 = vpack.c.bf16 %v8902_v22, %v8901_v21  ;;  %v8942_v21 = vld [vmem:[%s15867_s7 + $0x378] sm:$0xff] }
 0x3f8   : >> { %12088 = vmatprep.subr.bf16.mxu0 %v12087_v29  ;;  %12376 = vmatprep.subr.bf16.mxu1 %v12087_v29 }
 0x3fb   : >> { %12090 = vmatpush3.bf16.msra.mxu0 %v12087_v29  ;;  %12378 = vmatpush3.bf16.msra.mxu1 %v12087_v29  ;;  %v12159_v29 = vpack.c.bf16 %v8904_v27, %v8903_v26  ;;  %v8944_v26 = vld [vmem:[%s15867_s7 + $0x388] sm:$0xff] }
 0x3fc   : >> { %12092 = vmatprep.subr.bf16.mxu0 %v12091_v34  ;;  %12380 = vmatprep.subr.bf16.mxu1 %v12091_v34 }
 0x3ff   : >> { %12094 = vmatpush3.bf16.msra.mxu0 %v12091_v34  ;;  %12382 = vmatpush3.bf16.msra.mxu1 %v12091_v34  ;;  %v12163_v34 = vpack.c.bf16 %v8906_v31, %v8905_v30  ;;  %v8945_v30 = vld [vmem:[%s15867_s7 + $0x390] sm:$0xff]  ;;  %v8946_v31 = vld [vmem:[%s15867_s7 + $0x398] sm:$0xff] }
 0x400   : >> { %12096 = vmatprep.subr.bf16.mxu0 %v12095_v37  ;;  %12384 = vmatprep.subr.bf16.mxu1 %v12095_v37 }
 0x403   : >> { %12098 = vmatpush3.bf16.msra.mxu0 %v12095_v37  ;;  %12386 = vmatpush3.bf16.msra.mxu1 %v12095_v37  ;;  %v12167_v37 = vpack.c.bf16 %v8908_v36, %v8907_v35  ;;  %v12235_v36 = vpack.c.bf16 %v8946_v31, %v8945_v30 }
 0x404   : >> { %12100 = vmatprep.subr.bf16.mxu0 %v12099_v40  ;;  %12388 = vmatprep.subr.bf16.mxu1 %v12099_v40 }
 0x407   : >> { %12102 = vmatpush3.bf16.msra.mxu0 %v12099_v40  ;;  %12390 = vmatpush3.bf16.msra.mxu1 %v12099_v40  ;;  %v5265_v40 = vrot.slane %v14555_v15, 2 }
 0x408   : >> { %12104 = vmatprep.subr.bf16.mxu0 %v12103_v44  ;;  %12392 = vmatprep.subr.bf16.mxu1 %v12103_v44 }
 0x409   : >> { %v14678_v46 = vsel %vm716_vm3, %v5265_v40, %v14666_v41 }
 0x40a   : >> { %10663 = vmatmul.mubr.f32.vlgmr.msra.gmra.mrb[0].mxu0 %v4668_v10  ;;  %10978 = vmatmul.mubr.f32.vlgmr.msra.gmra.mrb[0].mxu1 %v14485_v9  ;;  %v8896_v10 = vld [vmem:[%s15867_s7 + $0x228] sm:$0xff] }
 0x40b   : >> { %12106 = vmatpush3.bf16.msra.mxu0 %v12103_v44  ;;  %12394 = vmatpush3.bf16.msra.mxu1 %v12103_v44  ;;  %v12143_v12 = vpack.c.bf16 %v8896_v10, %v8895_v57  ;;  %v8911_v44 = vld [vmem:[%s15867_s7 + $0x2a0] sm:$0xff]  ;;  %v8936_v10 = vld [vmem:[%s15867_s7 + $0x348] sm:$0xff] }
 0x40c   : >> { %12108 = vmatprep.subr.bf16.mxu0 %v12107_v48  ;;  %12396 = vmatprep.subr.bf16.mxu1 %v12107_v48  ;;  %v8935_v57 = vld [vmem:[%s15867_s7 + $0x340] sm:$0xff] }
 0x40d   : >> { %10697 = vmatprep.mubr.f32.mxu0 %v14379_v24  ;;  %11012 = vmatprep.mubr.f32.mxu1 %v14555_v15  ;;  %v12119_v24 = vpack.c.bf16 %v8884_v56, %v8883_v54  ;;  %v8919_v56 = vld [vmem:[%s15867_s7 + $0x2e0] sm:$0xff] }
 0x40f   : >> { %12110 = vmatpush3.bf16.msra.mxu0 %v12107_v48  ;;  %12398 = vmatpush3.bf16.msra.mxu1 %v12107_v48  ;;  %v12175_v48 = vpack.c.bf16 %v8912_v45, %v8911_v44  ;;  %v8950_v44 = vld [vmem:[%s15867_s7 + $0x3b8] sm:$0xff]  ;;  %v8951_v45 = vld [vmem:[%s15867_s7 + $0x3c0] sm:$0xff] }
 0x410   : >> { %12112 = vmatprep.subr.bf16.mxu0 %v12111_v51  ;;  %12400 = vmatprep.subr.bf16.mxu1 %v12111_v51 }
 0x413   : >> { %12114 = vmatpush3.bf16.msra.mxu0 %v12111_v51  ;;  %12402 = vmatpush3.bf16.msra.mxu1 %v12111_v51  ;;  %v8915_v51 = vld [vmem:[%s15867_s7 + $0x2c0] sm:$0xff] }
 0x414   : >> { %12116 = vmatprep.subr.bf16.mxu0 %v12115_v19  ;;  %12404 = vmatprep.subr.bf16.mxu1 %v12115_v19 }
 0x417   : >> { %12118 = vmatpush3.bf16.msra.mxu0 %v12115_v19  ;;  %12406 = vmatpush3.bf16.msra.mxu1 %v12115_v19  ;;  %v8918_v19 = vld [vmem:[%s15867_s7 + $0x2d8] sm:$0xff] }
 0x418   : >> { %12120 = vmatprep.subr.bf16.mxu0 %v12119_v24  ;;  %12408 = vmatprep.subr.bf16.mxu1 %v12119_v24  ;;  %v12187_v54 = vpack.c.bf16 %v8918_v19, %v8917_v53  ;;  %v8957_v53 = vld [vmem:[%s15867_s7 + $0x3f0] sm:$0xff]  ;;  %v8958_v19 = vld [vmem:[%s15867_s7 + $0x3f8] sm:$0xff] }
 0x41b   : >> { %12122 = vmatpush3.bf16.msra.mxu0 %v12119_v24  ;;  %12410 = vmatpush3.bf16.msra.mxu1 %v12119_v24  ;;  %v8920_v24 = vld [vmem:[%s15867_s7 + $0x2e8] sm:$0xff] }
 0x41c   : >> { %12124 = vmatprep.subr.bf16.mxu0 %v12123_v59  ;;  %12412 = vmatprep.subr.bf16.mxu1 %v12123_v59  ;;  %v12191_v58 = vpack.c.bf16 %v8920_v24, %v8919_v56  ;;  %v8959_v56 = vld [vmem:[%s15867_s7 + $0x400] sm:$0xff]  ;;  %v8960_v24 = vld [vmem:[%s15867_s7 + $0x408] sm:$0xff] }
 0x41f   : >> { %12126 = vmatpush3.bf16.msra.mxu0 %v12123_v59  ;;  %12414 = vmatpush3.bf16.msra.mxu1 %v12123_v59  ;;  %v8922_v59 = vld [vmem:[%s15867_s7 + $0x2f8] sm:$0xff] }
 0x420   : >> { %12128 = vmatprep.subr.bf16.mxu0 %v12127_v61  ;;  %12416 = vmatprep.subr.bf16.mxu1 %v12127_v61  ;;  %v12195_v55 = vpack.c.bf16 %v8922_v59, %v8921_v17  ;;  %v8961_v17 = vld [vmem:[%s15867_s7 + $0x410] sm:$0xff]  ;;  %v8962_v59 = vld [vmem:[%s15867_s7 + $0x418] sm:$0xff] }
 0x423   : >> { %12130 = vmatpush3.bf16.msra.mxu0 %v12127_v61  ;;  %12418 = vmatpush3.bf16.msra.mxu1 %v12127_v61  ;;  %v8928_v61 = vld [vmem:[%s15867_s7 + $0x308] sm:$0xff] }
 0x424   : >> { %12132 = vmatprep.subr.bf16.mxu0 %v12131_v43  ;;  %12420 = vmatprep.subr.bf16.mxu1 %v12131_v43  ;;  %v12199_v62 = vpack.c.bf16 %v8928_v61, %v8927_v60  ;;  %v12267_v61 = vpack.c.bf16 %v8962_v59, %v8961_v17 }
 0x427   : >> { %12134 = vmatpush3.bf16.msra.mxu0 %v12131_v43  ;;  %12422 = vmatpush3.bf16.msra.mxu1 %v12131_v43  ;;  %v8930_v43 = vld [vmem:[%s15867_s7 + $0x318] sm:$0xff] }
 0x428   : >> { %12136 = vmatprep.subr.bf16.mxu0 %v12135_v1  ;;  %12424 = vmatprep.subr.bf16.mxu1 %v12135_v1  ;;  %v12203_v50 = vpack.c.bf16 %v8930_v43, %v8929_v0  ;;  %v8964_v0 = vld [vmem:[%s15867_s7 + $0x428] sm:$0xff] }
 0x42a   : >> { %10698 = vmatmul.mubr.f32.vlgmr.msra.gmra.mrb[0].mxu0 %v14382_v25  ;;  %11013 = vmatmul.mubr.f32.vlgmr.msra.gmra.mrb[0].mxu1 %v14596_v2  ;;  %v12147_v25 = vpack.c.bf16 %v8898_v14, %v8897_v13  ;;  %v8938_v13 = vld [vmem:[%s15867_s7 + $0x358] sm:$0xff] }
 0x42b   : >> { %12138 = vmatpush3.bf16.msra.mxu0 %v12135_v1  ;;  %12426 = vmatpush3.bf16.msra.mxu1 %v12135_v1  ;;  %v8932_v1 = vld [vmem:[%s15867_s7 + $0x328] sm:$0xff] }
 0x42c   : >> { %12140 = vmatprep.subr.bf16.mxu0 %v12139_v8  ;;  %12428 = vmatprep.subr.bf16.mxu1 %v12139_v8  ;;  %v12207_v4 = vpack.c.bf16 %v8932_v1, %v8931_v63  ;;  %v8965_v63 = vld [vmem:[%s15867_s7 + $0x430] sm:$0xff]  ;;  %v8966_v1 = vld [vmem:[%s15867_s7 + $0x438] sm:$0xff] }
 0x42d   : >> { %10732 = vmatprep.mubr.f32.mxu0 %v14397_v33  ;;  %11047 = vmatprep.mubr.f32.mxu1 %v14618_v11  ;;  %v12151_v33 = vpack.c.bf16 %v8900_v20, %v8899_v16  ;;  %v8940_v16 = vld [vmem:[%s15867_s7 + $0x368] sm:$0xff] }
 0x42f   : >> { %12142 = vmatpush3.bf16.msra.mxu0 %v12139_v8  ;;  %12430 = vmatpush3.bf16.msra.mxu1 %v12139_v8  ;;  %v8934_v8 = vld [vmem:[%s15867_s7 + $0x338] sm:$0xff] }
 0x430   : >> { %12144 = vmatprep.subr.bf16.mxu0 %v12143_v12  ;;  %12432 = vmatprep.subr.bf16.mxu1 %v12143_v12 }
 0x433   : >> { %12146 = vmatpush3.bf16.msra.mxu0 %v12143_v12  ;;  %12434 = vmatpush3.bf16.msra.mxu1 %v12143_v12  ;;  %v8937_v12 = vld [vmem:[%s15867_s7 + $0x350] sm:$0xff] }
 0x434   : >> { %12148 = vmatprep.subr.bf16.mxu0 %v12147_v25  ;;  %12436 = vmatprep.subr.bf16.mxu1 %v12147_v25  ;;  %v12219_v14 = vpack.c.bf16 %v8938_v13, %v8937_v12  ;;  %v8973_v12 = vld [vmem:[%s15867_s7 + $0x470] sm:$0xff]  ;;  %v8974_v13 = vld [vmem:[%s15867_s7 + $0x478] sm:$0xff] }
 0x437   : >> { %12150 = vmatpush3.bf16.msra.mxu0 %v12147_v25  ;;  %12438 = vmatpush3.bf16.msra.mxu1 %v12147_v25  ;;  %v8939_v25 = vld [vmem:[%s15867_s7 + $0x360] sm:$0xff] }
 0x438   : >> { %12152 = vmatprep.subr.bf16.mxu0 %v12151_v33  ;;  %12440 = vmatprep.subr.bf16.mxu1 %v12151_v33  ;;  %v12223_v20 = vpack.c.bf16 %v8940_v16, %v8939_v25 }
 0x43b   : >> { %12154 = vmatpush3.bf16.msra.mxu0 %v12151_v33  ;;  %12442 = vmatpush3.bf16.msra.mxu1 %v12151_v33  ;;  %v8941_v33 = vld [vmem:[%s15867_s7 + $0x370] sm:$0xff] }
 0x43c   : >> { %12156 = vmatprep.subr.bf16.mxu0 %v12155_v23  ;;  %12444 = vmatprep.subr.bf16.mxu1 %v12155_v23  ;;  %v12227_v22 = vpack.c.bf16 %v8942_v21, %v8941_v33 }
 0x43f   : >> { %12158 = vmatpush3.bf16.msra.mxu0 %v12155_v23  ;;  %12446 = vmatpush3.bf16.msra.mxu1 %v12155_v23  ;;  %v8943_v23 = vld [vmem:[%s15867_s7 + $0x380] sm:$0xff] }
 0x440   : >> { %12160 = vmatprep.subr.bf16.mxu0 %v12159_v29  ;;  %12448 = vmatprep.subr.bf16.mxu1 %v12159_v29  ;;  %v12231_v27 = vpack.c.bf16 %v8944_v26, %v8943_v23 }
 0x443   : >> { %12162 = vmatpush3.bf16.msra.mxu0 %v12159_v29  ;;  %12450 = vmatpush3.bf16.msra.mxu1 %v12159_v29  ;;  %v14774_v29 = vld [vmem:[%s14362_s16 + $0x38] sm:$0xf]  ;;  %s8980_s16 = sshll.u32 %s13282_s30, 3  ;;  %s4452_s30 = sadd.s32 1, %s13282_s30  }
 0x444   : >> { %12164 = vmatprep.subr.bf16.mxu0 %v12163_v34  ;;  %12452 = vmatprep.subr.bf16.mxu1 %v12163_v34  ;;  %v5900_v35 = vrot.slane %v14774_v29, 1  ;;  %v5982_v60 = vrot.slane %v14774_v29, 2  ;;  %s6151_s1 = scalar_lea.vmem [#allocation5], %s8980_s16  ;;  %p4449_p0 = scmp.ge.s32.totalorder %s4452_s30, 5  }
 0x445   : > { %s9199_s16 = sshll.u32 (%p4449_p0), %s13390_s22, 4  ;;  %vm8408_vm2 = vcmask (%p4449_p0), 73728   ;;  %s15893_s23 = sand.u32 (%p4449_p0), 1, %s13258_s19  }
 0x446   : > { %s15815_s27 = scalar_lea.hbm (%p4449_p0), %s15875_s15, %s9199_s16  ;;  %s8411_s2 = scalar_lea.sflag (%p4449_p0), [#allocation7], %s15893_s23 }
 0x447   : >> { %12166 = vmatpush3.bf16.msra.mxu0 %v12163_v34  ;;  %12454 = vmatpush3.bf16.msra.mxu1 %v12163_v34  ;;  %v5899_v34 = vrot.slane %v14733_v3, 1  ;;  %s13288_s22 = smov (%p4449_p0), [#allocation6]  }
 0x448   : >> { %12168 = vmatprep.subr.bf16.mxu0 %v12167_v37  ;;  %12456 = vmatprep.subr.bf16.mxu1 %v12167_v37  ;;  %s13192_s30 = sshll.u32 (%p4449_p0), %s13288_s22, 4  ;;  %s13193_s30 = int_to_ptr.vmem [resolvable:$false] %s13192_s30 }
 0x449   : >> { %v5901_v39 = vsel %vm512_vm1, %v5899_v34, %v5900_v35  ;;  %vm13286_vm1 = vmmov (%p4449_p0), 0   ;;  %s13194_s26 = scalar_lea.vmem (%p4449_p0), %s13193_s30, 32 }
 0x44a   : >> { %10733 = vmatmul.mubr.f32.vlgmr.msra.gmra.mrb[0].mxu0 %v14387_v28  ;;  %11048 = vmatmul.mubr.f32.vlgmr.msra.gmra.mrb[0].mxu1 %v14606_v6  ;;  %v12179_v28 = vpack.c.bf16 %v8914_v49, %v8913_v47  ;;  %v8954_v49 = vld [vmem:[%s15867_s7 + $0x3d8] sm:$0xff] }
 0x44b   : >> { %12170 = vmatpush3.bf16.msra.mxu0 %v12167_v37  ;;  %12458 = vmatpush3.bf16.msra.mxu1 %v12167_v37  ;;  %v8947_v37 = vld [vmem:[%s15867_s7 + $0x3a0] sm:$0xff] }
 0x44c   : >> { %12172 = vmatprep.subr.bf16.mxu0 %v12171_v42  ;;  %12460 = vmatprep.subr.bf16.mxu1 %v12171_v42  ;;  %v12239_v40 = vpack.c.bf16 %v8948_v38, %v8947_v37 }
 0x44d   : >> { %10767 = vmatprep.mubr.f32.mxu0 %v14500_v18  ;;  %11082 = vmatprep.mubr.f32.mxu1 %v14678_v46  ;;  %v12183_v18 = vpack.c.bf16 %v8916_v52, %v8915_v51  ;;  %v8955_v51 = vld [vmem:[%s15867_s7 + $0x3e0] sm:$0xff]  ;;  %v8956_v52 = vld [vmem:[%s15867_s7 + $0x3e8] sm:$0xff] }
 0x44f   : >> { %12174 = vmatpush3.bf16.msra.mxu0 %v12171_v42  ;;  %12462 = vmatpush3.bf16.msra.mxu1 %v12171_v42  ;;  %v8949_v42 = vld [vmem:[%s15867_s7 + $0x3b0] sm:$0xff] }
 0x450   : >> { %12176 = vmatprep.subr.bf16.mxu0 %v12175_v48  ;;  %12464 = vmatprep.subr.bf16.mxu1 %v12175_v48 }
 0x453   : >> { %12178 = vmatpush3.bf16.msra.mxu0 %v12175_v48  ;;  %12466 = vmatpush3.bf16.msra.mxu1 %v12175_v48  ;;  %v8952_v48 = vld [vmem:[%s15867_s7 + $0x3c8] sm:$0xff] }
 0x454   : >> { %12180 = vmatprep.subr.bf16.mxu0 %v12179_v28  ;;  %12468 = vmatprep.subr.bf16.mxu1 %v12179_v28  ;;  %v12247_v47 = vpack.c.bf16 %v8952_v48, %v8951_v45 }
 0x457   : >> { %12182 = vmatpush3.bf16.msra.mxu0 %v12179_v28  ;;  %12470 = vmatpush3.bf16.msra.mxu1 %v12179_v28 }
 0x458   : >> { %12184 = vmatprep.subr.bf16.mxu0 %v12183_v18  ;;  %12472 = vmatprep.subr.bf16.mxu1 %v12183_v18 }
 0x45b   : >> { %12186 = vmatpush3.bf16.msra.mxu0 %v12183_v18  ;;  %12474 = vmatpush3.bf16.msra.mxu1 %v12183_v18  ;;  %v12255_v18 = vpack.c.bf16 %v8956_v52, %v8955_v51 }
 0x45c   : >> { %12188 = vmatprep.subr.bf16.mxu0 %v12187_v54  ;;  %12476 = vmatprep.subr.bf16.mxu1 %v12187_v54 }
 0x45f   : >> { %12190 = vmatpush3.bf16.msra.mxu0 %v12187_v54  ;;  %12478 = vmatpush3.bf16.msra.mxu1 %v12187_v54  ;;  %v12259_v54 = vpack.c.bf16 %v8958_v19, %v8957_v53 }
 0x460   : >> { %12192 = vmatprep.subr.bf16.mxu0 %v12191_v58  ;;  %12480 = vmatprep.subr.bf16.mxu1 %v12191_v58 }
 0x463   : >> { %12194 = vmatpush3.bf16.msra.mxu0 %v12191_v58  ;;  %12482 = vmatpush3.bf16.msra.mxu1 %v12191_v58  ;;  %v12263_v58 = vpack.c.bf16 %v8960_v24, %v8959_v56 }
 0x464   : >> { %12196 = vmatprep.subr.bf16.mxu0 %v12195_v55  ;;  %12484 = vmatprep.subr.bf16.mxu1 %v12195_v55 }
 0x467   : >> { %12198 = vmatpush3.bf16.msra.mxu0 %v12195_v55  ;;  %12486 = vmatpush3.bf16.msra.mxu1 %v12195_v55  ;;  %v5981_v55 = vrot.slane %v14733_v3, 2 }
 0x468   : >> { %12200 = vmatprep.subr.bf16.mxu0 %v12199_v62  ;;  %12488 = vmatprep.subr.bf16.mxu1 %v12199_v62 }
 0x469   : >> { %v5983_v43 = vsel %vm716_vm3, %v5981_v55, %v5982_v60 }
 0x46a   : >> { %10768 = vmatmul.mubr.f32.vlgmr.msra.gmra.mrb[0].mxu0 %v14485_v9  ;;  %11083 = vmatmul.mubr.f32.vlgmr.msra.gmra.mrb[0].mxu1 %v14666_v41  ;;  %v12211_v9 = vpack.c.bf16 %v8934_v8, %v8933_v5  ;;  %v8970_v8 = vld [vmem:[%s15867_s7 + $0x458] sm:$0xff] }
 0x46b   : >> { %12202 = vmatpush3.bf16.msra.mxu0 %v12199_v62  ;;  %12490 = vmatpush3.bf16.msra.mxu1 %v12199_v62  ;;  %v8963_v62 = vld [vmem:[%s15867_s7 + $0x420] sm:$0xff] }
 0x46c   : >> { %12204 = vmatprep.subr.bf16.mxu0 %v12203_v50  ;;  %12492 = vmatprep.subr.bf16.mxu1 %v12203_v50 }
 0x46d   : >> { %10802 = vmatprep.mubr.f32.mxu0 %v14555_v15  ;;  %11117 = vmatprep.mubr.f32.mxu1 %v14733_v3  ;;  %v12215_v15 = vpack.c.bf16 %v8936_v10, %v8935_v57  ;;  %v8967_v3 = vld [vmem:[%s15867_s7 + $0x440] sm:$0xff]  ;;  %v8972_v10 = vld [vmem:[%s15867_s7 + $0x468] sm:$0xff] }
 0x46e   : >> { %v8971_v57 = vld [vmem:[%s15867_s7 + $0x460] sm:$0xff] }
 0x46f   : >> { %12206 = vmatpush3.bf16.msra.mxu0 %v12203_v50  ;;  %12494 = vmatpush3.bf16.msra.mxu1 %v12203_v50  ;;  %v12271_v50 = vpack.c.bf16 %v8964_v0, %v8963_v62 }
 0x470   : >> { %12208 = vmatprep.subr.bf16.mxu0 %v12207_v4  ;;  %12496 = vmatprep.subr.bf16.mxu1 %v12207_v4 }
 0x473   : >> { %12210 = vmatpush3.bf16.msra.mxu0 %v12207_v4  ;;  %12498 = vmatpush3.bf16.msra.mxu1 %v12207_v4  ;;  %v8968_v4 = vld [vmem:[%s15867_s7 + $0x448] sm:$0xff] }
 0x474   : >> { %12212 = vmatprep.subr.bf16.mxu0 %v12211_v9  ;;  %12500 = vmatprep.subr.bf16.mxu1 %v12211_v9  ;;  %v12279_v5 = vpack.c.bf16 %v8968_v4, %v8967_v3 }
 0x477   : >> { %12214 = vmatpush3.bf16.msra.mxu0 %v12211_v9  ;;  %12502 = vmatpush3.bf16.msra.mxu1 %v12211_v9 }
 0x478   : >> { %12216 = vmatprep.subr.bf16.mxu0 %v12215_v15  ;;  %12504 = vmatprep.subr.bf16.mxu1 %v12215_v15 }
 0x47b   : >> { %12218 = vmatpush3.bf16.msra.mxu0 %v12215_v15  ;;  %12506 = vmatpush3.bf16.msra.mxu1 %v12215_v15  ;;  %v12287_v15 = vpack.c.bf16 %v8972_v10, %v8971_v57 }
 0x47c   : >> { %12220 = vmatprep.subr.bf16.mxu0 %v12219_v14  ;;  %12508 = vmatprep.subr.bf16.mxu1 %v12219_v14 }
 0x47f   : >> { %12222 = vmatpush3.bf16.msra.mxu0 %v12219_v14  ;;  %12510 = vmatpush3.bf16.msra.mxu1 %v12219_v14  ;;  %v12291_v14 = vpack.c.bf16 %v8974_v13, %v8973_v12  ;;  %v6156_v12 = vld [vmem:[%s15869_s9] sm:$0xff] (%p4449_p0)  ;;  %v6157_v13 = vld [vmem:[%s15869_s9 + $0x8] sm:$0xff] (%p4449_p0) }
 0x480   : >> { %12224 = vmatprep.subr.bf16.mxu0 %v12223_v20  ;;  %12512 = vmatprep.subr.bf16.mxu1 %v12223_v20 }
 0x483   : >> { %12226 = vmatpush3.bf16.msra.mxu0 %v12223_v20  ;;  %12514 = vmatpush3.bf16.msra.mxu1 %v12223_v20 }
 0x484   : >> { %12228 = vmatprep.subr.bf16.mxu0 %v12227_v22  ;;  %12516 = vmatprep.subr.bf16.mxu1 %v12227_v22 }
 0x487   : >> { %12230 = vmatpush3.bf16.msra.mxu0 %v12227_v22  ;;  %12518 = vmatpush3.bf16.msra.mxu1 %v12227_v22 }
 0x488   : >> { %12232 = vmatprep.subr.bf16.mxu0 %v12231_v27  ;;  %12520 = vmatprep.subr.bf16.mxu1 %v12231_v27 }
 0x48a   : >> { %10803 = vmatmul.mubr.f32.vlgmr.msra.gmra.mrb[0].mxu0 %v14596_v2  ;;  %11118 = vmatmul.mubr.f32.vlgmr.msra.gmra.mrb[0].mxu1 %v14774_v29  ;;  %v12243_v2 = vpack.c.bf16 %v8950_v44, %v8949_v42 }
 0x48b   : >> { %12234 = vmatpush3.bf16.msra.mxu0 %v12231_v27  ;;  %12522 = vmatpush3.bf16.msra.mxu1 %v12231_v27 }
 0x48c   : >> { %12236 = vmatprep.subr.bf16.mxu0 %v12235_v36  ;;  %12524 = vmatprep.subr.bf16.mxu1 %v12235_v36 }
 0x48d   : >> { %10837 = vmatprep.mubr.f32.mxu0 %v14618_v11  ;;  %11152 = vmatprep.mubr.f32.mxu1 %v5901_v39  ;;  %v8953_v11 = vld [vmem:[%s15867_s7 + $0x3d0] sm:$0xff] }
 0x48e   : >> { %v12251_v28 = vpack.c.bf16 %v8954_v49, %v8953_v11 }
 0x48f   : >> { %12238 = vmatpush3.bf16.msra.mxu0 %v12235_v36  ;;  %12526 = vmatpush3.bf16.msra.mxu1 %v12235_v36 }
 0x490   : >> { %12240 = vmatprep.subr.bf16.mxu0 %v12239_v40  ;;  %12528 = vmatprep.subr.bf16.mxu1 %v12239_v40 }
 0x493   : >> { %12242 = vmatpush3.bf16.msra.mxu0 %v12239_v40  ;;  %12530 = vmatpush3.bf16.msra.mxu1 %v12239_v40 }
 0x494   : >> { %12244 = vmatprep.subr.bf16.mxu0 %v12243_v2  ;;  %12532 = vmatprep.subr.bf16.mxu1 %v12243_v2 }
 0x497   : >> { %12246 = vmatpush3.bf16.msra.mxu0 %v12243_v2  ;;  %12534 = vmatpush3.bf16.msra.mxu1 %v12243_v2 }
 0x498   : >> { %12248 = vmatprep.subr.bf16.mxu0 %v12247_v47  ;;  %12536 = vmatprep.subr.bf16.mxu1 %v12247_v47 }
 0x49b   : >> { %12250 = vmatpush3.bf16.msra.mxu0 %v12247_v47  ;;  %12538 = vmatpush3.bf16.msra.mxu1 %v12247_v47 }
 0x49c   : >> { %12252 = vmatprep.subr.bf16.mxu0 %v12251_v28  ;;  %12540 = vmatprep.subr.bf16.mxu1 %v12251_v28 }
 0x49f   : >> { %12254 = vmatpush3.bf16.msra.mxu0 %v12251_v28  ;;  %12542 = vmatpush3.bf16.msra.mxu1 %v12251_v28 }
 0x4a0   : >> { %12256 = vmatprep.subr.bf16.mxu0 %v12255_v18  ;;  %12544 = vmatprep.subr.bf16.mxu1 %v12255_v18 }
 0x4a3   : >> { %12258 = vmatpush3.bf16.msra.mxu0 %v12255_v18  ;;  %12546 = vmatpush3.bf16.msra.mxu1 %v12255_v18 }
 0x4a4   : >> { %12260 = vmatprep.subr.bf16.mxu0 %v12259_v54  ;;  %12548 = vmatprep.subr.bf16.mxu1 %v12259_v54 }
 0x4a7   : >> { %12262 = vmatpush3.bf16.msra.mxu0 %v12259_v54  ;;  %12550 = vmatpush3.bf16.msra.mxu1 %v12259_v54 }
 0x4a8   : >> { %12264 = vmatprep.subr.bf16.mxu0 %v12263_v58  ;;  %12552 = vmatprep.subr.bf16.mxu1 %v12263_v58 }
 0x4aa   : >> { %10838 = vmatmul.mubr.f32.vlgmr.msra.gmra.mrb[0].mxu0 %v14606_v6  ;;  %11153 = vmatmul.mubr.f32.vlgmr.msra.gmra.mrb[0].mxu1 %v5900_v35  ;;  %v12275_v6 = vpack.c.bf16 %v8966_v1, %v8965_v63 }
 0x4ab   : >> { %12266 = vmatpush3.bf16.msra.mxu0 %v12263_v58  ;;  %12554 = vmatpush3.bf16.msra.mxu1 %v12263_v58 }
 0x4ac   : >> { %12268 = vmatprep.subr.bf16.mxu0 %v12267_v61  ;;  %12556 = vmatprep.subr.bf16.mxu1 %v12267_v61 }
 0x4ad   : >> { %10872 = vmatprep.mubr.f32.mxu0 %v14678_v46  ;;  %11187 = vmatprep.mubr.f32.mxu1 %v5983_v43  ;;  %v8969_v46 = vld [vmem:[%s15867_s7 + $0x450] sm:$0xff] }
 0x4ae   : >> { %v12283_v9 = vpack.c.bf16 %v8970_v8, %v8969_v46 }
 0x4af   : >> { %12270 = vmatpush3.bf16.msra.mxu0 %v12267_v61  ;;  %12558 = vmatpush3.bf16.msra.mxu1 %v12267_v61 }
 0x4b0   : >> { %12272 = vmatprep.subr.bf16.mxu0 %v12271_v50  ;;  %12560 = vmatprep.subr.bf16.mxu1 %v12271_v50 }
 0x4b3   : >> { %12274 = vmatpush3.bf16.msra.mxu0 %v12271_v50  ;;  %12562 = vmatpush3.bf16.msra.mxu1 %v12271_v50 }
 0x4b4   : >> { %12276 = vmatprep.subr.bf16.mxu0 %v12275_v6  ;;  %12564 = vmatprep.subr.bf16.mxu1 %v12275_v6 }
 0x4b7   : >> { %12278 = vmatpush3.bf16.msra.mxu0 %v12275_v6  ;;  %12566 = vmatpush3.bf16.msra.mxu1 %v12275_v6 }
 0x4b8   : >> { %12280 = vmatprep.subr.bf16.mxu0 %v12279_v5  ;;  %12568 = vmatprep.subr.bf16.mxu1 %v12279_v5 }
 0x4bb   : >> { %12282 = vmatpush3.bf16.msra.mxu0 %v12279_v5  ;;  %12570 = vmatpush3.bf16.msra.mxu1 %v12279_v5 }
 0x4bc   : >> { %12284 = vmatprep.subr.bf16.mxu0 %v12283_v9  ;;  %12572 = vmatprep.subr.bf16.mxu1 %v12283_v9 }
 0x4bf   : >> { %12286 = vmatpush3.bf16.msra.mxu0 %v12283_v9  ;;  %12574 = vmatpush3.bf16.msra.mxu1 %v12283_v9 }
 0x4c0   : >> { %12288 = vmatprep.subr.bf16.mxu0 %v12287_v15  ;;  %12576 = vmatprep.subr.bf16.mxu1 %v12287_v15 }
 0x4c3   : >> { %12290 = vmatpush3.bf16.msra.mxu0 %v12287_v15  ;;  %12578 = vmatpush3.bf16.msra.mxu1 %v12287_v15 }
 0x4c4   : >> { %12292 = vmatprep.subr.bf16.mxu0 %v12291_v14  ;;  %12580 = vmatprep.subr.bf16.mxu1 %v12291_v14 }
 0x4c7   : >> { %12294 = vmatpush3.bf16.msra.mxu0 %v12291_v14  ;;  %12582 = vmatpush3.bf16.msra.mxu1 %v12291_v14  ;;  %v9072_v14 = vld [vmem:[%s15869_s9 + $0x2c0] sm:$0xff] (%p4449_p0) }
 0x4ca   : >> { %10873 = vmatmul.mubr.f32.vlgmr.msra.gmra.mrb[0].mxu0 %v14666_v41  ;;  %11188 = vmatmul.mubr.f32.vlgmr.msra.gmra.mrb[0].mxu1 %v5982_v60 }
 0x59d   : >> { %v10874_v25 = vpop.f32.mrb[0].mxu0  ;;  %v11189_v16 = vpop.f32.mrb[0].mxu1 }
 0x59e   : >> { %v5354_v20 = vadd.f32 %v10874_v25, %v14336_v7  ;;  %v6064_v33 = vadd.f32 %v11189_v16, %v14336_v7  ;;  %v5336_v21 = vpop.f32.mrb[1].mxu0  ;;  %v6052_v22 = vpop.f32.mrb[1].mxu1  ;;  %v13285_v25 = vmov (%p4449_p0), 0.0|0.0   ;;  %v12584_v16 = vpack.c.bf16 (%p4449_p0), %v6157_v13, %v6156_v12  ;;  %v9093_v12 = vld [vmem:[%s15869_s9 + $0x358] sm:$0xff] (%p4449_p0) }
 0x59f   : >> { %v5353_v23 = vadd.f32 %v14336_v7, %v5336_v21  ;;  %v6063_v26 = vadd.f32 %v14336_v7, %v6052_v22  ;;  %12583 = vmatprep.subr.bf16.mxu1 (%p4449_p0), %v13285_v25  ;;  %12715 = vmatprep.subr.bf16.mxu0 (%p4449_p0), %v13285_v25  ;;  %v6158_v7 = vld [vmem:[%s15869_s9 + $0x10] sm:$0xff] (%p4449_p0)  ;;  %v9075_v22 = vld [vmem:[%s15869_s9 + $0x2d8] sm:$0xff] (%p4449_p0) }
 0x5a0   : >> { %v5356_v27 = vmax.f32 %v5354_v20, 0.0  ;;  %v6066_v29 = vmax.f32 %v6064_v33, 0.0  ;;  %v6159_v20 = vld [vmem:[%s15869_s9 + $0x18] sm:$0xff] (%p4449_p0)  ;;  %v9074_v21 = vld [vmem:[%s15869_s9 + $0x2d0] sm:$0xff] (%p4449_p0)  ;;  %12585 = vmatpush3.bf16.msra.mxu1 (%p4449_p0), %v12584_v16  ;;  %v8995_v16 = vld [vmem:[%s15869_s9 + $0xa0] sm:$0xff] (%p4449_p0) }
 0x5a1   : >> { %v5355_v30 = vmax.f32 %v5353_v23, 0.0  ;;  %v6065_v31 = vmax.f32 %v6063_v26, 0.0  ;;  %v13287_v23 = vmov (%p4449_p0), 0.0   ;;  %v12587_v26 = vpack.c.bf16 (%p4449_p0), %v6159_v20, %v6158_v7  ;;  %12586 = vmatprep.subr.bf16.mxu1 (%p4449_p0), %v13285_v25  ;;  %v9094_v7 = vld [vmem:[%s15869_s9 + $0x360] sm:$0xff] (%p4449_p0)  ;;  %v9095_v20 = vld [vmem:[%s15869_s9 + $0x368] sm:$0xff] (%p4449_p0) }
 0x5a2   : >> { %v6068_v34 = vmax.f32 %v5356_v27, %v6066_v29  ;;  %11206 = vmatprep.mubr.msk.f32.mxu1 (%p4449_p0), %vm13286_vm1, %v13287_v23  ;;  %11415 = vmatprep.mubr.msk.f32.mxu0 (%p4449_p0), %vm13286_vm1, %v13287_v23  ;;  %v12719_v27 = vpack.c.bf16 (%p4449_p0), %v9075_v22, %v9074_v21  ;;  %v6160_v29 = vld [vmem:[%s15869_s9 + $0x20] sm:$0xff] (%p4449_p0)  ;;  %v12746_v21 = vpack.c.bf16 (%p4449_p0), %v9095_v20, %v9094_v7  ;;  %v8997_v22 = vld [vmem:[%s15869_s9 + $0xb0] sm:$0xff] (%p4449_p0) }
 0x5a3   : >> { %v6067_v35 = vmax.f32 %v5355_v30, %v6065_v31  ;;  %v6161_v30 = vld [vmem:[%s15869_s9 + $0x28] sm:$0xff] (%p4449_p0)  ;;  %v9076_v31 = vld [vmem:[%s15869_s9 + $0x2e0] sm:$0xff] (%p4449_p0) }
 0x5a4   : >> { %v6094_v41 = vrot.slane %v6068_v34, %v13983_v32  ;;  %v9077_v34 = vld [vmem:[%s15869_s9 + $0x2e8] sm:$0xff] (%p4449_p0)  ;;  %12588 = vmatpush3.bf16.msra.mxu1 (%p4449_p0), %v12587_v26  ;;  %v8998_v26 = vld [vmem:[%s15869_s9 + $0xb8] sm:$0xff] (%p4449_p0) }
 0x5a5   : >> { %v6071_v36 = vcombine.high %v6067_v35, %v6067_v35  ;;  %v6078_v37 = vrot.slane %v6067_v35, %v13983_v32  ;;  %v12590_v35 = vpack.c.bf16 (%p4449_p0), %v6161_v30, %v6160_v29  ;;  %12589 = vmatprep.subr.bf16.mxu1 (%p4449_p0), %v13285_v25  ;;  %v9097_v29 = vld [vmem:[%s15869_s9 + $0x378] sm:$0xff] (%p4449_p0)  ;;  %v12617_v30 = vpack.c.bf16 (%p4449_p0), %v8998_v26, %v8997_v22  ;;  %v9117_v22 = vld [vmem:[%s15869_s9 + $0x400] sm:$0xff] (%p4449_p0)  ;;  %v9118_v26 = vld [vmem:[%s15869_s9 + $0x408] sm:$0xff] (%p4449_p0) }
 0x5a6   : >> { %v6129_v38 = vsel %vm3442_vm6, %v6094_v41, -inf  ;;  %v12722_v41 = vpack.c.bf16 (%p4449_p0), %v9077_v34, %v9076_v31  ;;  %v9000_v34 = vld [vmem:[%s15869_s9 + $0xc0] sm:$0xff] (%p4449_p0) }
 0x5a7   : >> { %v6130_v39 = vrot.slane %v6129_v38, 4  ;;  %v6085_v40 = vrot.slane %v6071_v36, %v13983_v32  ;;  %v6086_v42 = vcombine.high %v6078_v37, %v6078_v37  ;;  %v6101_v44 = vsel %vm3442_vm6, %v6078_v37, -inf  ;;  %v9073_v32 = vld [vmem:[%s15869_s9 + $0x2c8] sm:$0xff] (%p4449_p0)  ;;  %v6162_v36 = vld [vmem:[%s15869_s9 + $0x30] sm:$0xff] (%p4449_p0)  ;;  %v6163_v37 = vld [vmem:[%s15869_s9 + $0x38] sm:$0xff] (%p4449_p0) }
 0x5a8   : >> { %v6102_v2 = vrot.slane %v6101_v44, 4  ;;  %v12716_v33 = vpack.c.bf16 (%p4449_p0), %v9073_v32, %v9072_v14  ;;  %12591 = vmatpush3.bf16.msra.mxu1 (%p4449_p0), %v12590_v35  ;;  %v8996_v32 = vld [vmem:[%s15869_s9 + $0xa8] sm:$0xff] (%p4449_p0) }
 0x5a9   : >> { %v6131_v45 = vmax.f32 %v6129_v38, %v6130_v39  ;;  %v6087_v48 = vcombine.high %v6085_v40, %v6085_v40  ;;  %v6108_v47 = vsel %vm3442_vm6, %v6086_v42, -inf  ;;  %v6115_v11 = vsel %vm3442_vm6, %v6085_v40, -inf  ;;  %v9078_v38 = vld [vmem:[%s15869_s9 + $0x2f0] sm:$0xff] (%p4449_p0)  ;;  %v9079_v39 = vld [vmem:[%s15869_s9 + $0x2f8] sm:$0xff] (%p4449_p0)  ;;  %12592 = vmatprep.subr.bf16.mxu1 (%p4449_p0), %v13285_v25  ;;  %v9001_v35 = vld [vmem:[%s15869_s9 + $0xc8] sm:$0xff] (%p4449_p0) }
 0x5aa   : >> { %v6103_v49 = vmax.f32 %v6101_v44, %v6102_v2  ;;  %v6109_v28 = vrot.slane %v6108_v47, 4  ;;  %v6116_v51 = vrot.slane %v6115_v11, 4  ;;  %12717 = vmatpush3.bf16.msra.mxu0 (%p4449_p0), %v12716_v33  ;;  %v12593_v40 = vpack.c.bf16 (%p4449_p0), %v6163_v37, %v6162_v36  ;;  %v8982_v44 = vld [vmem:[%s15869_s9 + $0x40] sm:$0xff] (%p4449_p0)  ;;  %v8983_v2 = vld [vmem:[%s15869_s9 + $0x48] sm:$0xff] (%p4449_p0) }
 0x5ab   : >> { %v6132_v52 = vrot.slane %v6131_v45, 2  ;;  %v6122_v18 = vsel %vm3442_vm6, %v6087_v48, -inf  ;;  %12718 = vmatprep.subr.bf16.mxu0 (%p4449_p0), %v13285_v25  ;;  %v12725_v42 = vpack.c.bf16 (%p4449_p0), %v9079_v39, %v9078_v38  ;;  %v9081_v48 = vld [vmem:[%s15869_s9 + $0x300] sm:$0xff] (%p4449_p0)  ;;  %v12614_v33 = vpack.c.bf16 (%p4449_p0), %v8996_v32, %v8995_v16  ;;  %v9100_v36 = vld [vmem:[%s15869_s9 + $0x388] sm:$0xff] (%p4449_p0)  ;;  %v9114_v16 = vld [vmem:[%s15869_s9 + $0x3f0] sm:$0xff] (%p4449_p0) }
 0x5ac   : >> { %v6104_v53 = vrot.slane %v6103_v49, 2  ;;  %v6110_v19 = vmax.f32 %v6108_v47, %v6109_v28  ;;  %v6117_v54 = vmax.f32 %v6115_v11, %v6116_v51  ;;  %v6123_v56 = vrot.slane %v6122_v18, 4  ;;  %v9082_v47 = vld [vmem:[%s15869_s9 + $0x308] sm:$0xff] (%p4449_p0)  ;;  %12594 = vmatpush3.bf16.msra.mxu1 (%p4449_p0), %v12593_v40  ;;  %v9115_v32 = vld [vmem:[%s15869_s9 + $0x3f8] sm:$0xff] (%p4449_p0) }
 0x5ad   : >> { %v6133_v55 = vmax.f32 %v6131_v45, %v6132_v52  ;;  %12595 = vmatprep.subr.bf16.mxu1 (%p4449_p0), %v13285_v25  ;;  %v12728_v51 = vpack.c.bf16 (%p4449_p0), %v9082_v47, %v9081_v48  ;;  %v8984_v52 = vld [vmem:[%s15869_s9 + $0x50] sm:$0xff] (%p4449_p0)  ;;  %v12620_v38 = vpack.c.bf16 (%p4449_p0), %v9001_v35, %v9000_v34  ;;  %v9102_v48 = vld [vmem:[%s15869_s9 + $0x398] sm:$0xff] (%p4449_p0)  ;;  %v12773_v20 = vpack.c.bf16 (%p4449_p0), %v9115_v32, %v9114_v16 }
 0x5ae   : >> { %v6105_v24 = vmax.f32 %v6103_v49, %v6104_v53  ;;  %v6111_v58 = vrot.slane %v6110_v19, 2  ;;  %v6118_v17 = vrot.slane %v6117_v54, 2  ;;  %v6124_v59 = vmax.f32 %v6122_v18, %v6123_v56  ;;  %12720 = vmatpush3.bf16.msra.mxu0 (%p4449_p0), %v12719_v27  ;;  %v8985_v18 = vld [vmem:[%s15869_s9 + $0x58] sm:$0xff] (%p4449_p0)  ;;  %v9083_v53 = vld [vmem:[%s15869_s9 + $0x310] sm:$0xff] (%p4449_p0) }
 0x5af   : >> { %v6134_v1 = vrot.slane %v6133_v55, 1  ;;  %12721 = vmatprep.subr.bf16.mxu0 (%p4449_p0), %v13285_v25  ;;  %v12596_v49 = vpack.c.bf16 (%p4449_p0), %v8983_v2, %v8982_v44  ;;  %v9096_v27 = vld [vmem:[%s15869_s9 + $0x370] sm:$0xff] (%p4449_p0)  ;;  %v9003_v44 = vld [vmem:[%s15869_s9 + $0xd8] sm:$0xff] (%p4449_p0) }
 0x5b0   : >> { %v6106_v60 = vrot.slane %v6105_v24, 1  ;;  %v6112_v61 = vmax.f32 %v6110_v19, %v6111_v58  ;;  %v6119_v62 = vmax.f32 %v6117_v54, %v6118_v17  ;;  %v6125_v0 = vrot.slane %v6124_v59, 2  ;;  %v9084_v19 = vld [vmem:[%s15869_s9 + $0x318] sm:$0xff] (%p4449_p0)  ;;  %v8987_v58 = vld [vmem:[%s15869_s9 + $0x68] sm:$0xff] (%p4449_p0)  ;;  %v9085_v17 = vld [vmem:[%s15869_s9 + $0x320] sm:$0xff] (%p4449_p0) }
 0x5b1   : >> { %v6135_v9 = vmax.f32 %v6133_v55, %v6134_v1  ;;  %v12599_v54 = vpack.c.bf16 (%p4449_p0), %v8985_v18, %v8984_v52  ;;  %v12731_v56 = vpack.c.bf16 (%p4449_p0), %v9084_v19, %v9083_v53  ;;  %v8991_v1 = vld [vmem:[%s15869_s9 + $0x80] sm:$0xff] (%p4449_p0)  ;;  %v12749_v31 = vpack.c.bf16 (%p4449_p0), %v9097_v29, %v9096_v27  ;;  %v9101_v2 = vld [vmem:[%s15869_s9 + $0x390] sm:$0xff] (%p4449_p0)  ;;  %v9104_v18 = vld [vmem:[%s15869_s9 + $0x3a8] sm:$0xff] (%p4449_p0) }
 0x5b2   : >> { %v6113_v43 = vrot.slane %v6112_v61, 1  ;;  %v6120_v50 = vrot.slane %v6119_v62, 1  ;;  %v6126_v63 = vmax.f32 %v6124_v59, %v6125_v0  ;;  %v6107_v6 = vmax.f32 %v6105_v24, %v6106_v60  ;;  %12723 = vmatpush3.bf16.msra.mxu0 (%p4449_p0), %v12722_v41  ;;  %v8986_v24 = vld [vmem:[%s15869_s9 + $0x60] sm:$0xff] (%p4449_p0)  ;;  %v9086_v59 = vld [vmem:[%s15869_s9 + $0x328] sm:$0xff] (%p4449_p0)  ;;  %v9087_v0 = vld [vmem:[%s15869_s9 + $0x330] sm:$0xff] (%p4449_p0) }
 0x5b3   : > { %12724 = vmatprep.subr.bf16.mxu0 (%p4449_p0), %v13285_v25  ;;  %v12602_v55 = vpack.c.bf16 (%p4449_p0), %v8987_v58, %v8986_v24  ;;  %v12734_v60 = vpack.c.bf16 (%p4449_p0), %v9086_v59, %v9085_v17  ;;  %v9099_v41 = vld [vmem:[%s15869_s9 + $0x380] sm:$0xff] (%p4449_p0)  ;;  %v9105_v24 = vld [vmem:[%s15869_s9 + $0x3b0] sm:$0xff] (%p4449_p0)  ;;  %v9106_v58 = vld [vmem:[%s15869_s9 + $0x3b8] sm:$0xff] (%p4449_p0) }
 0x5b4   : >> { %v6114_v3 = vmax.f32 %v6112_v61, %v6113_v43  ;;  %v6121_v4 = vmax.f32 %v6119_v62, %v6120_v50  ;;  %v6127_v5 = vrot.slane %v6126_v63, 1  ;;  %4451 = sbr.rel (!%p4449_p0) target bundleno = 935 (0x3a7), region = 254  ;;  %v8988_v61 = vld [vmem:[%s15869_s9 + $0x70] sm:$0xff] (%p4449_p0)  ;;  %v8989_v62 = vld [vmem:[%s15869_s9 + $0x78] sm:$0xff] (%p4449_p0)  ;;  %v12752_v40 = vpack.c.bf16 (%p4449_p0), %v9100_v36, %v9099_v41  ;;  %v9103_v52 = vld [vmem:[%s15869_s9 + $0x3a0] sm:$0xff] (%p4449_p0) }
 0x5b5   : > { %v9088_v43 = vld [vmem:[%s15869_s9 + $0x338] sm:$0xff] (%p4449_p0)  ;;  %v12605_v50 = vpack.c.bf16 (%p4449_p0), %v8989_v62, %v8988_v61  ;;  %v12758_v19 = vpack.c.bf16 (%p4449_p0), %v9104_v18, %v9103_v52  ;;  %v12761_v59 = vpack.c.bf16 (%p4449_p0), %v9106_v58, %v9105_v24  ;;  %v9108_v61 = vld [vmem:[%s15869_s9 + $0x3c0] sm:$0xff] (%p4449_p0)  ;;  %v9109_v62 = vld [vmem:[%s15869_s9 + $0x3c8] sm:$0xff] (%p4449_p0) }
 0x5b6   : >> { %v6128_v46 = vmax.f32 %v6126_v63, %v6127_v5  ;;  %v6142_v8 = vsel %vm3555_vm7, %v6114_v3, %v6107_v6  ;;  %12726 = vmatpush3.bf16.msra.mxu0 (%p4449_p0), %v12725_v42  ;;  %v12737_v63 = vpack.c.bf16 (%p4449_p0), %v9088_v43, %v9087_v0  ;;  %v8992_v6 = vld [vmem:[%s15869_s9 + $0x88] sm:$0xff] (%p4449_p0)  ;;  %v9090_v3 = vld [vmem:[%s15869_s9 + $0x340] sm:$0xff] (%p4449_p0)  ;;  %v9002_v42 = vld [vmem:[%s15869_s9 + $0xd0] sm:$0xff] (%p4449_p0) }
 0x5b7   : >> { %v6144_v57 = vsel %vm3557_vm8, %v6121_v4, %v6142_v8  ;;  %12727 = vmatprep.subr.bf16.mxu0 (%p4449_p0), %v13285_v25  ;;  %v9091_v4 = vld [vmem:[%s15869_s9 + $0x348] sm:$0xff] (%p4449_p0)  ;;  %v12623_v47 = vpack.c.bf16 (%p4449_p0), %v9003_v44, %v9002_v42  ;;  %v9020_v34 = vld [vmem:[%s15869_s9 + $0x150] sm:$0xff] (%p4449_p0)  ;;  %v9021_v35 = vld [vmem:[%s15869_s9 + $0x158] sm:$0xff] (%p4449_p0) }
 0x5b8   : >> { %v6146_v10 = vsel %vm3559_vm9, %v6128_v46, %v6144_v57  ;;  %v12608_v46 = vpack.c.bf16 (%p4449_p0), %v8992_v6, %v8991_v1  ;;  %v8993_v57 = vld [vmem:[%s15869_s9 + $0x90] sm:$0xff] (%p4449_p0)  ;;  %v9012_v6 = vld [vmem:[%s15869_s9 + $0x118] sm:$0xff] (%p4449_p0)  ;;  %v12647_v36 = vpack.c.bf16 (%p4449_p0), %v9021_v35, %v9020_v34  ;;  %v9122_v42 = vld [vmem:[%s15869_s9 + $0x428] sm:$0xff] (%p4449_p0) }
 0x5b9   : >> { %v6148_v15 = vsel %vm3561_vm10, %v6135_v9, %v6146_v10  ;;  %v12740_v9 = vpack.c.bf16 (%p4449_p0), %v9091_v4, %v9090_v3  ;;  %v8994_v10 = vld [vmem:[%s15869_s9 + $0x98] sm:$0xff] (%p4449_p0)  ;;  %v9011_v1 = vld [vmem:[%s15869_s9 + $0x110] sm:$0xff] (%p4449_p0)  ;;  %v9027_v18 = vld [vmem:[%s15869_s9 + $0x180] sm:$0xff] (%p4449_p0) }
 0x5ba   : >> { %6153 = vst.msk [vmem:[%s6151_s1] sm:$0x1f] %vm6152_vm0, %v6148_v15  ;;  %v9092_v15 = vld [vmem:[%s15869_s9 + $0x350] sm:$0xff] (%p4449_p0)  ;;  %v12611_v13 = vpack.c.bf16 (%p4449_p0), %v8994_v10, %v8993_v57  ;;  %v9111_v4 = vld [vmem:[%s15869_s9 + $0x3d8] sm:$0xff] (%p4449_p0)  ;;  %v9112_v57 = vld [vmem:[%s15869_s9 + $0x3e0] sm:$0xff] (%p4449_p0)  ;;  %s8423_s1 = sshll.u32 (%p4449_p0), %s13432_s24, 4  ;;  %s15817_s1 = int_to_ptr.vmem [resolvable:$true] %s8423_s1 }
 0x5bb   : > { %v12743_v14 = vpack.c.bf16 %v9093_v12, %v9092_v15  ;;  %v9110_v3 = vld [vmem:[%s15869_s9 + $0x3d0] sm:$0xff]  ;;  %v9113_v10 = vld [vmem:[%s15869_s9 + $0x3e8] sm:$0xff]  ;;  %v9120_v41 = vld [vmem:[%s15869_s9 + $0x418] sm:$0xff]  ;;  %s13188_s17 = scalar_lea.vmem %s15817_s1, 16  ;;  %p13195_p4 = scmp.lt.s32.totalorder %s15817_s1, %s13193_s30 }
 0x5bc   : > { %v12770_v12 = vpack.c.bf16 %v9113_v10, %v9112_v57  ;;  %v9036_v10 = vld [vmem:[%s15869_s9 + $0x1c0] sm:$0xff]  ;;  %v9140_v35 = vld [vmem:[%s15869_s9 + $0x4a8] sm:$0xff]  ;;  %p13189_p1 = scmp.ne.s32.totalorder %s15817_s1, %s13188_s17  ;;  %p13196_p7 = scmp.lt.s32.totalorder %s13194_s26, %s13188_s17 }
 0x5bd   : > { %v9139_v34 = vld [vmem:[%s15869_s9 + $0x4a0] sm:$0xff] }
 0x5be   : > { %p13190_p2 = pnand %p13189_p1, %p13407_p5  ;;  %p13197_p8 = por %p13196_p7, %p13195_p4 }
 0x5c0   : > { %p13191_p3 = pneg %p13190_p2 }
 0x5c1   : > { %v14967_v45 = vld [vmem:[#allocation5 + $0x10] sm:$0x1f]  ;;  %v14976_v11 = vld [vmem:[#allocation5] sm:$0x1f] }
 0x5c2   : > { %v7082_v28 = vrot.slane %v14967_v45, 1  ;;  %11207 = vmatmul.mubr.msk.f32.vlgmr.msra.gmra.mrb[0].mxu1 %vm3578_vm14, %v14976_v11  ;;  %v6248_v5 = vrot.slane %v14976_v11, 1  ;;  %v7165_v8 = vrot.slane %v14967_v45, 2  ;;  %v6331_v37 = vrot.slane %v14976_v11, 2  ;;  %p13198_p9 = pnand %p13197_p8, %p13191_p3 }
 0x5c3   : > { %12597 = vmatpush3.bf16.msra.mxu1 %v12596_v49  ;;  %11225 = vmatprep.mubr.msk.f32.mxu1 %vm13286_vm1, %v13287_v23  ;;  %v7248_v39 = vrot.slane %v14967_v45, 3  ;;  %v12755_v49 = vpack.c.bf16 %v9102_v48, %v9101_v2  ;;  %v6414_v0 = vrot.slane %v14976_v11, 3  ;;  %v6497_v27 = vrot.slane %v14976_v11, 4  ;;  %v9119_v11 = vld [vmem:[%s15869_s9 + $0x410] sm:$0xff] }
 0x5c4   : > { %11416 = vmatmul.mubr.msk.f32.vlgmr.msra.gmra.mrb[0].mxu0 %vm3578_vm14, %v7082_v28  ;;  %12598 = vmatprep.subr.bf16.mxu1 %v13285_v25  ;;  %v9004_v28 = vld [vmem:[%s15869_s9 + $0xe0] sm:$0xff]  ;;  %v9024_v48 = vld [vmem:[%s15869_s9 + $0x170] sm:$0xff] }
 0x5c5   : > { %12729 = vmatpush3.bf16.msra.mxu0 %v12728_v51  ;;  %11434 = vmatprep.mubr.msk.f32.mxu0 %vm13286_vm1, %v13287_v23  ;;  %v9005_v51 = vld [vmem:[%s15869_s9 + $0xe8] sm:$0xff] }
 0x5c6   : > { %12730 = vmatprep.subr.bf16.mxu0 %v13285_v25  ;;  %v12626_v53 = vpack.c.bf16 %v9005_v51, %v9004_v28  ;;  %v9124_v28 = vld [vmem:[%s15869_s9 + $0x438] sm:$0xff] }
 0x5c7   : > { %12600 = vmatpush3.bf16.msra.mxu1 %v12599_v54  ;;  %v9006_v54 = vld [vmem:[%s15869_s9 + $0xf0] sm:$0xff] }
 0x5c8   : > { %12601 = vmatprep.subr.bf16.mxu1 %v13285_v25 }
 0x5c9   : > { %12732 = vmatpush3.bf16.msra.mxu0 %v12731_v56  ;;  %v9007_v56 = vld [vmem:[%s15869_s9 + $0xf8] sm:$0xff] }
 0x5ca   : > { %12733 = vmatprep.subr.bf16.mxu0 %v13285_v25  ;;  %v12629_v17 = vpack.c.bf16 %v9007_v56, %v9006_v54  ;;  %v9127_v54 = vld [vmem:[%s15869_s9 + $0x448] sm:$0xff] }
 0x5cb   : > { %12603 = vmatpush3.bf16.msra.mxu1 %v12602_v55  ;;  %v9009_v55 = vld [vmem:[%s15869_s9 + $0x100] sm:$0xff]  ;;  %v15300_v56 = vld [vmem:[#allocation5 + $0x8] sm:$0x1f] }
 0x5cc   : > { %12604 = vmatprep.subr.bf16.mxu1 %v13285_v25 }
 0x5cd   : > { %12735 = vmatpush3.bf16.msra.mxu0 %v12734_v60  ;;  %v9010_v60 = vld [vmem:[%s15869_s9 + $0x108] sm:$0xff] }
 0x5ce   : > { %12736 = vmatprep.subr.bf16.mxu0 %v13285_v25  ;;  %v12632_v43 = vpack.c.bf16 %v9010_v60, %v9009_v55  ;;  %v9030_v55 = vld [vmem:[%s15869_s9 + $0x198] sm:$0xff]  ;;  %v9128_v60 = vld [vmem:[%s15869_s9 + $0x450] sm:$0xff] }
 0x5cf   : > { %12606 = vmatpush3.bf16.msra.mxu1 %v12605_v50  ;;  %v7331_v50 = vrot.slane %v14967_v45, 4 }
 0x5d0   : > { %12607 = vmatprep.subr.bf16.mxu1 %v13285_v25 }
 0x5d1   : > { %12738 = vmatpush3.bf16.msra.mxu0 %v12737_v63  ;;  %v12764_v63 = vpack.c.bf16 %v9109_v62, %v9108_v61  ;;  %v9129_v61 = vld [vmem:[%s15869_s9 + $0x458] sm:$0xff] }
 0x5d2   : > { %12739 = vmatprep.subr.bf16.mxu0 %v13285_v25  ;;  %11226 = vmatmul.mubr.msk.f32.vlgmr.msra.gmra.mrb[0].mxu1 %vm3578_vm14, %v6248_v5  ;;  %v12635_v5 = vpack.c.bf16 %v9012_v6, %v9011_v1  ;;  %v9131_v1 = vld [vmem:[%s15869_s9 + $0x468] sm:$0xff] }
 0x5d3   : > { %12609 = vmatpush3.bf16.msra.mxu1 %v12608_v46  ;;  %11244 = vmatprep.mubr.msk.f32.mxu1 %vm13286_vm1, %v13287_v23  ;;  %v12767_v46 = vpack.c.bf16 %v9111_v4, %v9110_v3  ;;  %v9033_v4 = vld [vmem:[%s15869_s9 + $0x1b0] sm:$0xff] }
 0x5d4   : > { %11435 = vmatmul.mubr.msk.f32.vlgmr.msra.gmra.mrb[0].mxu0 %vm3578_vm14, %v7165_v8  ;;  %12610 = vmatprep.subr.bf16.mxu1 %v13285_v25  ;;  %v9013_v8 = vld [vmem:[%s15869_s9 + $0x120] sm:$0xff] }
 0x5d5   : > { %12741 = vmatpush3.bf16.msra.mxu0 %v12740_v9  ;;  %11453 = vmatprep.mubr.msk.f32.mxu0 %vm13286_vm1, %v13287_v23  ;;  %v9014_v9 = vld [vmem:[%s15869_s9 + $0x128] sm:$0xff] }
 0x5d6   : > { %12742 = vmatprep.subr.bf16.mxu0 %v13285_v25  ;;  %v12638_v15 = vpack.c.bf16 %v9014_v9, %v9013_v8  ;;  %v9133_v8 = vld [vmem:[%s15869_s9 + $0x478] sm:$0xff] }
 0x5d7   : > { %12612 = vmatpush3.bf16.msra.mxu1 %v12611_v13  ;;  %v9015_v13 = vld [vmem:[%s15869_s9 + $0x130] sm:$0xff] }
 0x5d8   : > { %12613 = vmatprep.subr.bf16.mxu1 %v13285_v25 }
 0x5d9   : > { %12744 = vmatpush3.bf16.msra.mxu0 %v12743_v14  ;;  %v9016_v14 = vld [vmem:[%s15869_s9 + $0x138] sm:$0xff] }
 0x5da   : > { %12745 = vmatprep.subr.bf16.mxu0 %v13285_v25  ;;  %v12641_v7 = vpack.c.bf16 %v9016_v14, %v9015_v13  ;;  %v9136_v13 = vld [vmem:[%s15869_s9 + $0x488] sm:$0xff]  ;;  %v6665_v14 = vrot.slane %v15300_v56, 1 }
 0x5db   : > { %12615 = vmatpush3.bf16.msra.mxu1 %v12614_v33  ;;  %v9018_v33 = vld [vmem:[%s15869_s9 + $0x140] sm:$0xff] }
 0x5dc   : > { %12616 = vmatprep.subr.bf16.mxu1 %v13285_v25 }
 0x5dd   : > { %12747 = vmatpush3.bf16.msra.mxu0 %v12746_v21  ;;  %v9019_v21 = vld [vmem:[%s15869_s9 + $0x148] sm:$0xff] }
 0x5de   : > { %12748 = vmatprep.subr.bf16.mxu0 %v13285_v25  ;;  %v12644_v29 = vpack.c.bf16 %v9019_v21, %v9018_v33  ;;  %v9039_v33 = vld [vmem:[%s15869_s9 + $0x1d8] sm:$0xff]  ;;  %v9137_v21 = vld [vmem:[%s15869_s9 + $0x490] sm:$0xff] }
 0x5df   : > { %12618 = vmatpush3.bf16.msra.mxu1 %v12617_v30  ;;  %v15236_v30 = vld [vmem:[#allocation5 + $0x18] sm:$0x1f] }
 0x5e0   : > { %12619 = vmatprep.subr.bf16.mxu1 %v13285_v25  ;;  %v7499_v58 = vrot.slane %v15236_v30, 1  ;;  %v7582_v32 = vrot.slane %v15236_v30, 2 }
 0x5e1   : > { %12750 = vmatpush3.bf16.msra.mxu0 %v12749_v31  ;;  %v12776_v31 = vpack.c.bf16 %v9118_v26, %v9117_v22  ;;  %v9138_v22 = vld [vmem:[%s15869_s9 + $0x498] sm:$0xff] }
 0x5e2   : > { %12751 = vmatprep.subr.bf16.mxu0 %v13285_v25  ;;  %11245 = vmatmul.mubr.msk.f32.vlgmr.msra.gmra.mrb[0].mxu1 %vm3578_vm14, %v6331_v37  ;;  %v12779_v37 = vpack.c.bf16 %v9120_v41, %v9119_v11  ;;  %v12806_v41 = vpack.c.bf16 %v9140_v35, %v9139_v34 }
 0x5e3   : > { %12621 = vmatpush3.bf16.msra.mxu1 %v12620_v38  ;;  %11263 = vmatprep.mubr.msk.f32.mxu1 %vm13286_vm1, %v13287_v23  ;;  %v9022_v38 = vld [vmem:[%s15869_s9 + $0x160] sm:$0xff] }
 0x5e4   : > { %11454 = vmatmul.mubr.msk.f32.vlgmr.msra.gmra.mrb[0].mxu0 %vm3578_vm14, %v7248_v39  ;;  %12622 = vmatprep.subr.bf16.mxu1 %v13285_v25  ;;  %v9023_v39 = vld [vmem:[%s15869_s9 + $0x168] sm:$0xff] }
 0x5e5   : > { %12753 = vmatpush3.bf16.msra.mxu0 %v12752_v40  ;;  %11472 = vmatprep.mubr.msk.f32.mxu0 %vm13286_vm1, %v13287_v23  ;;  %v9121_v40 = vld [vmem:[%s15869_s9 + $0x420] sm:$0xff]  ;;  %v12650_v44 = vpack.c.bf16 %v9023_v39, %v9022_v38  ;;  %v9141_v38 = vld [vmem:[%s15869_s9 + $0x4b0] sm:$0xff]  ;;  %v9142_v39 = vld [vmem:[%s15869_s9 + $0x4b8] sm:$0xff] }
 0x5e6   : > { %12754 = vmatprep.subr.bf16.mxu0 %v13285_v25  ;;  %v12782_v2 = vpack.c.bf16 %v9122_v42, %v9121_v40  ;;  %v12809_v42 = vpack.c.bf16 %v9142_v39, %v9141_v38  ;;  %v6914_v38 = vrot.slane %v15300_v56, 4 }
 0x5e7   : > { %12624 = vmatpush3.bf16.msra.mxu1 %v12623_v47  ;;  %v9025_v47 = vld [vmem:[%s15869_s9 + $0x178] sm:$0xff] }
 0x5e8   : > { %12625 = vmatprep.subr.bf16.mxu1 %v13285_v25  ;;  %v12653_v51 = vpack.c.bf16 %v9025_v47, %v9024_v48  ;;  %v9144_v48 = vld [vmem:[%s15869_s9 + $0x4c0] sm:$0xff]  ;;  %v9145_v47 = vld [vmem:[%s15869_s9 + $0x4c8] sm:$0xff] }
 0x5e9   : > { %12756 = vmatpush3.bf16.msra.mxu0 %v12755_v49  ;;  %v9123_v49 = vld [vmem:[%s15869_s9 + $0x430] sm:$0xff] }
 0x5ea   : > { %12757 = vmatprep.subr.bf16.mxu0 %v13285_v25  ;;  %v12785_v52 = vpack.c.bf16 %v9124_v28, %v9123_v49  ;;  %v6748_v49 = vrot.slane %v15300_v56, 2 }
 0x5eb   : > { %12627 = vmatpush3.bf16.msra.mxu1 %v12626_v53  ;;  %v9028_v53 = vld [vmem:[%s15869_s9 + $0x188] sm:$0xff] }
 0x5ec   : > { %12628 = vmatprep.subr.bf16.mxu1 %v13285_v25  ;;  %v12656_v24 = vpack.c.bf16 %v9028_v53, %v9027_v18  ;;  %v9047_v18 = vld [vmem:[%s15869_s9 + $0x210] sm:$0xff]  ;;  %v9048_v53 = vld [vmem:[%s15869_s9 + $0x218] sm:$0xff] }
 0x5ed   : > { %12759 = vmatpush3.bf16.msra.mxu0 %v12758_v19  ;;  %v9126_v19 = vld [vmem:[%s15869_s9 + $0x440] sm:$0xff] }
 0x5ee   : > { %12760 = vmatprep.subr.bf16.mxu0 %v13285_v25 }
 0x5ef   : > { %12630 = vmatpush3.bf16.msra.mxu1 %v12629_v17  ;;  %v12788_v17 = vpack.c.bf16 %v9127_v54, %v9126_v19  ;;  %v9146_v19 = vld [vmem:[%s15869_s9 + $0x4d0] sm:$0xff]  ;;  %v9147_v54 = vld [vmem:[%s15869_s9 + $0x4d8] sm:$0xff] }
 0x5f0   : > { %12631 = vmatprep.subr.bf16.mxu1 %v13285_v25 }
 0x5f1   : > { %12762 = vmatpush3.bf16.msra.mxu0 %v12761_v59  ;;  %v9029_v59 = vld [vmem:[%s15869_s9 + $0x190] sm:$0xff] }
 0x5f2   : > { %12763 = vmatprep.subr.bf16.mxu0 %v13285_v25  ;;  %11264 = vmatmul.mubr.msk.f32.vlgmr.msra.gmra.mrb[0].mxu1 %vm3578_vm14, %v6414_v0  ;;  %v12659_v62 = vpack.c.bf16 %v9030_v55, %v9029_v59  ;;  %v12791_v0 = vpack.c.bf16 %v9129_v61, %v9128_v60  ;;  %v9050_v59 = vld [vmem:[%s15869_s9 + $0x228] sm:$0xff]  ;;  %v9148_v55 = vld [vmem:[%s15869_s9 + $0x4e0] sm:$0xff] }
 0x5f3   : > { %12633 = vmatpush3.bf16.msra.mxu1 %v12632_v43  ;;  %11282 = vmatprep.mubr.msk.f32.mxu1 %vm13286_vm1, %v13287_v23  ;;  %v9031_v43 = vld [vmem:[%s15869_s9 + $0x1a0] sm:$0xff]  ;;  %v9149_v60 = vld [vmem:[%s15869_s9 + $0x4e8] sm:$0xff] }
 0x5f4   : > { %11473 = vmatmul.mubr.msk.f32.vlgmr.msra.gmra.mrb[0].mxu0 %vm3578_vm14, %v7331_v50  ;;  %12634 = vmatprep.subr.bf16.mxu1 %v13285_v25  ;;  %v9032_v50 = vld [vmem:[%s15869_s9 + $0x1a8] sm:$0xff] }
 0x5f5   : > { %12765 = vmatpush3.bf16.msra.mxu0 %v12764_v63  ;;  %11491 = vmatprep.mubr.msk.f32.mxu0 %vm13286_vm1, %v13287_v23  ;;  %v9130_v63 = vld [vmem:[%s15869_s9 + $0x460] sm:$0xff]  ;;  %v12662_v6 = vpack.c.bf16 %v9032_v50, %v9031_v43  ;;  %v9052_v43 = vld [vmem:[%s15869_s9 + $0x238] sm:$0xff]  ;;  %v9150_v50 = vld [vmem:[%s15869_s9 + $0x4f0] sm:$0xff] }
 0x5f6   : > { %12766 = vmatprep.subr.bf16.mxu0 %v13285_v25  ;;  %v12794_v3 = vpack.c.bf16 %v9131_v1, %v9130_v63  ;;  %v9151_v63 = vld [vmem:[%s15869_s9 + $0x4f8] sm:$0xff] }
 0x5f7   : > { %12636 = vmatpush3.bf16.msra.mxu1 %v12635_v5  ;;  %v9034_v5 = vld [vmem:[%s15869_s9 + $0x1b8] sm:$0xff] }
 0x5f8   : > { %12637 = vmatprep.subr.bf16.mxu1 %v13285_v25  ;;  %v12665_v9 = vpack.c.bf16 %v9034_v5, %v9033_v4  ;;  %v9055_v4 = vld [vmem:[%s15869_s9 + $0x248] sm:$0xff]  ;;  %v9153_v5 = vld [vmem:[%s15869_s9 + $0x500] sm:$0xff] }
 0x5f9   : > { %12768 = vmatpush3.bf16.msra.mxu0 %v12767_v46  ;;  %v9132_v46 = vld [vmem:[%s15869_s9 + $0x470] sm:$0xff] }
 0x5fa   : > { %12769 = vmatprep.subr.bf16.mxu0 %v13285_v25  ;;  %v12797_v57 = vpack.c.bf16 %v9133_v8, %v9132_v46  ;;  %v9154_v46 = vld [vmem:[%s15869_s9 + $0x508] sm:$0xff]  ;;  %v6831_v8 = vrot.slane %v15300_v56, 3 }
 0x5fb   : > { %12639 = vmatpush3.bf16.msra.mxu1 %v12638_v15  ;;  %v9037_v15 = vld [vmem:[%s15869_s9 + $0x1c8] sm:$0xff] }
 0x5fc   : > { %12640 = vmatprep.subr.bf16.mxu1 %v13285_v25  ;;  %v12668_v16 = vpack.c.bf16 %v9037_v15, %v9036_v10  ;;  %v12824_v10 = vpack.c.bf16 %v9154_v46, %v9153_v5  ;;  %v9056_v15 = vld [vmem:[%s15869_s9 + $0x250] sm:$0xff]  ;;  %v9180_v46 = vld [vmem:[%s15869_s9 + $0x5c0] sm:$0xff] }
 0x5fd   : > { %12771 = vmatpush3.bf16.msra.mxu0 %v12770_v12  ;;  %v9135_v12 = vld [vmem:[%s15869_s9 + $0x480] sm:$0xff] }
 0x5fe   : > { %12772 = vmatprep.subr.bf16.mxu0 %v13285_v25 }
 0x5ff   : > { %12642 = vmatpush3.bf16.msra.mxu1 %v12641_v7  ;;  %v12800_v7 = vpack.c.bf16 %v9136_v13, %v9135_v12  ;;  %v9057_v12 = vld [vmem:[%s15869_s9 + $0x258] sm:$0xff]  ;;  %v9155_v13 = vld [vmem:[%s15869_s9 + $0x510] sm:$0xff] }
 0x600   : > { %12643 = vmatprep.subr.bf16.mxu1 %v13285_v25 }
 0x601   : > { %12774 = vmatpush3.bf16.msra.mxu0 %v12773_v20  ;;  %v9038_v20 = vld [vmem:[%s15869_s9 + $0x1d0] sm:$0xff] }
 0x602   : > { %12775 = vmatprep.subr.bf16.mxu0 %v13285_v25  ;;  %11283 = vmatmul.mubr.msk.f32.vlgmr.msra.gmra.mrb[0].mxu1 %vm3578_vm14, %v6497_v27  ;;  %v12671_v26 = vpack.c.bf16 %v9039_v33, %v9038_v20  ;;  %v12803_v27 = vpack.c.bf16 %v9138_v22, %v9137_v21  ;;  %v9157_v20 = vld [vmem:[%s15869_s9 + $0x520] sm:$0xff]  ;;  %v9158_v33 = vld [vmem:[%s15869_s9 + $0x528] sm:$0xff] }
 0x603   : > { %12645 = vmatpush3.bf16.msra.mxu1 %v12644_v29  ;;  %11301 = vmatprep.mubr.msk.f32.mxu1 %vm13286_vm1, %v13287_v23  ;;  %v9040_v29 = vld [vmem:[%s15869_s9 + $0x1e0] sm:$0xff]  ;;  %v12830_v22 = vpack.c.bf16 %v9158_v33, %v9157_v20  ;;  %v9190_v33 = vld [vmem:[%s15869_s9 + $0x608] sm:$0xff] }
 0x604   : > { %11492 = vmatmul.mubr.msk.f32.vlgmr.msra.gmra.mrb[0].mxu0 %vm3578_vm14, %v15236_v30  ;;  %12646 = vmatprep.subr.bf16.mxu1 %v13285_v25  ;;  %v9189_v20 = vld [vmem:[%s15869_s9 + $0x600] sm:$0xff] }
 0x605   : > { %12777 = vmatpush3.bf16.msra.mxu0 %v12776_v31  ;;  %11510 = vmatprep.mubr.msk.f32.mxu0 %vm13286_vm1, %v13287_v23  ;;  %v9041_v31 = vld [vmem:[%s15869_s9 + $0x1e8] sm:$0xff] }
 0x606   : > { %12778 = vmatprep.subr.bf16.mxu0 %v13285_v25  ;;  %v12674_v11 = vpack.c.bf16 %v9041_v31, %v9040_v29  ;;  %v9159_v29 = vld [vmem:[%s15869_s9 + $0x530] sm:$0xff]  ;;  %v9160_v31 = vld [vmem:[%s15869_s9 + $0x538] sm:$0xff] }
 0x607   : > { %12648 = vmatpush3.bf16.msra.mxu1 %v12647_v36  ;;  %v9042_v36 = vld [vmem:[%s15869_s9 + $0x1f0] sm:$0xff]  ;;  %v12833_v35 = vpack.c.bf16 %v9160_v31, %v9159_v29  ;;  %v9193_v31 = vld [vmem:[%s15869_s9 + $0x620] sm:$0xff] }
 0x608   : > { %12649 = vmatprep.subr.bf16.mxu1 %v13285_v25 }
 0x609   : > { %12780 = vmatpush3.bf16.msra.mxu0 %v12779_v37  ;;  %v9043_v37 = vld [vmem:[%s15869_s9 + $0x1f8] sm:$0xff] }
 0x60a   : > { %12781 = vmatprep.subr.bf16.mxu0 %v13285_v25  ;;  %v12677_v40 = vpack.c.bf16 %v9043_v37, %v9042_v36  ;;  %v9162_v36 = vld [vmem:[%s15869_s9 + $0x540] sm:$0xff]  ;;  %v9163_v37 = vld [vmem:[%s15869_s9 + $0x548] sm:$0xff] }
 0x60b   : > { %12651 = vmatpush3.bf16.msra.mxu1 %v12650_v44  ;;  %v9045_v44 = vld [vmem:[%s15869_s9 + $0x200] sm:$0xff] }
 0x60c   : > { %12652 = vmatprep.subr.bf16.mxu1 %v13285_v25 }
 0x60d   : > { %12783 = vmatpush3.bf16.msra.mxu0 %v12782_v2  ;;  %v9046_v2 = vld [vmem:[%s15869_s9 + $0x208] sm:$0xff] }
 0x60e   : > { %12784 = vmatprep.subr.bf16.mxu0 %v13285_v25  ;;  %v12680_v28 = vpack.c.bf16 %v9046_v2, %v9045_v44  ;;  %v9065_v44 = vld [vmem:[%s15869_s9 + $0x290] sm:$0xff]  ;;  %v9066_v2 = vld [vmem:[%s15869_s9 + $0x298] sm:$0xff] }
 0x60f   : > { %12654 = vmatpush3.bf16.msra.mxu1 %v12653_v51  ;;  %v7665_v51 = vrot.slane %v15236_v30, 3 }
 0x610   : > { %12655 = vmatprep.subr.bf16.mxu1 %v13285_v25 }
 0x611   : > { %12786 = vmatpush3.bf16.msra.mxu0 %v12785_v52  ;;  %v12812_v52 = vpack.c.bf16 %v9145_v47, %v9144_v48  ;;  %v9165_v48 = vld [vmem:[%s15869_s9 + $0x558] sm:$0xff]  ;;  %v12707_v47 = vpack.c.bf16 %v9066_v2, %v9065_v44 }
 0x612   : > { %12787 = vmatprep.subr.bf16.mxu0 %v13285_v25  ;;  %11302 = vmatmul.mubr.msk.f32.vlgmr.msra.gmra.mrb[0].mxu1 %vm3578_vm14, %v15300_v56  ;;  %v9164_v56 = vld [vmem:[%s15869_s9 + $0x550] sm:$0xff] }
 0x613   : > { %12657 = vmatpush3.bf16.msra.mxu1 %v12656_v24  ;;  %11320 = vmatprep.mubr.msk.f32.mxu1 %vm13286_vm1, %v13287_v23  ;;  %v12683_v24 = vpack.c.bf16 %v9048_v53, %v9047_v18  ;;  %v9167_v18 = vld [vmem:[%s15869_s9 + $0x568] sm:$0xff] }
 0x614   : > { %11511 = vmatmul.mubr.msk.f32.vlgmr.msra.gmra.mrb[0].mxu0 %vm3578_vm14, %v7499_v58  ;;  %12658 = vmatprep.subr.bf16.mxu1 %v13285_v25  ;;  %v12815_v58 = vpack.c.bf16 %v9147_v54, %v9146_v19  ;;  %v9069_v54 = vld [vmem:[%s15869_s9 + $0x2b0] sm:$0xff] }
 0x615   : > { %12789 = vmatpush3.bf16.msra.mxu0 %v12788_v17  ;;  %11529 = vmatprep.mubr.msk.f32.mxu0 %vm13286_vm1, %v13287_v23  ;;  %v9049_v17 = vld [vmem:[%s15869_s9 + $0x220] sm:$0xff] }
 0x616   : > { %12790 = vmatprep.subr.bf16.mxu0 %v13285_v25  ;;  %v12686_v61 = vpack.c.bf16 %v9050_v59, %v9049_v17  ;;  %v9169_v17 = vld [vmem:[%s15869_s9 + $0x578] sm:$0xff] }
 0x617   : > { %12660 = vmatpush3.bf16.msra.mxu1 %v12659_v62  ;;  %v12818_v62 = vpack.c.bf16 %v9149_v60, %v9148_v55  ;;  %v9171_v60 = vld [vmem:[%s15869_s9 + $0x580] sm:$0xff] }
 0x618   : > { %12661 = vmatprep.subr.bf16.mxu1 %v13285_v25 }
 0x619   : > { %12792 = vmatpush3.bf16.msra.mxu0 %v12791_v0  ;;  %v9051_v0 = vld [vmem:[%s15869_s9 + $0x230] sm:$0xff] }
 0x61a   : > { %12793 = vmatprep.subr.bf16.mxu0 %v13285_v25  ;;  %v12689_v1 = vpack.c.bf16 %v9052_v43, %v9051_v0  ;;  %v9173_v43 = vld [vmem:[%s15869_s9 + $0x590] sm:$0xff] }
 0x61b   : > { %12663 = vmatpush3.bf16.msra.mxu1 %v12662_v6  ;;  %v12821_v6 = vpack.c.bf16 %v9151_v63, %v9150_v50  ;;  %v9174_v50 = vld [vmem:[%s15869_s9 + $0x598] sm:$0xff] }
 0x61c   : > { %12664 = vmatprep.subr.bf16.mxu1 %v13285_v25  ;;  %v12851_v63 = vpack.c.bf16 %v9174_v50, %v9173_v43  ;;  %v6154_v43 = vld [vmem:[%s15870_s10] sm:$0x1] }
 0x61d   : > { %12795 = vmatpush3.bf16.msra.mxu0 %v12794_v3  ;;  %v9054_v3 = vld [vmem:[%s15869_s9 + $0x240] sm:$0xff] }
 0x61e   : > { %12796 = vmatprep.subr.bf16.mxu0 %v13285_v25  ;;  %v8326_v50 = vld [vmem:[%s15873_s13] sm:$0xff] }
 0x61f   : > { %12666 = vmatpush3.bf16.msra.mxu1 %v12665_v9  ;;  %v12692_v9 = vpack.c.bf16 %v9055_v4, %v9054_v3  ;;  %v9177_v3 = vld [vmem:[%s15869_s9 + $0x5b0] sm:$0xff]  ;;  %v9178_v4 = vld [vmem:[%s15869_s9 + $0x5b8] sm:$0xff] }
 0x620   : > { %12667 = vmatprep.subr.bf16.mxu1 %v13285_v25  ;;  %v12857_v5 = vpack.c.bf16 %v9178_v4, %v9177_v3 }
 0x621   : > { %12798 = vmatpush3.bf16.msra.mxu0 %v12797_v57  ;;  %v7748_v57 = vrot.slane %v15236_v30, 4  ;;  %v9156_v30 = vld [vmem:[%s15869_s9 + $0x518] sm:$0xff] }
 0x622   : > { %12799 = vmatprep.subr.bf16.mxu0 %v13285_v25  ;;  %11321 = vmatmul.mubr.msk.f32.vlgmr.msra.gmra.mrb[0].mxu1 %vm3578_vm14, %v6665_v14  ;;  %v12695_v14 = vpack.c.bf16 %v9057_v12, %v9056_v15  ;;  %v9183_v15 = vld [vmem:[%s15869_s9 + $0x5d8] sm:$0xff] }
 0x623   : > { %12669 = vmatpush3.bf16.msra.mxu1 %v12668_v16  ;;  %11339 = vmatprep.mubr.msk.f32.mxu1 %vm13286_vm1, %v13287_v23  ;;  %v12827_v16 = vpack.c.bf16 %v9156_v30, %v9155_v13  ;;  %v9184_v13 = vld [vmem:[%s15869_s9 + $0x5e0] sm:$0xff]  ;;  %v9185_v30 = vld [vmem:[%s15869_s9 + $0x5e8] sm:$0xff] }
 0x624   : > { %11530 = vmatmul.mubr.msk.f32.vlgmr.msra.gmra.mrb[0].mxu0 %vm3578_vm14, %v7582_v32  ;;  %12670 = vmatprep.subr.bf16.mxu1 %v13285_v25  ;;  %v9058_v32 = vld [vmem:[%s15869_s9 + $0x260] sm:$0xff] }
 0x625   : > { %12801 = vmatpush3.bf16.msra.mxu0 %v12800_v7  ;;  %11548 = vmatprep.mubr.msk.f32.mxu0 %vm13286_vm1, %v13287_v23  ;;  %v9059_v7 = vld [vmem:[%s15869_s9 + $0x268] sm:$0xff] }
 0x626   : > { %12802 = vmatprep.subr.bf16.mxu0 %v13285_v25  ;;  %v12698_v21 = vpack.c.bf16 %v9059_v7, %v9058_v32  ;;  %v9187_v32 = vld [vmem:[%s15869_s9 + $0x5f8] sm:$0xff] }
 0x627   : > { %12672 = vmatpush3.bf16.msra.mxu1 %v12671_v26  ;;  %v9060_v26 = vld [vmem:[%s15869_s9 + $0x270] sm:$0xff] }
 0x628   : > { %12673 = vmatprep.subr.bf16.mxu1 %v13285_v25 }
 0x629   : > { %12804 = vmatpush3.bf16.msra.mxu0 %v12803_v27  ;;  %v9061_v27 = vld [vmem:[%s15869_s9 + $0x278] sm:$0xff] }
 0x62a   : > { %12805 = vmatprep.subr.bf16.mxu0 %v13285_v25  ;;  %v12701_v34 = vpack.c.bf16 %v9061_v27, %v9060_v26  ;;  %v9191_v26 = vld [vmem:[%s15869_s9 + $0x610] sm:$0xff]  ;;  %v9192_v27 = vld [vmem:[%s15869_s9 + $0x618] sm:$0xff] }
 0x62b   : > { %12675 = vmatpush3.bf16.msra.mxu1 %v12674_v11  ;;  %v9063_v11 = vld [vmem:[%s15869_s9 + $0x280] sm:$0xff]  ;;  %v12875_v29 = vpack.c.bf16 %v9192_v27, %v9191_v26 }
 0x62c   : > { %12676 = vmatprep.subr.bf16.mxu1 %v13285_v25 }
 0x62d   : > { %12807 = vmatpush3.bf16.msra.mxu0 %v12806_v41  ;;  %v9064_v41 = vld [vmem:[%s15869_s9 + $0x288] sm:$0xff] }
 0x62e   : > { %12808 = vmatprep.subr.bf16.mxu0 %v13285_v25  ;;  %v12704_v39 = vpack.c.bf16 %v9064_v41, %v9063_v11  ;;  %v9195_v11 = vld [vmem:[%s15869_s9 + $0x630] sm:$0xff]  ;;  %v9196_v41 = vld [vmem:[%s15869_s9 + $0x638] sm:$0xff] }
 0x62f   : > { %12678 = vmatpush3.bf16.msra.mxu1 %v12677_v40  ;;  %v15560_v40 = vld [vmem:[#allocation5 + $0x20] sm:$0x1f] }
 0x630   : > { %12679 = vmatprep.subr.bf16.mxu1 %v13285_v25 }
 0x631   : > { %12810 = vmatpush3.bf16.msra.mxu0 %v12809_v42  ;;  %v12836_v42 = vpack.c.bf16 %v9163_v37, %v9162_v36  ;;  %v12881_v36 = vpack.c.bf16 %v9196_v41, %v9195_v11  ;;  %v8165_v37 = vrot.slane %v15560_v40, 4 }
 0x632   : > { %12811 = vmatprep.subr.bf16.mxu0 %v13285_v25  ;;  %11340 = vmatmul.mubr.msk.f32.vlgmr.msra.gmra.mrb[0].mxu1 %vm3578_vm14, %v6748_v49  ;;  %v12839_v49 = vpack.c.bf16 %v9165_v48, %v9164_v56  ;;  %v8243_v56 = vld [vmem:[%s15871_s11 + $0x20] sm:$0xff]  ;;  %v8244_v48 = vld [vmem:[%s15871_s11 + $0x28] sm:$0xff] }
 0x633   : > { %12681 = vmatpush3.bf16.msra.mxu1 %v12680_v28  ;;  %11358 = vmatprep.mubr.msk.f32.mxu1 %vm13286_vm1, %v13287_v23  ;;  %v9067_v28 = vld [vmem:[%s15869_s9 + $0x2a0] sm:$0xff] }
 0x634   : > { %11549 = vmatmul.mubr.msk.f32.vlgmr.msra.gmra.mrb[0].mxu0 %vm3578_vm14, %v7665_v51  ;;  %12682 = vmatprep.subr.bf16.mxu1 %v13285_v25  ;;  %v9068_v51 = vld [vmem:[%s15869_s9 + $0x2a8] sm:$0xff] }
 0x635   : > { %12813 = vmatpush3.bf16.msra.mxu0 %v12812_v52  ;;  %11567 = vmatprep.mubr.msk.f32.mxu0 %vm13286_vm1, %v13287_v23  ;;  %v9166_v52 = vld [vmem:[%s15869_s9 + $0x560] sm:$0xff]  ;;  %v12710_v53 = vpack.c.bf16 %v9068_v51, %v9067_v28  ;;  %v8246_v28 = vld [vmem:[%s15871_s11 + $0x38] sm:$0xff] }
 0x636   : > { %12814 = vmatprep.subr.bf16.mxu0 %v13285_v25  ;;  %v12842_v19 = vpack.c.bf16 %v9167_v18, %v9166_v52  ;;  %v8247_v52 = vld [vmem:[%s15871_s11 + $0x40] sm:$0xff]  ;;  %v8248_v18 = vld [vmem:[%s15871_s11 + $0x48] sm:$0xff] }
 0x637   : > { %12684 = vmatpush3.bf16.msra.mxu1 %v12683_v24  ;;  %v9070_v24 = vld [vmem:[%s15869_s9 + $0x2b8] sm:$0xff] }
 0x638   : > { %12685 = vmatprep.subr.bf16.mxu1 %v13285_v25  ;;  %v12713_v59 = vpack.c.bf16 %v9070_v24, %v9069_v54  ;;  %v8250_v54 = vld [vmem:[%s15871_s11 + $0x58] sm:$0xff] }
 0x639   : > { %12816 = vmatpush3.bf16.msra.mxu0 %v12815_v58  ;;  %v9168_v58 = vld [vmem:[%s15869_s9 + $0x570] sm:$0xff] }
 0x63a   : > { %12817 = vmatprep.subr.bf16.mxu0 %v13285_v25  ;;  %v12845_v55 = vpack.c.bf16 %v9169_v17, %v9168_v58  ;;  %v8251_v58 = vld [vmem:[%s15871_s11 + $0x60] sm:$0xff]  ;;  %v8252_v17 = vld [vmem:[%s15871_s11 + $0x68] sm:$0xff] }
 0x63b   : > { %12687 = vmatpush3.bf16.msra.mxu1 %v12686_v61  ;;  %v9172_v61 = vld [vmem:[%s15869_s9 + $0x588] sm:$0xff] }
 0x63c   : > { %12688 = vmatprep.subr.bf16.mxu1 %v13285_v25  ;;  %v12848_v0 = vpack.c.bf16 %v9172_v61, %v9171_v60  ;;  %v8254_v60 = vld [vmem:[%s15871_s11 + $0x78] sm:$0xff] }
 0x63d   : > { %12819 = vmatpush3.bf16.msra.mxu0 %v12818_v62  ;;  %v7916_v62 = vrot.slane %v15560_v40, 1 }
 0x63e   : > { %12820 = vmatprep.subr.bf16.mxu0 %v13285_v25 }
 0x63f   : > { %12690 = vmatpush3.bf16.msra.mxu1 %v12689_v1  ;;  %v9175_v1 = vld [vmem:[%s15869_s9 + $0x5a0] sm:$0xff] }
 0x640   : > { %12691 = vmatprep.subr.bf16.mxu1 %v13285_v25 }
 0x641   : > { %12822 = vmatpush3.bf16.msra.mxu0 %v12821_v6 }
 0x642   : > { %12823 = vmatprep.subr.bf16.mxu0 %v13285_v25  ;;  %11359 = vmatmul.mubr.msk.f32.vlgmr.msra.gmra.mrb[0].mxu1 %vm3578_vm14, %v6831_v8  ;;  %v9181_v8 = vld [vmem:[%s15869_s9 + $0x5c8] sm:$0xff] }
 0x643   : > { %12693 = vmatpush3.bf16.msra.mxu1 %v12692_v9  ;;  %11377 = vmatprep.mubr.msk.f32.mxu1 %vm13286_vm1, %v13287_v23  ;;  %v7999_v9 = vrot.slane %v15560_v40, 2 }
 0x644   : > { %11568 = vmatmul.mubr.msk.f32.vlgmr.msra.gmra.mrb[0].mxu0 %vm3578_vm14, %v7748_v57  ;;  %12694 = vmatprep.subr.bf16.mxu1 %v13285_v25  ;;  %v12860_v57 = vpack.c.bf16 %v9181_v8, %v9180_v46  ;;  %v8329_v46 = vld [vmem:[%s15873_s13 + $0x18] sm:$0xff] }
 0x645   : > { %12825 = vmatpush3.bf16.msra.mxu0 %v12824_v10  ;;  %11586 = vmatprep.mubr.msk.f32.mxu0 %vm13286_vm1, %v13287_v23  ;;  %v9182_v10 = vld [vmem:[%s15869_s9 + $0x5d0] sm:$0xff] }
 0x646   : > { %12826 = vmatprep.subr.bf16.mxu0 %v13285_v25  ;;  %v12863_v12 = vpack.c.bf16 %v9183_v15, %v9182_v10  ;;  %v8333_v15 = vld [vmem:[%s15873_s13 + $0x38] sm:$0xff] }
 0x647   : > { %12696 = vmatpush3.bf16.msra.mxu1 %v12695_v14  ;;  %v12866_v14 = vpack.c.bf16 %v9185_v30, %v9184_v13  ;;  %v8255_v13 = vld [vmem:[%s15872_s12] sm:$0x1] }
 0x648   : > { %12697 = vmatprep.subr.bf16.mxu1 %v13285_v25 }
 0x649   : > { %12828 = vmatpush3.bf16.msra.mxu0 %v12827_v16  ;;  %v9186_v16 = vld [vmem:[%s15869_s9 + $0x5f0] sm:$0xff] }
 0x64a   : > { %12829 = vmatprep.subr.bf16.mxu0 %v13285_v25  ;;  %v12869_v7 = vpack.c.bf16 %v9187_v32, %v9186_v16  ;;  %v8334_v16 = vld [vmem:[%s15874_s14] sm:$0x1] }
 0x64b   : > { %12699 = vmatpush3.bf16.msra.mxu1 %v12698_v21  ;;  %v8082_v21 = vrot.slane %v15560_v40, 3 }
 0x64c   : > { %12700 = vmatprep.subr.bf16.mxu1 %v13285_v25 }
 0x64d   : > { %12831 = vmatpush3.bf16.msra.mxu0 %v12830_v22  ;;  %v12872_v22 = vpack.c.bf16 %v9190_v33, %v9189_v20 }
 0x64e   : > { %12832 = vmatprep.subr.bf16.mxu0 %v13285_v25 }
 0x64f   : > { %12702 = vmatpush3.bf16.msra.mxu1 %v12701_v34  ;;  %v9194_v34 = vld [vmem:[%s15869_s9 + $0x628] sm:$0xff] }
 0x650   : > { %12703 = vmatprep.subr.bf16.mxu1 %v13285_v25 }
 0x651   : > { %12834 = vmatpush3.bf16.msra.mxu0 %v12833_v35  ;;  %v12878_v35 = vpack.c.bf16 %v9194_v34, %v9193_v31 }
 0x652   : > { %12835 = vmatprep.subr.bf16.mxu0 %v13285_v25  ;;  %11378 = vmatmul.mubr.msk.f32.vlgmr.msra.gmra.mrb[0].mxu1 %vm3578_vm14, %v6914_v38  ;;  %v8239_v38 = vld [vmem:[%s15871_s11] sm:$0xff] }
 0x653   : > { %12705 = vmatpush3.bf16.msra.mxu1 %v12704_v39  ;;  %11396 = vmatprep.mubr.msk.f32.mxu1 %vm13286_vm1, %v13287_v23  ;;  %v8240_v39 = vld [vmem:[%s15871_s11 + $0x8] sm:$0xff] }
 0x654   : > { %11587 = vmatmul.mubr.msk.f32.vlgmr.msra.gmra.mrb[0].mxu0 %vm3578_vm14, %v15560_v40  ;;  %12706 = vmatprep.subr.bf16.mxu1 %v13285_v25  ;;  %v12884_v44 = vpack.c.bf16 %v8240_v39, %v8239_v38  ;;  %v8242_v40 = vld [vmem:[%s15871_s11 + $0x18] sm:$0xff] }
 0x655   : > { %12837 = vmatpush3.bf16.msra.mxu0 %v12836_v42  ;;  %11605 = vmatprep.mubr.msk.f32.mxu0 %vm13286_vm1, %v13287_v23  ;;  %v8241_v42 = vld [vmem:[%s15871_s11 + $0x10] sm:$0xff] }
 0x656   : > { %12838 = vmatprep.subr.bf16.mxu0 %v13285_v25  ;;  %v12887_v2 = vpack.c.bf16 %v8242_v40, %v8241_v42 }
 0x657   : > { %12708 = vmatpush3.bf16.msra.mxu1 %v12707_v47  ;;  %v12890_v47 = vpack.c.bf16 %v8244_v48, %v8243_v56 }
 0x658   : > { %12709 = vmatprep.subr.bf16.mxu1 %v13285_v25 }
 0x659   : > { %12840 = vmatpush3.bf16.msra.mxu0 %v12839_v49  ;;  %v8245_v49 = vld [vmem:[%s15871_s11 + $0x30] sm:$0xff] }
 0x65a   : > { %12841 = vmatprep.subr.bf16.mxu0 %v13285_v25  ;;  %v12893_v51 = vpack.c.bf16 %v8246_v28, %v8245_v49 }
 0x65b   : > { %12711 = vmatpush3.bf16.msra.mxu1 %v12710_v53  ;;  %v12896_v53 = vpack.c.bf16 %v8248_v18, %v8247_v52 }
 0x65c   : > { %12712 = vmatprep.subr.bf16.mxu1 %v13285_v25 }
 0x65d   : > { %12843 = vmatpush3.bf16.msra.mxu0 %v12842_v19  ;;  %v8249_v19 = vld [vmem:[%s15871_s11 + $0x50] sm:$0xff] }
 0x65e   : > { %12844 = vmatprep.subr.bf16.mxu0 %v13285_v25  ;;  %v12899_v24 = vpack.c.bf16 %v8250_v54, %v8249_v19 }
 0x65f   : > { %12714 = vmatpush3.bf16.msra.mxu1 %v12713_v59  ;;  %v12902_v59 = vpack.c.bf16 %v8252_v17, %v8251_v58 }
 0x660   : > { %12883 = vmatprep.subr.bf16.mxu1 %v13285_v25 }
 0x661   : > { %12846 = vmatpush3.bf16.msra.mxu0 %v12845_v55  ;;  %v8253_v55 = vld [vmem:[%s15871_s11 + $0x70] sm:$0xff] }
 0x662   : > { %12847 = vmatprep.subr.bf16.mxu0 %v13285_v25  ;;  %11397 = vmatmul.mubr.msk.f32.vlgmr.msra.gmra.mrb[0].mxu1 %vm3578_vm14, %v14967_v45  ;;  %v9176_v45 = vld [vmem:[%s15869_s9 + $0x5a8] sm:$0xff]  ;;  %v12905_v61 = vpack.c.bf16 %v8254_v60, %v8253_v55 }
 0x663   : > { %11697 = vmatprep.mubr.msk.f32.mxu1 %vm13286_vm1, %v13287_v23  ;;  %v12854_v6 = vpack.c.bf16 %v9176_v45, %v9175_v1  ;;  %12885 = vmatpush3.bf16.msra.mxu1 %v12884_v44 }
 0x664   : > { %11606 = vmatmul.mubr.msk.f32.vlgmr.msra.gmra.mrb[0].mxu0 %vm3578_vm14, %v7916_v62  ;;  %12886 = vmatprep.subr.bf16.mxu1 %v13285_v25 }
 0x665   : > { %12849 = vmatpush3.bf16.msra.mxu0 %v12848_v0  ;;  %11624 = vmatprep.mubr.msk.f32.mxu0 %vm13286_vm1, %v13287_v23 }
 0x666   : > { %12850 = vmatprep.subr.bf16.mxu0 %v13285_v25 }
 0x667   : > { %12888 = vmatpush3.bf16.msra.mxu1 %v12887_v2 }
 0x668   : > { %12889 = vmatprep.subr.bf16.mxu1 %v13285_v25 }
 0x669   : > { %12852 = vmatpush3.bf16.msra.mxu0 %v12851_v63  ;;  %v8327_v63 = vld [vmem:[%s15873_s13 + $0x8] sm:$0xff] }
 0x66a   : > { %12853 = vmatprep.subr.bf16.mxu0 %v13285_v25 }
 0x66b   : > { %12891 = vmatpush3.bf16.msra.mxu1 %v12890_v47 }
 0x66c   : > { %12892 = vmatprep.subr.bf16.mxu1 %v13285_v25 }
 0x66d   : > { %12855 = vmatpush3.bf16.msra.mxu0 %v12854_v6  ;;  %v12908_v6 = vpack.c.bf16 %v8327_v63, %v8326_v50 }
 0x66e   : > { %12856 = vmatprep.subr.bf16.mxu0 %v13285_v25 }
 0x66f   : > { %12894 = vmatpush3.bf16.msra.mxu1 %v12893_v51 }
 0x670   : > { %12895 = vmatprep.subr.bf16.mxu1 %v13285_v25 }
 0x671   : > { %12858 = vmatpush3.bf16.msra.mxu0 %v12857_v5  ;;  %v8328_v5 = vld [vmem:[%s15873_s13 + $0x10] sm:$0xff] }
 0x672   : > { %12859 = vmatprep.subr.bf16.mxu0 %v13285_v25  ;;  %v12911_v8 = vpack.c.bf16 %v8329_v46, %v8328_v5 }
 0x673   : > { %12897 = vmatpush3.bf16.msra.mxu1 %v12896_v53 }
 0x674   : > { %11625 = vmatmul.mubr.msk.f32.vlgmr.msra.gmra.mrb[0].mxu0 %vm3578_vm14, %v7999_v9  ;;  %12898 = vmatprep.subr.bf16.mxu1 %v13285_v25  ;;  %v8330_v9 = vld [vmem:[%s15873_s13 + $0x20] sm:$0xff] }
 0x675   : > { %12861 = vmatpush3.bf16.msra.mxu0 %v12860_v57  ;;  %11643 = vmatprep.mubr.msk.f32.mxu0 %vm13286_vm1, %v13287_v23  ;;  %v8331_v57 = vld [vmem:[%s15873_s13 + $0x28] sm:$0xff] }
 0x676   : > { %12862 = vmatprep.subr.bf16.mxu0 %v13285_v25  ;;  %v12914_v10 = vpack.c.bf16 %v8331_v57, %v8330_v9 }
 0x677   : > { %12900 = vmatpush3.bf16.msra.mxu1 %v12899_v24 }
 0x678   : > { %12901 = vmatprep.subr.bf16.mxu1 %v13285_v25 }
 0x679   : > { %12864 = vmatpush3.bf16.msra.mxu0 %v12863_v12 }
 0x67a   : > { %12865 = vmatprep.subr.bf16.mxu0 %v13285_v25 }
 0x67b   : > { %12903 = vmatpush3.bf16.msra.mxu1 %v12902_v59 }
 0x67c   : > { %12904 = vmatprep.subr.bf16.mxu1 %v13285_v25 }
 0x67d   : > { %12867 = vmatpush3.bf16.msra.mxu0 %v12866_v14 }
 0x67e   : > { %12868 = vmatprep.subr.bf16.mxu0 %v13285_v25 }
 0x67f   : > { %12906 = vmatpush3.bf16.msra.mxu1 %v12905_v61 }
 0x680   : > { %12907 = vmatprep.subr.bf16.mxu1 %v13285_v25 }
 0x681   : > { %12870 = vmatpush3.bf16.msra.mxu0 %v12869_v7 }
 0x682   : > { %12871 = vmatprep.subr.bf16.mxu0 %v13285_v25 }
 0x684   : > { %11644 = vmatmul.mubr.msk.f32.vlgmr.msra.gmra.mrb[0].mxu0 %vm3578_vm14, %v8082_v21 }
 0x685   : > { %12873 = vmatpush3.bf16.msra.mxu0 %v12872_v22  ;;  %11662 = vmatprep.mubr.msk.f32.mxu0 %vm13286_vm1, %v13287_v23 }
 0x686   : > { %12874 = vmatprep.subr.bf16.mxu0 %v13285_v25 }
 0x689   : > { %12876 = vmatpush3.bf16.msra.mxu0 %v12875_v29 }
 0x68a   : > { %12877 = vmatprep.subr.bf16.mxu0 %v13285_v25 }
 0x68d   : > { %12879 = vmatpush3.bf16.msra.mxu0 %v12878_v35 }
 0x68e   : > { %12880 = vmatprep.subr.bf16.mxu0 %v13285_v25 }
 0x691   : > { %12882 = vmatpush3.bf16.msra.mxu0 %v12881_v36 }
 0x694   : > { %11663 = vmatmul.mubr.msk.f32.vlgmr.msra.gmra.mrb[0].mxu0 %vm3578_vm14, %v8165_v37 }
 0x735   : > { %v7068_v62 = vpop.f32.mrb[0].mxu1 }
 0x736   : > { %v11398_v0 = vpop.f32.mrb[1].mxu1  ;;  %v13065_v1 = vadd.f32 %v7068_v62, %v6154_v43 }
 0x767   : > { %v8234_v45 = vpop.f32.mrb[0].mxu0 }
 0x768   : > { %v13066_v3 = vadd.f32 %v13065_v1, %v8234_v45  ;;  %v11664_v4 = vpop.f32.mrb[1].mxu0 }
 0x76a   : > { %11698 = vmatmul.mubr.f32.vlgmr.msra.gmra.mrb[2].mxu1 %v13066_v3 }
 0x76b   : > { %12909 = vmatpush3.bf16.msra.mxu1 %v12908_v6  ;;  %11716 = vmatprep.mubr.msk.f32.mxu1 %vm13286_vm1, %v13287_v23  ;;  %v8332_v23 = vld [vmem:[%s15873_s13 + $0x30] sm:$0xff] }
 0x76c   : > { %12910 = vmatprep.subr.bf16.mxu1 %v13285_v25  ;;  %v12917_v12 = vpack.c.bf16 %v8333_v15, %v8332_v23 }
 0x76f   : > { %12912 = vmatpush3.bf16.msra.mxu1 %v12911_v8 }
 0x770   : > { %12913 = vmatprep.subr.bf16.mxu1 %v13285_v25 }
 0x773   : > { %12915 = vmatpush3.bf16.msra.mxu1 %v12914_v10 }
 0x774   : > { %12916 = vmatprep.subr.bf16.mxu1 %v13285_v25 }
 0x777   : > { %12918 = vmatpush3.bf16.msra.mxu1 %v12917_v12 }
 0x83d   : > { %v8322_v30 = vpop.f32.mrb[2].mxu1 }
 0x83e   : > { %v8323_v14 = vadd.f32 %v8322_v30, %v8255_v13  ;;  %v11699_v25 = vpop.f32.mrb[3].mxu1 }
 0x840   : > { %11717 = vmatmul.mubr.msk.f32.vlgmr.msra.gmra.mrb[4].mxu1 %vm3578_vm14, %v8323_v14 }
 0x913   : > { %v8404_v32 = vpop.f32.mrb[4].mxu1 }
 0x914   : > { %v8405_v7 = vadd.f32 %v8404_v32, %v8334_v16  ;;  %v11718_v20 = vpop.f32.mrb[5].mxu1 }
 0x916   : > { %8409 = vst.msk [vmem:[%s13432_s24] sm:$0x1] %vm8408_vm2, %v8405_v7 }
 0x917   : > { %13201 = shalt.err (!%p13198_p9)
}
 0x918   : > { %s13202_s24 = scalar_lea.hbm %s15815_s27, 16  ;;  %s13206_s16 = scalar_lea.hbm %s15875_s15, 32 }
 0x919   : > { %p13203_p10 = scmp.ne.s32.totalorder %s15815_s27, %s13202_s24  ;;  %p13207_p13 = scmp.lt.u32.totalorder %s15815_s27, %s15875_s15 }
 0x91a   : > { %p13208_p0 = scmp.lt.u32.totalorder %s13206_s16, %s13202_s24  ;;  %p13210_p2 = scmp.lt.u32.totalorder %s13202_s24, %s15815_s27 }
 0x91b   : > { %p13204_p11 = pnand %p13203_p10, %p13407_p5 }
 0x91c   : > { %p13209_p1 = por %p13208_p0, %p13207_p13 }
 0x91d   : > { %p13205_p12 = pneg %p13204_p11 }
 0x91e   : > { %p13211_p3 = por %p13210_p2, %p13209_p1 }
 0x920   : > { %p13212_p4 = pnand %p13211_p3, %p13205_p12 }
 0x922   : > { %13215 = shalt.err (!%p13212_p4)
}
 0x923   : > { %13113 = dma.vmem_to_hbm [thread:$0]  (%p13407_p5), %s15817_s1, 16, %s15815_s27, %s8411_s2  }
 0x924 PF: > { %p13119_p7 = scmp.ge.s32.totalorder %s13266_s21, 2  ;;  %s8435_s17 = sand.u32 1, %s13254_s18  }
 0x925   : > { %s8436_s22 = scalar_lea.sflag [#allocation7], %s8435_s17 }
 0x926   : > { %p13116_p8 = pnand %p13119_p7, %p13411_p6 }
 0x928   : > { %13249 = dma.done.wait (!%p13116_p8), %s8436_s22, 16  }
 0x929   : > { %13251 = vsyncadd (!%p13116_p8), %s8436_s22, 4294967280  ;;  %s15895_s21 = sld [smem:[#allocation10_spill]]  ;;  %s15896_s30 = sld [smem:[#allocation9_spill]] }
 0x92a   : > { %s15897_s20 = sld [smem:[#allocation11_spill]]  ;;  %s15898_s18 = smov %s13258_s19 }
 0x92f   : > { %p25_p9 = scmp.ge.s32.totalorder %s15895_s21, 4   ;;  %s15899_s19 = smov %s15896_s30 }
 0x931   :  { %27 = sbr.rel (!%p25_p9) target bundleno = 7 (0x7), region = 265 }
 0x938   :  { %8440 = vsyncpa [#allocation7], 1 }
 0x939   :  { %8442 = vsyncpa [#allocation7 + $0x1], 1 }

</bundles_post_ra>
